<compile_context>
chip_gen: v6e
topology: v6e:2x2x1
jax: 0.10.0
libtpu: 0.0.40
codegen_flags: <defaults>
</compile_context>

<pallas_src>
import functools
import math

import jax
import jax.numpy as jnp
from jax.experimental import pallas as pl
from jax.experimental.pallas import tpu as pltpu


def _pick_tile(n, cap):
    """Largest tile <= cap that is a multiple of 8 and divides n, else full n."""
    if n <= cap:
        return n
    t = (cap // 8) * 8
    while t >= 8:
        if n % t == 0:
            return t
        t -= 8
    return n


def _cparams():
    return pltpu.CompilerParams(
        dimension_semantics=("parallel",),
        vmem_limit_bytes=64 * 1024 * 1024)


# ----------------------------------------------------------------------------
# Fused attention block:  LN1( x + OutProj( MHA( QKVProj(x) ) ) )
# ----------------------------------------------------------------------------
def _attn_block_kernel(x_ref, wqkv_ref, bqkv_ref, wo_ref, bo_ref, g_ref, beta_ref,
                       o_ref, qkv_scr, attn_scr, *, num_heads, scale, eps):
    Ts, B, D = x_ref.shape
    H = num_heads
    hd = D // H

    # --- fused QKV projection: rank-2, lane-dense MXU matmuls (bf16 in, f32 acc) ---
    for b in range(B):
        xb = x_ref[:, b, :].astype(jnp.bfloat16)                       # (Ts, D)
        qkv_scr[:, b, :] = (
            jnp.dot(xb, wqkv_ref[...], preferred_element_type=jnp.float32)
            + bqkv_ref[...])

    # --- per-head attention.  Batch axis = sequence position s (axis 0),
    #     length axis = original batch B (axis 1): identical semantics to
    #     feeding the module's (B, S, D) tensor into seq-first MultiheadAttention.
    for h in range(H):
        qh = qkv_scr[:, :, h * hd:(h + 1) * hd] * scale                # (Ts, B, hd)
        kh = qkv_scr[:, :, D + h * hd:D + (h + 1) * hd]
        vh = qkv_scr[:, :, 2 * D + h * hd:2 * D + (h + 1) * hd]
        s = jnp.einsum("sae,sbe->sab", qh, kh,
                       preferred_element_type=jnp.float32)             # (Ts, B, B)
        m = jnp.max(s, axis=-1, keepdims=True)
        p = jnp.exp(s - m)
        p = p * pl.reciprocal(jnp.sum(p, axis=-1, keepdims=True), approx=True)
        attn_scr[:, :, h * hd:(h + 1) * hd] = jnp.einsum(
            "sab,sbe->sae", p, vh, preferred_element_type=jnp.float32)

    # --- out-projection + residual + LayerNorm; stored last dim is D (lane-dense) ---
    for b in range(B):
        ab = attn_scr[:, b, :].astype(jnp.bfloat16)                    # (Ts, D)
        y = (jnp.dot(ab, wo_ref[...], preferred_element_type=jnp.float32)
             + bo_ref[...] + x_ref[:, b, :])
        mean = jnp.mean(y, axis=-1, keepdims=True)
        yc = y - mean
        var = jnp.mean(yc * yc, axis=-1, keepdims=True)
        o_ref[:, b, :] = yc * jax.lax.rsqrt(var + eps) * g_ref[...] + beta_ref[...]


def attention_block(x3, p, num_heads, eps=1e-5):
    S, B, D = x3.shape
    H = num_heads
    hd = D // H
    ts = _pick_tile(S, 128)
    M = S * B
    kernel = functools.partial(_attn_block_kernel, num_heads=H,
                               scale=1.0 / math.sqrt(hd), eps=eps)
    flops = 2 * M * D * 3 * D + 2 * M * D * D + 4 * S * H * B * B * hd
    bytes_accessed = 4 * 2 * M * D + 2 * (3 * D * D + D * D) + 4 * 6 * D
    return pl.pallas_call(
        kernel,
        out_shape=jax.ShapeDtypeStruct((S, B, D), jnp.float32),
        grid=(S // ts,),
        in_specs=[
            pl.BlockSpec((ts, B, D), lambda i: (i, 0, 0)),
            pl.BlockSpec((D, 3 * D), lambda i: (0, 0)),
            pl.BlockSpec((1, 3 * D), lambda i: (0, 0)),
            pl.BlockSpec((D, D), lambda i: (0, 0)),
            pl.BlockSpec((1, D), lambda i: (0, 0)),
            pl.BlockSpec((1, D), lambda i: (0, 0)),
            pl.BlockSpec((1, D), lambda i: (0, 0)),
        ],
        out_specs=pl.BlockSpec((ts, B, D), lambda i: (i, 0, 0)),
        scratch_shapes=[
            pltpu.VMEM((ts, B, 3 * D), jnp.float32),
            pltpu.VMEM((ts, B, D), jnp.float32),
        ],
        compiler_params=_cparams(),
        cost_estimate=pl.CostEstimate(flops=flops,
                                      transcendentals=S * H * B * B + M,
                                      bytes_accessed=bytes_accessed),
    )(x3, p["in_proj_w"], p["in_proj_b"].reshape(1, 3 * D),
      p["out_proj_w"], p["out_proj_b"].reshape(1, D),
      p["ln1_g"].reshape(1, D), p["ln1_b"].reshape(1, D))


# ----------------------------------------------------------------------------
# Fused 2-layer MLP block:  LN( x + W2 @ act(W1 @ x + b1) + b2 )
# (used for both the feed-forward path and the switch branch; the (tm, F)
#  intermediate -- d_ff or num_switch wide -- never leaves VMEM)
# ----------------------------------------------------------------------------
def _mlp_block_kernel(x_ref, w1_ref, b1_ref, w2_ref, b2_ref, g_ref, beta_ref,
                      o_ref, *, activation, eps):
    x = x_ref[...]                                                     # (tm, D) f32
    h = jnp.dot(x.astype(jnp.bfloat16), w1_ref[...],
                preferred_element_type=jnp.float32) + b1_ref[...]
    if activation == "relu":
        h = jnp.maximum(h, 0.0)
    y = jnp.dot(h.astype(jnp.bfloat16), w2_ref[...],
                preferred_element_type=jnp.float32) + b2_ref[...]
    y = y + x
    mean = jnp.mean(y, axis=-1, keepdims=True)
    yc = y - mean
    var = jnp.mean(yc * yc, axis=-1, keepdims=True)
    o_ref[...] = yc * jax.lax.rsqrt(var + eps) * g_ref[...] + beta_ref[...]


def mlp_block(x2, w1, b1, w2, b2, gamma, beta, activation=None, eps=1e-5):
    M, D = x2.shape
    F = w1.shape[1]
    tm = _pick_tile(M, 512)
    kernel = functools.partial(_mlp_block_kernel, activation=activation, eps=eps)
    flops = 4 * M * D * F
    bytes_accessed = 4 * 2 * M * D + 2 * 2 * D * F + 4 * (F + 3 * D)
    return pl.pallas_call(
        kernel,
        out_shape=jax.ShapeDtypeStruct((M, D), jnp.float32),
        grid=(M // tm,),
        in_specs=[
            pl.BlockSpec((tm, D), lambda i: (i, 0)),
            pl.BlockSpec((D, F), lambda i: (0, 0)),
            pl.BlockSpec((1, F), lambda i: (0, 0)),
            pl.BlockSpec((F, D), lambda i: (0, 0)),
            pl.BlockSpec((1, D), lambda i: (0, 0)),
            pl.BlockSpec((1, D), lambda i: (0, 0)),
            pl.BlockSpec((1, D), lambda i: (0, 0)),
        ],
        out_specs=pl.BlockSpec((tm, D), lambda i: (i, 0)),
        compiler_params=_cparams(),
        cost_estimate=pl.CostEstimate(flops=flops, transcendentals=M,
                                      bytes_accessed=bytes_accessed),
    )(x2, w1, b1.reshape(1, F), w2, b2.reshape(1, D),
      gamma.reshape(1, D), beta.reshape(1, D))


# ----------------------------------------------------------------------------
# Fused output head: vocab projection + log_softmax (logits never hit HBM raw)
# ----------------------------------------------------------------------------
def _logits_lsm_kernel(x_ref, w_ref, b_ref, o_ref):
    logits = jnp.dot(x_ref[...].astype(jnp.bfloat16), w_ref[...],
                     preferred_element_type=jnp.float32) + b_ref[...]
    m = jnp.max(logits, axis=-1, keepdims=True)
    s = logits - m
    lse = jnp.log(jnp.sum(jnp.exp(s), axis=-1, keepdims=True))
    o_ref[...] = s - lse


def logits_log_softmax(x2, w, b):
    M, D = x2.shape
    V = w.shape[1]
    tm = _pick_tile(M, 256)
    # TODO(synk): for very large vocab, tile the vocab axis with an online-LSE
    # two-pass scheme instead of holding a full (tm, V) block in VMEM.
    flops = 2 * M * D * V
    bytes_accessed = 4 * M * D + 2 * D * V + 4 * V + 4 * M * V
    return pl.pallas_call(
        _logits_lsm_kernel,
        out_shape=jax.ShapeDtypeStruct((M, V), jnp.float32),
        grid=(M // tm,),
        in_specs=[
            pl.BlockSpec((tm, D), lambda i: (i, 0)),
            pl.BlockSpec((D, V), lambda i: (0, 0)),
            pl.BlockSpec((1, V), lambda i: (0, 0)),
        ],
        out_specs=pl.BlockSpec((tm, V), lambda i: (i, 0)),
        compiler_params=_cparams(),
        cost_estimate=pl.CostEstimate(flops=flops, transcendentals=2 * M * V,
                                      bytes_accessed=bytes_accessed),
    )(x2, w, b.reshape(1, V))


# ----------------------------------------------------------------------------
# Model (glue in plain JAX, all heavy compute in the fused kernels above)
# ----------------------------------------------------------------------------
def layer_forward(p, h3, num_heads):
    S, B, D = h3.shape
    # self-attention + norm1 (fused)
    a3 = attention_block(h3, p, num_heads)                         # (S, B, D)
    h2 = a3.reshape(S * B, D)
    # feed-forward + norm2 (fused)
    h2 = mlp_block(h2, p["ff1_w"], p["ff1_b"], p["ff2_w"], p["ff2_b"],
                   p["ln2_g"], p["ln2_b"], activation="relu")
    # switch branch + norm3 (fused); the forward pass only uses switch[0]
    h2 = mlp_block(h2, p["sw_w"], p["sw_b"], p["swo_w"], p["swo_b"],
                   p["ln3_g"], p["ln3_b"], activation=None)
    return h2.reshape(S, B, D)


def switch_transformer_forward(params, x, y, *, num_heads):
    # y is accepted but unused, matching the reference forward signature.
    del y
    B, S = x.shape
    D = params["embed"].shape[1]
    pos = jnp.arange(S)
    # Embeddings built directly in seq-first (S, B, D) layout so no transposes
    # are needed between layers; attention then mixes over the B axis exactly
    # like the PyTorch module (which feeds (B, S, D) to seq-first MHA).
    h3 = params["embed"][x.T] + params["pos_embed"][pos][:, None, :]   # (S, B, D)
    # dropout(p=0.0) -> identity
    for lp in params["layers"]:
        h3 = layer_forward(lp, h3, num_heads)
    logp = logits_log_softmax(h3.reshape(S * B, D),
                              params["out_w"], params["out_b"])        # (S*B, V)
    return logp.reshape(S, B, -1).transpose(1, 0, 2)                   # (B, S, V)


# ----------------------------------------------------------------------------
# Deterministic parameter initialization (PyTorch-style shapes)
# ----------------------------------------------------------------------------
def _init_linear(key, fan_in, fan_out, w_dtype=jnp.bfloat16):
    kw, kb = jax.random.split(key)
    bound = 1.0 / math.sqrt(fan_in)
    w = jax.random.uniform(kw, (fan_in, fan_out), jnp.float32, -bound, bound)
    b = jax.random.uniform(kb, (fan_out,), jnp.float32, -bound, bound)
    return w.astype(w_dtype), b          # MXU weights in bf16, biases in f32


def init_params(key, num_layers, d_model, d_ff, num_switch, vocab_size):
    keys = jax.random.split(key, 3 + num_layers)
    params = {
        "embed": 0.02 * jax.random.normal(keys[0], (vocab_size, d_model), jnp.float32),
        "pos_embed": 0.02 * jax.random.normal(keys[1], (1000, d_model), jnp.float32),
    }
    params["out_w"], params["out_b"] = _init_linear(keys[2], d_model, vocab_size)
    layers = []
    for i in range(num_layers):
        lk = jax.random.split(keys[3 + i], 6)
        lp = {}
        lp["in_proj_w"], lp["in_proj_b"] = _init_linear(lk[0], d_model, 3 * d_model)
        lp["out_proj_w"], lp["out_proj_b"] = _init_linear(lk[1], d_model, d_model)
        lp["ff1_w"], lp["ff1_b"] = _init_linear(lk[2], d_model, d_ff)
        lp["ff2_w"], lp["ff2_b"] = _init_linear(lk[3], d_ff, d_model)
        lp["sw_w"], lp["sw_b"] = _init_linear(lk[4], d_model, num_switch)
        lp["swo_w"], lp["swo_b"] = _init_linear(lk[5], num_switch, d_model)
        for n in ("ln1", "ln2", "ln3"):
            lp[n + "_g"] = jnp.ones((d_model,), jnp.float32)
            lp[n + "_b"] = jnp.zeros((d_model,), jnp.float32)
        layers.append(lp)
    params["layers"] = layers
    return params


# ----------------------------------------------------------------------------
if __name__ == "__main__":
    B, S = 2, 8
    num_layers, num_heads = 2, 4
    d_model, d_ff = 32, 64
    num_switch, num_switch_layer = 8, 1
    vocab_size = 64

    key = jax.random.PRNGKey(0)
    k_params, k_tok = jax.random.split(key)
    params = init_params(k_params, num_layers, d_model, d_ff, num_switch, vocab_size)
    x_tokens = jax.random.randint(k_tok, (B, S), 0, vocab_size, dtype=jnp.int32)
    y_unused = jnp.zeros((B, S), jnp.int32)   # matches forward(x, y); y is ignored

    fwd = jax.jit(functools.partial(switch_transformer_forward, num_heads=num_heads))
    out = jax.block_until_ready(fwd(params, x_tokens, y_unused))

    assert out.shape == (B, S, vocab_size), out.shape
    # log_softmax rows must exponentiate to ~1
    row_sums = jnp.exp(out).sum(axis=-1)
    assert bool(jnp.all(jnp.isfinite(out)))
    assert bool(jnp.allclose(row_sums, 1.0, atol=1e-3)), row_sums
    print("KERNEL_OK")
</pallas_src>

<mosaic_0001>
module attributes {stable_mosaic.version = 11 : i64} {
  func.func @_mlp_block_kernel(%arg0: i32, %arg1: memref<16x32xf32, #tpu.memory_space<vmem>>, %arg2: memref<32x64xbf16, #tpu.memory_space<vmem>>, %arg3: memref<1x64xf32, #tpu.memory_space<vmem>>, %arg4: memref<64x32xbf16, #tpu.memory_space<vmem>>, %arg5: memref<1x32xf32, #tpu.memory_space<vmem>>, %arg6: memref<1x32xf32, #tpu.memory_space<vmem>>, %arg7: memref<1x32xf32, #tpu.memory_space<vmem>>, %arg8: memref<16x32xf32, #tpu.memory_space<vmem>>) attributes {dimension_semantics = [#tpu.dimension_semantics<parallel>], iteration_bounds = array<i64: 1>, scalar_prefetch = 0 : i64, scratch_operands = 0 : i64, tpu.core_type = #tpu.core_type<tc>, window_params = [{transform_indices = @transform_0, window_bounds = array<i64: 16, 32>}, {pipeline_mode = #tpu.pipeline_mode<synchronous>, transform_indices = @transform_1, window_bounds = array<i64: 32, 64>}, {pipeline_mode = #tpu.pipeline_mode<synchronous>, transform_indices = @transform_2, window_bounds = array<i64: 1, 64>}, {pipeline_mode = #tpu.pipeline_mode<synchronous>, transform_indices = @transform_3, window_bounds = array<i64: 64, 32>}, {pipeline_mode = #tpu.pipeline_mode<synchronous>, transform_indices = @transform_4, window_bounds = array<i64: 1, 32>}, {pipeline_mode = #tpu.pipeline_mode<synchronous>, transform_indices = @transform_5, window_bounds = array<i64: 1, 32>}, {pipeline_mode = #tpu.pipeline_mode<synchronous>, transform_indices = @transform_6, window_bounds = array<i64: 1, 32>}, {transform_indices = @transform_7, window_bounds = array<i64: 16, 32>}]} {
    %c0 = arith.constant 0 : index
    %c0_0 = arith.constant 0 : index
    %0 = vector.load %arg1[%c0, %c0_0] : memref<16x32xf32, #tpu.memory_space<vmem>>, vector<16x32xf32>
    %1 = arith.truncf %0 : vector<16x32xf32> to vector<16x32xbf16>
    %c0_1 = arith.constant 0 : index
    %c0_2 = arith.constant 0 : index
    %2 = vector.load %arg2[%c0_1, %c0_2] : memref<32x64xbf16, #tpu.memory_space<vmem>>, vector<32x64xbf16>
    %cst = arith.constant dense<0.000000e+00> : vector<16x64xf32>
    %3 = tpu.matmul %1, %2, %cst {dimension_numbers = #tpu.dot_dimension_numbers<[1], [0], [0], [1], [0, 0, 1, 1], [], []>} : vector<16x32xbf16>, vector<32x64xbf16>, vector<16x64xf32> -> vector<16x64xf32>
    %c0_3 = arith.constant 0 : index
    %c0_4 = arith.constant 0 : index
    %4 = vector.load %arg3[%c0_3, %c0_4] : memref<1x64xf32, #tpu.memory_space<vmem>>, vector<1x64xf32>
    %5 = vector.broadcast %4 : vector<1x64xf32> to vector<16x64xf32>
    %6 = arith.addf %3, %5 : vector<16x64xf32>
    %cst_5 = arith.constant 0.000000e+00 : f32
    %7 = vector.broadcast %cst_5 : f32 to vector<16x64xf32>
    %8 = arith.maximumf %6, %7 : vector<16x64xf32>
    %9 = arith.truncf %8 : vector<16x64xf32> to vector<16x64xbf16>
    %c0_6 = arith.constant 0 : index
    %c0_7 = arith.constant 0 : index
    %10 = vector.load %arg4[%c0_6, %c0_7] : memref<64x32xbf16, #tpu.memory_space<vmem>>, vector<64x32xbf16>
    %cst_8 = arith.constant dense<0.000000e+00> : vector<16x32xf32>
    %11 = tpu.matmul %9, %10, %cst_8 {dimension_numbers = #tpu.dot_dimension_numbers<[1], [0], [0], [1], [0, 0, 1, 1], [], []>} : vector<16x64xbf16>, vector<64x32xbf16>, vector<16x32xf32> -> vector<16x32xf32>
    %c0_9 = arith.constant 0 : index
    %c0_10 = arith.constant 0 : index
    %12 = vector.load %arg5[%c0_9, %c0_10] : memref<1x32xf32, #tpu.memory_space<vmem>>, vector<1x32xf32>
    %13 = vector.broadcast %12 : vector<1x32xf32> to vector<16x32xf32>
    %14 = arith.addf %11, %13 : vector<16x32xf32>
    %15 = arith.addf %14, %0 : vector<16x32xf32>
    %cst_11 = arith.constant dense<0.000000e+00> : vector<16xf32>
    %16 = vector.multi_reduction <add>, %15, %cst_11 [1] : vector<16x32xf32> to vector<16xf32>
    %17 = vector.shape_cast %16 : vector<16xf32> to vector<16x1xf32>
    %cst_12 = arith.constant 3.200000e+01 : f32
    %18 = vector.broadcast %cst_12 : f32 to vector<16x1xf32>
    %19 = arith.divf %17, %18 : vector<16x1xf32>
    %20 = vector.broadcast %19 : vector<16x1xf32> to vector<16x32xf32>
    %21 = arith.subf %15, %20 : vector<16x32xf32>
    %22 = arith.mulf %21, %21 : vector<16x32xf32>
    %cst_13 = arith.constant dense<0.000000e+00> : vector<16xf32>
    %23 = vector.multi_reduction <add>, %22, %cst_13 [1] : vector<16x32xf32> to vector<16xf32>
    %24 = vector.shape_cast %23 : vector<16xf32> to vector<16x1xf32>
    %cst_14 = arith.constant 3.200000e+01 : f32
    %25 = vector.broadcast %cst_14 : f32 to vector<16x1xf32>
    %26 = arith.divf %24, %25 : vector<16x1xf32>
    %cst_15 = arith.constant 9.99999974E-6 : f32
    %27 = vector.broadcast %cst_15 : f32 to vector<16x1xf32>
    %28 = arith.addf %26, %27 : vector<16x1xf32>
    %29 = math.rsqrt %28 : vector<16x1xf32>
    %30 = vector.broadcast %29 : vector<16x1xf32> to vector<16x32xf32>
    %31 = arith.mulf %21, %30 : vector<16x32xf32>
    %c0_16 = arith.constant 0 : index
    %c0_17 = arith.constant 0 : index
    %32 = vector.load %arg6[%c0_16, %c0_17] : memref<1x32xf32, #tpu.memory_space<vmem>>, vector<1x32xf32>
    %33 = vector.broadcast %32 : vector<1x32xf32> to vector<16x32xf32>
    %34 = arith.mulf %31, %33 : vector<16x32xf32>
    %c0_18 = arith.constant 0 : index
    %c0_19 = arith.constant 0 : index
    %35 = vector.load %arg7[%c0_18, %c0_19] : memref<1x32xf32, #tpu.memory_space<vmem>>, vector<1x32xf32>
    %36 = vector.broadcast %35 : vector<1x32xf32> to vector<16x32xf32>
    %37 = arith.addf %34, %36 : vector<16x32xf32>
    %c0_20 = arith.constant 0 : index
    %c0_21 = arith.constant 0 : index
    %38 = vector.load %arg8[%c0_20, %c0_21] : memref<16x32xf32, #tpu.memory_space<vmem>>, vector<16x32xf32>
    tpu.vector_store %arg8[%c0_20, %c0_21], %37 {strides = array<i32>} : memref<16x32xf32, #tpu.memory_space<vmem>>, vector<16x32xf32>,
    return
  }
  func.func @transform_0(%arg0: i32) -> (i32, i32) {
    %c0_i32 = arith.constant 0 : i32
    %c0_i32_0 = arith.constant 0 : i32
    return %arg0, %c0_i32 : i32, i32
  }
  func.func @transform_1(%arg0: i32) -> (i32, i32) {
    %c0_i32 = arith.constant 0 : i32
    %c0_i32_0 = arith.constant 0 : i32
    %c0_i32_1 = arith.constant 0 : i32
    return %c0_i32, %c0_i32_0 : i32, i32
  }
  func.func @transform_2(%arg0: i32) -> (i32, i32) {
    %c0_i32 = arith.constant 0 : i32
    %c0_i32_0 = arith.constant 0 : i32
    %c0_i32_1 = arith.constant 0 : i32
    return %c0_i32, %c0_i32_0 : i32, i32
  }
  func.func @transform_3(%arg0: i32) -> (i32, i32) {
    %c0_i32 = arith.constant 0 : i32
    %c0_i32_0 = arith.constant 0 : i32
    %c0_i32_1 = arith.constant 0 : i32
    return %c0_i32, %c0_i32_0 : i32, i32
  }
  func.func @transform_4(%arg0: i32) -> (i32, i32) {
    %c0_i32 = arith.constant 0 : i32
    %c0_i32_0 = arith.constant 0 : i32
    %c0_i32_1 = arith.constant 0 : i32
    return %c0_i32, %c0_i32_0 : i32, i32
  }
  func.func @transform_5(%arg0: i32) -> (i32, i32) {
    %c0_i32 = arith.constant 0 : i32
    %c0_i32_0 = arith.constant 0 : i32
    %c0_i32_1 = arith.constant 0 : i32
    return %c0_i32, %c0_i32_0 : i32, i32
  }
  func.func @transform_6(%arg0: i32) -> (i32, i32) {
    %c0_i32 = arith.constant 0 : i32
    %c0_i32_0 = arith.constant 0 : i32
    %c0_i32_1 = arith.constant 0 : i32
    return %c0_i32, %c0_i32_0 : i32, i32
  }
  func.func @transform_7(%arg0: i32) -> (i32, i32) {
    %c0_i32 = arith.constant 0 : i32
    %c0_i32_0 = arith.constant 0 : i32
    return %arg0, %c0_i32 : i32, i32
  }
}

module attributes {stable_mosaic.version = 11 : i64} {
  func.func @_mlp_block_kernel(%arg0: i32, %arg1: memref<16x32xf32, #tpu.memory_space<vmem>>, %arg2: memref<32x8xbf16, #tpu.memory_space<vmem>>, %arg3: memref<1x8xf32, #tpu.memory_space<vmem>>, %arg4: memref<8x32xbf16, #tpu.memory_space<vmem>>, %arg5: memref<1x32xf32, #tpu.memory_space<vmem>>, %arg6: memref<1x32xf32, #tpu.memory_space<vmem>>, %arg7: memref<1x32xf32, #tpu.memory_space<vmem>>, %arg8: memref<16x32xf32, #tpu.memory_space<vmem>>) attributes {dimension_semantics = [#tpu.dimension_semantics<parallel>], iteration_bounds = array<i64: 1>, scalar_prefetch = 0 : i64, scratch_operands = 0 : i64, tpu.core_type = #tpu.core_type<tc>, window_params = [{transform_indices = @transform_0, window_bounds = array<i64: 16, 32>}, {pipeline_mode = #tpu.pipeline_mode<synchronous>, transform_indices = @transform_1, window_bounds = array<i64: 32, 8>}, {pipeline_mode = #tpu.pipeline_mode<synchronous>, transform_indices = @transform_2, window_bounds = array<i64: 1, 8>}, {pipeline_mode = #tpu.pipeline_mode<synchronous>, transform_indices = @transform_3, window_bounds = array<i64: 8, 32>}, {pipeline_mode = #tpu.pipeline_mode<synchronous>, transform_indices = @transform_4, window_bounds = array<i64: 1, 32>}, {pipeline_mode = #tpu.pipeline_mode<synchronous>, transform_indices = @transform_5, window_bounds = array<i64: 1, 32>}, {pipeline_mode = #tpu.pipeline_mode<synchronous>, transform_indices = @transform_6, window_bounds = array<i64: 1, 32>}, {transform_indices = @transform_7, window_bounds = array<i64: 16, 32>}]} {
    %c0 = arith.constant 0 : index
    %c0_0 = arith.constant 0 : index
    %0 = vector.load %arg1[%c0, %c0_0] : memref<16x32xf32, #tpu.memory_space<vmem>>, vector<16x32xf32>
    %1 = arith.truncf %0 : vector<16x32xf32> to vector<16x32xbf16>
    %c0_1 = arith.constant 0 : index
    %c0_2 = arith.constant 0 : index
    %2 = vector.load %arg2[%c0_1, %c0_2] : memref<32x8xbf16, #tpu.memory_space<vmem>>, vector<32x8xbf16>
    %cst = arith.constant dense<0.000000e+00> : vector<16x8xf32>
    %3 = tpu.matmul %1, %2, %cst {dimension_numbers = #tpu.dot_dimension_numbers<[1], [0], [0], [1], [0, 0, 1, 1], [], []>} : vector<16x32xbf16>, vector<32x8xbf16>, vector<16x8xf32> -> vector<16x8xf32>
    %c0_3 = arith.constant 0 : index
    %c0_4 = arith.constant 0 : index
    %4 = vector.load %arg3[%c0_3, %c0_4] : memref<1x8xf32, #tpu.memory_space<vmem>>, vector<1x8xf32>
    %5 = vector.broadcast %4 : vector<1x8xf32> to vector<16x8xf32>
    %6 = arith.addf %3, %5 : vector<16x8xf32>
    %7 = arith.truncf %6 : vector<16x8xf32> to vector<16x8xbf16>
    %c0_5 = arith.constant 0 : index
    %c0_6 = arith.constant 0 : index
    %8 = vector.load %arg4[%c0_5, %c0_6] : memref<8x32xbf16, #tpu.memory_space<vmem>>, vector<8x32xbf16>
    %cst_7 = arith.constant dense<0.000000e+00> : vector<16x32xf32>
    %9 = tpu.matmul %7, %8, %cst_7 {dimension_numbers = #tpu.dot_dimension_numbers<[1], [0], [0], [1], [0, 0, 1, 1], [], []>} : vector<16x8xbf16>, vector<8x32xbf16>, vector<16x32xf32> -> vector<16x32xf32>
    %c0_8 = arith.constant 0 : index
    %c0_9 = arith.constant 0 : index
    %10 = vector.load %arg5[%c0_8, %c0_9] : memref<1x32xf32, #tpu.memory_space<vmem>>, vector<1x32xf32>
    %11 = vector.broadcast %10 : vector<1x32xf32> to vector<16x32xf32>
    %12 = arith.addf %9, %11 : vector<16x32xf32>
    %13 = arith.addf %12, %0 : vector<16x32xf32>
    %cst_10 = arith.constant dense<0.000000e+00> : vector<16xf32>
    %14 = vector.multi_reduction <add>, %13, %cst_10 [1] : vector<16x32xf32> to vector<16xf32>
    %15 = vector.shape_cast %14 : vector<16xf32> to vector<16x1xf32>
    %cst_11 = arith.constant 3.200000e+01 : f32
    %16 = vector.broadcast %cst_11 : f32 to vector<16x1xf32>
    %17 = arith.divf %15, %16 : vector<16x1xf32>
    %18 = vector.broadcast %17 : vector<16x1xf32> to vector<16x32xf32>
    %19 = arith.subf %13, %18 : vector<16x32xf32>
    %20 = arith.mulf %19, %19 : vector<16x32xf32>
    %cst_12 = arith.constant dense<0.000000e+00> : vector<16xf32>
    %21 = vector.multi_reduction <add>, %20, %cst_12 [1] : vector<16x32xf32> to vector<16xf32>
    %22 = vector.shape_cast %21 : vector<16xf32> to vector<16x1xf32>
    %cst_13 = arith.constant 3.200000e+01 : f32
    %23 = vector.broadcast %cst_13 : f32 to vector<16x1xf32>
    %24 = arith.divf %22, %23 : vector<16x1xf32>
    %cst_14 = arith.constant 9.99999974E-6 : f32
    %25 = vector.broadcast %cst_14 : f32 to vector<16x1xf32>
    %26 = arith.addf %24, %25 : vector<16x1xf32>
    %27 = math.rsqrt %26 : vector<16x1xf32>
    %28 = vector.broadcast %27 : vector<16x1xf32> to vector<16x32xf32>
    %29 = arith.mulf %19, %28 : vector<16x32xf32>
    %c0_15 = arith.constant 0 : index
    %c0_16 = arith.constant 0 : index
    %30 = vector.load %arg6[%c0_15, %c0_16] : memref<1x32xf32, #tpu.memory_space<vmem>>, vector<1x32xf32>
    %31 = vector.broadcast %30 : vector<1x32xf32> to vector<16x32xf32>
    %32 = arith.mulf %29, %31 : vector<16x32xf32>
    %c0_17 = arith.constant 0 : index
    %c0_18 = arith.constant 0 : index
    %33 = vector.load %arg7[%c0_17, %c0_18] : memref<1x32xf32, #tpu.memory_space<vmem>>, vector<1x32xf32>
    %34 = vector.broadcast %33 : vector<1x32xf32> to vector<16x32xf32>
    %35 = arith.addf %32, %34 : vector<16x32xf32>
    %c0_19 = arith.constant 0 : index
    %c0_20 = arith.constant 0 : index
    %36 = vector.load %arg8[%c0_19, %c0_20] : memref<16x32xf32, #tpu.memory_space<vmem>>, vector<16x32xf32>
    tpu.vector_store %arg8[%c0_19, %c0_20], %35 {strides = array<i32>} : memref<16x32xf32, #tpu.memory_space<vmem>>, vector<16x32xf32>,
    return
  }
  func.func @transform_0(%arg0: i32) -> (i32, i32) {
    %c0_i32 = arith.constant 0 : i32
    %c0_i32_0 = arith.constant 0 : i32
    return %arg0, %c0_i32 : i32, i32
  }
  func.func @transform_1(%arg0: i32) -> (i32, i32) {
    %c0_i32 = arith.constant 0 : i32
    %c0_i32_0 = arith.constant 0 : i32
    %c0_i32_1 = arith.constant 0 : i32
    return %c0_i32, %c0_i32_0 : i32, i32
  }
  func.func @transform_2(%arg0: i32) -> (i32, i32) {
    %c0_i32 = arith.constant 0 : i32
    %c0_i32_0 = arith.constant 0 : i32
    %c0_i32_1 = arith.constant 0 : i32
    return %c0_i32, %c0_i32_0 : i32, i32
  }
  func.func @transform_3(%arg0: i32) -> (i32, i32) {
    %c0_i32 = arith.constant 0 : i32
    %c0_i32_0 = arith.constant 0 : i32
    %c0_i32_1 = arith.constant 0 : i32
    return %c0_i32, %c0_i32_0 : i32, i32
  }
  func.func @transform_4(%arg0: i32) -> (i32, i32) {
    %c0_i32 = arith.constant 0 : i32
    %c0_i32_0 = arith.constant 0 : i32
    %c0_i32_1 = arith.constant 0 : i32
    return %c0_i32, %c0_i32_0 : i32, i32
  }
  func.func @transform_5(%arg0: i32) -> (i32, i32) {
    %c0_i32 = arith.constant 0 : i32
    %c0_i32_0 = arith.constant 0 : i32
    %c0_i32_1 = arith.constant 0 : i32
    return %c0_i32, %c0_i32_0 : i32, i32
  }
  func.func @transform_6(%arg0: i32) -> (i32, i32) {
    %c0_i32 = arith.constant 0 : i32
    %c0_i32_0 = arith.constant 0 : i32
    %c0_i32_1 = arith.constant 0 : i32
    return %c0_i32, %c0_i32_0 : i32, i32
  }
  func.func @transform_7(%arg0: i32) -> (i32, i32) {
    %c0_i32 = arith.constant 0 : i32
    %c0_i32_0 = arith.constant 0 : i32
    return %arg0, %c0_i32 : i32, i32
  }
}

module attributes {stable_mosaic.version = 11 : i64} {
  func.func @_attn_block_kernel(%arg0: i32, %arg1: memref<8x2x32xf32, #tpu.memory_space<vmem>>, %arg2: memref<32x96xbf16, #tpu.memory_space<vmem>>, %arg3: memref<1x96xf32, #tpu.memory_space<vmem>>, %arg4: memref<32x32xbf16, #tpu.memory_space<vmem>>, %arg5: memref<1x32xf32, #tpu.memory_space<vmem>>, %arg6: memref<1x32xf32, #tpu.memory_space<vmem>>, %arg7: memref<1x32xf32, #tpu.memory_space<vmem>>, %arg8: memref<8x2x32xf32, #tpu.memory_space<vmem>>, %arg9: memref<8x2x96xf32, #tpu.memory_space<vmem>>, %arg10: memref<8x2x32xf32, #tpu.memory_space<vmem>>) attributes {dimension_semantics = [#tpu.dimension_semantics<parallel>], iteration_bounds = array<i64: 1>, scalar_prefetch = 0 : i64, scratch_operands = 2 : i64, tpu.core_type = #tpu.core_type<tc>, window_params = [{transform_indices = @transform_0, window_bounds = array<i64: 8, 2, 32>}, {pipeline_mode = #tpu.pipeline_mode<synchronous>, transform_indices = @transform_1, window_bounds = array<i64: 32, 96>}, {pipeline_mode = #tpu.pipeline_mode<synchronous>, transform_indices = @transform_2, window_bounds = array<i64: 1, 96>}, {pipeline_mode = #tpu.pipeline_mode<synchronous>, transform_indices = @transform_3, window_bounds = array<i64: 32, 32>}, {pipeline_mode = #tpu.pipeline_mode<synchronous>, transform_indices = @transform_4, window_bounds = array<i64: 1, 32>}, {pipeline_mode = #tpu.pipeline_mode<synchronous>, transform_indices = @transform_5, window_bounds = array<i64: 1, 32>}, {pipeline_mode = #tpu.pipeline_mode<synchronous>, transform_indices = @transform_6, window_bounds = array<i64: 1, 32>}, {transform_indices = @transform_7, window_bounds = array<i64: 8, 2, 32>}]} {
    %c0 = arith.constant 0 : index
    %c0_0 = arith.constant 0 : index
    %c0_1 = arith.constant 0 : index
    %0 = vector.load %arg1[%c0, %c0_0, %c0_1] : memref<8x2x32xf32, #tpu.memory_space<vmem>>, vector<8x1x32xf32>
    %1 = vector.shape_cast %0 : vector<8x1x32xf32> to vector<8x32xf32>
    %2 = arith.truncf %1 : vector<8x32xf32> to vector<8x32xbf16>
    %c0_2 = arith.constant 0 : index
    %c0_3 = arith.constant 0 : index
    %3 = vector.load %arg2[%c0_2, %c0_3] : memref<32x96xbf16, #tpu.memory_space<vmem>>, vector<32x96xbf16>
    %cst = arith.constant dense<0.000000e+00> : vector<8x96xf32>
    %4 = tpu.matmul %2, %3, %cst {dimension_numbers = #tpu.dot_dimension_numbers<[1], [0], [0], [1], [0, 0, 1, 1], [], []>} : vector<8x32xbf16>, vector<32x96xbf16>, vector<8x96xf32> -> vector<8x96xf32>
    %c0_4 = arith.constant 0 : index
    %c0_5 = arith.constant 0 : index
    %5 = vector.load %arg3[%c0_4, %c0_5] : memref<1x96xf32, #tpu.memory_space<vmem>>, vector<1x96xf32>
    %6 = vector.broadcast %5 : vector<1x96xf32> to vector<8x96xf32>
    %7 = arith.addf %4, %6 : vector<8x96xf32>
    %c0_6 = arith.constant 0 : index
    %c0_7 = arith.constant 0 : index
    %c0_8 = arith.constant 0 : index
    %8 = vector.load %arg9[%c0_6, %c0_7, %c0_8] : memref<8x2x96xf32, #tpu.memory_space<vmem>>, vector<8x1x96xf32>
    %9 = vector.shape_cast %8 : vector<8x1x96xf32> to vector<8x96xf32>
    %10 = vector.shape_cast %7 : vector<8x96xf32> to vector<8x1x96xf32>
    tpu.vector_store %arg9[%c0_6, %c0_7, %c0_8], %10 {strides = array<i32>} : memref<8x2x96xf32, #tpu.memory_space<vmem>>, vector<8x1x96xf32>,
    %c0_9 = arith.constant 0 : index
    %c1 = arith.constant 1 : index
    %c0_10 = arith.constant 0 : index
    %11 = vector.load %arg1[%c0_9, %c1, %c0_10] : memref<8x2x32xf32, #tpu.memory_space<vmem>>, vector<8x1x32xf32>
    %12 = vector.shape_cast %11 : vector<8x1x32xf32> to vector<8x32xf32>
    %13 = arith.truncf %12 : vector<8x32xf32> to vector<8x32xbf16>
    %c0_11 = arith.constant 0 : index
    %c0_12 = arith.constant 0 : index
    %14 = vector.load %arg2[%c0_11, %c0_12] : memref<32x96xbf16, #tpu.memory_space<vmem>>, vector<32x96xbf16>
    %cst_13 = arith.constant dense<0.000000e+00> : vector<8x96xf32>
    %15 = tpu.matmul %13, %14, %cst_13 {dimension_numbers = #tpu.dot_dimension_numbers<[1], [0], [0], [1], [0, 0, 1, 1], [], []>} : vector<8x32xbf16>, vector<32x96xbf16>, vector<8x96xf32> -> vector<8x96xf32>
    %c0_14 = arith.constant 0 : index
    %c0_15 = arith.constant 0 : index
    %16 = vector.load %arg3[%c0_14, %c0_15] : memref<1x96xf32, #tpu.memory_space<vmem>>, vector<1x96xf32>
    %17 = vector.broadcast %16 : vector<1x96xf32> to vector<8x96xf32>
    %18 = arith.addf %15, %17 : vector<8x96xf32>
    %c0_16 = arith.constant 0 : index
    %c1_17 = arith.constant 1 : index
    %c0_18 = arith.constant 0 : index
    %19 = vector.load %arg9[%c0_16, %c1_17, %c0_18] : memref<8x2x96xf32, #tpu.memory_space<vmem>>, vector<8x1x96xf32>
    %20 = vector.shape_cast %19 : vector<8x1x96xf32> to vector<8x96xf32>
    %21 = vector.shape_cast %18 : vector<8x96xf32> to vector<8x1x96xf32>
    tpu.vector_store %arg9[%c0_16, %c1_17, %c0_18], %21 {strides = array<i32>} : memref<8x2x96xf32, #tpu.memory_space<vmem>>, vector<8x1x96xf32>,
    %c0_19 = arith.constant 0 : index
    %c0_20 = arith.constant 0 : index
    %c0_21 = arith.constant 0 : index
    %22 = vector.load %arg9[%c0_19, %c0_20, %c0_21] : memref<8x2x96xf32, #tpu.memory_space<vmem>>, vector<8x2x8xf32>
    %cst_22 = arith.constant 0.353553385 : f32
    %23 = vector.broadcast %cst_22 : f32 to vector<8x2x8xf32>
    %24 = arith.mulf %22, %23 : vector<8x2x8xf32>
    %c0_23 = arith.constant 0 : index
    %c0_24 = arith.constant 0 : index
    %c32 = arith.constant 32 : index
    %25 = vector.load %arg9[%c0_23, %c0_24, %c32] : memref<8x2x96xf32, #tpu.memory_space<vmem>>, vector<8x2x8xf32>
    %c0_25 = arith.constant 0 : index
    %c0_26 = arith.constant 0 : index
    %c64 = arith.constant 64 : index
    %26 = vector.load %arg9[%c0_25, %c0_26, %c64] : memref<8x2x96xf32, #tpu.memory_space<vmem>>, vector<8x2x8xf32>
    "tpu.trace_start"() <{level = 10 : i32, message = "sae,sbe->sab"}> : () -> ()
    %cst_27 = arith.constant dense<0.000000e+00> : vector<8x2x2xf32>
    %27 = tpu.matmul %24, %25, %cst_27 {dimension_numbers = #tpu.dot_dimension_numbers<[2], [2], [1], [1], [0, 0, 0, 1, 1, 1], [0], [0]>} : vector<8x2x8xf32>, vector<8x2x8xf32>, vector<8x2x2xf32> -> vector<8x2x2xf32>
    "tpu.trace_stop"() : () -> ()
    %cst_28 = arith.constant dense<0xFF800000> : vector<8x2xf32>
    %28 = vector.multi_reduction <maximumf>, %27, %cst_28 [2] : vector<8x2x2xf32> to vector<8x2xf32>
    %29 = vector.shape_cast %28 : vector<8x2xf32> to vector<8x2x1xf32>
    %30 = vector.broadcast %29 : vector<8x2x1xf32> to vector<8x2x2xf32>
    %31 = arith.subf %27, %30 : vector<8x2x2xf32>
    %32 = math.exp %31 : vector<8x2x2xf32>
    %cst_29 = arith.constant dense<0.000000e+00> : vector<8x2xf32>
    %33 = vector.multi_reduction <add>, %32, %cst_29 [2] : vector<8x2x2xf32> to vector<8x2xf32>
    %34 = vector.shape_cast %33 : vector<8x2xf32> to vector<8x2x1xf32>
    %35 = tpu.reciprocal %34 {approx = true} : vector<8x2x1xf32> -> vector<8x2x1xf32>
    %36 = vector.broadcast %35 : vector<8x2x1xf32> to vector<8x2x2xf32>
    %37 = arith.mulf %32, %36 : vector<8x2x2xf32>
    "tpu.trace_start"() <{level = 10 : i32, message = "sab,sbe->sae"}> : () -> ()
    %cst_30 = arith.constant dense<0.000000e+00> : vector<8x2x8xf32>
    %38 = tpu.matmul %37, %26, %cst_30 {dimension_numbers = #tpu.dot_dimension_numbers<[2], [1], [1], [2], [0, 0, 0, 1, 1, 2], [0], [0]>} : vector<8x2x2xf32>, vector<8x2x8xf32>, vector<8x2x8xf32> -> vector<8x2x8xf32>
    "tpu.trace_stop"() : () -> ()
    %c0_31 = arith.constant 0 : index
    %c0_32 = arith.constant 0 : index
    %c0_33 = arith.constant 0 : index
    %39 = vector.load %arg10[%c0_31, %c0_32, %c0_33] : memref<8x2x32xf32, #tpu.memory_space<vmem>>, vector<8x2x8xf32>
    tpu.vector_store %arg10[%c0_31, %c0_32, %c0_33], %38 {strides = array<i32>} : memref<8x2x32xf32, #tpu.memory_space<vmem>>, vector<8x2x8xf32>,
    %c0_34 = arith.constant 0 : index
    %c0_35 = arith.constant 0 : index
    %c8 = arith.constant 8 : index
    %40 = vector.load %arg9[%c0_34, %c0_35, %c8] : memref<8x2x96xf32, #tpu.memory_space<vmem>>, vector<8x2x8xf32>
    %cst_36 = arith.constant 0.353553385 : f32
    %41 = vector.broadcast %cst_36 : f32 to vector<8x2x8xf32>
    %42 = arith.mulf %40, %41 : vector<8x2x8xf32>
    %c0_37 = arith.constant 0 : index
    %c0_38 = arith.constant 0 : index
    %c40 = arith.constant 40 : index
    %43 = vector.load %arg9[%c0_37, %c0_38, %c40] : memref<8x2x96xf32, #tpu.memory_space<vmem>>, vector<8x2x8xf32>
    %c0_39 = arith.constant 0 : index
    %c0_40 = arith.constant 0 : index
    %c72 = arith.constant 72 : index
    %44 = vector.load %arg9[%c0_39, %c0_40, %c72] : memref<8x2x96xf32, #tpu.memory_space<vmem>>, vector<8x2x8xf32>
    "tpu.trace_start"() <{level = 10 : i32, message = "sae,sbe->sab"}> : () -> ()
    %cst_41 = arith.constant dense<0.000000e+00> : vector<8x2x2xf32>
    %45 = tpu.matmul %42, %43, %cst_41 {dimension_numbers = #tpu.dot_dimension_numbers<[2], [2], [1], [1], [0, 0, 0, 1, 1, 1], [0], [0]>} : vector<8x2x8xf32>, vector<8x2x8xf32>, vector<8x2x2xf32> -> vector<8x2x2xf32>
    "tpu.trace_stop"() : () -> ()
    %cst_42 = arith.constant dense<0xFF800000> : vector<8x2xf32>
    %46 = vector.multi_reduction <maximumf>, %45, %cst_42 [2] : vector<8x2x2xf32> to vector<8x2xf32>
    %47 = vector.shape_cast %46 : vector<8x2xf32> to vector<8x2x1xf32>
    %48 = vector.broadcast %47 : vector<8x2x1xf32> to vector<8x2x2xf32>
    %49 = arith.subf %45, %48 : vector<8x2x2xf32>
    %50 = math.exp %49 : vector<8x2x2xf32>
    %cst_43 = arith.constant dense<0.000000e+00> : vector<8x2xf32>
    %51 = vector.multi_reduction <add>, %50, %cst_43 [2] : vector<8x2x2xf32> to vector<8x2xf32>
    %52 = vector.shape_cast %51 : vector<8x2xf32> to vector<8x2x1xf32>
    %53 = tpu.reciprocal %52 {approx = true} : vector<8x2x1xf32> -> vector<8x2x1xf32>
    %54 = vector.broadcast %53 : vector<8x2x1xf32> to vector<8x2x2xf32>
    %55 = arith.mulf %50, %54 : vector<8x2x2xf32>
    "tpu.trace_start"() <{level = 10 : i32, message = "sab,sbe->sae"}> : () -> ()
    %cst_44 = arith.constant dense<0.000000e+00> : vector<8x2x8xf32>
    %56 = tpu.matmul %55, %44, %cst_44 {dimension_numbers = #tpu.dot_dimension_numbers<[2], [1], [1], [2], [0, 0, 0, 1, 1, 2], [0], [0]>} : vector<8x2x2xf32>, vector<8x2x8xf32>, vector<8x2x8xf32> -> vector<8x2x8xf32>
    "tpu.trace_stop"() : () -> ()
    %c0_45 = arith.constant 0 : index
    %c0_46 = arith.constant 0 : index
    %c8_47 = arith.constant 8 : index
    %57 = vector.load %arg10[%c0_45, %c0_46, %c8_47] : memref<8x2x32xf32, #tpu.memory_space<vmem>>, vector<8x2x8xf32>
    tpu.vector_store %arg10[%c0_45, %c0_46, %c8_47], %56 {strides = array<i32>} : memref<8x2x32xf32, #tpu.memory_space<vmem>>, vector<8x2x8xf32>,
    %c0_48 = arith.constant 0 : index
    %c0_49 = arith.constant 0 : index
    %c16 = arith.constant 16 : index
    %58 = vector.load %arg9[%c0_48, %c0_49, %c16] : memref<8x2x96xf32, #tpu.memory_space<vmem>>, vector<8x2x8xf32>
    %cst_50 = arith.constant 0.353553385 : f32
    %59 = vector.broadcast %cst_50 : f32 to vector<8x2x8xf32>
    %60 = arith.mulf %58, %59 : vector<8x2x8xf32>
    %c0_51 = arith.constant 0 : index
    %c0_52 = arith.constant 0 : index
    %c48 = arith.constant 48 : index
    %61 = vector.load %arg9[%c0_51, %c0_52, %c48] : memref<8x2x96xf32, #tpu.memory_space<vmem>>, vector<8x2x8xf32>
    %c0_53 = arith.constant 0 : index
    %c0_54 = arith.constant 0 : index
    %c80 = arith.constant 80 : index
    %62 = vector.load %arg9[%c0_53, %c0_54, %c80] : memref<8x2x96xf32, #tpu.memory_space<vmem>>, vector<8x2x8xf32>
    "tpu.trace_start"() <{level = 10 : i32, message = "sae,sbe->sab"}> : () -> ()
    %cst_55 = arith.constant dense<0.000000e+00> : vector<8x2x2xf32>
    %63 = tpu.matmul %60, %61, %cst_55 {dimension_numbers = #tpu.dot_dimension_numbers<[2], [2], [1], [1], [0, 0, 0, 1, 1, 1], [0], [0]>} : vector<8x2x8xf32>, vector<8x2x8xf32>, vector<8x2x2xf32> -> vector<8x2x2xf32>
    "tpu.trace_stop"() : () -> ()
    %cst_56 = arith.constant dense<0xFF800000> : vector<8x2xf32>
    %64 = vector.multi_reduction <maximumf>, %63, %cst_56 [2] : vector<8x2x2xf32> to vector<8x2xf32>
    %65 = vector.shape_cast %64 : vector<8x2xf32> to vector<8x2x1xf32>
    %66 = vector.broadcast %65 : vector<8x2x1xf32> to vector<8x2x2xf32>
    %67 = arith.subf %63, %66 : vector<8x2x2xf32>
    %68 = math.exp %67 : vector<8x2x2xf32>
    %cst_57 = arith.constant dense<0.000000e+00> : vector<8x2xf32>
    %69 = vector.multi_reduction <add>, %68, %cst_57 [2] : vector<8x2x2xf32> to vector<8x2xf32>
    %70 = vector.shape_cast %69 : vector<8x2xf32> to vector<8x2x1xf32>
    %71 = tpu.reciprocal %70 {approx = true} : vector<8x2x1xf32> -> vector<8x2x1xf32>
    %72 = vector.broadcast %71 : vector<8x2x1xf32> to vector<8x2x2xf32>
    %73 = arith.mulf %68, %72 : vector<8x2x2xf32>
    "tpu.trace_start"() <{level = 10 : i32, message = "sab,sbe->sae"}> : () -> ()
    %cst_58 = arith.constant dense<0.000000e+00> : vector<8x2x8xf32>
    %74 = tpu.matmul %73, %62, %cst_58 {dimension_numbers = #tpu.dot_dimension_numbers<[2], [1], [1], [2], [0, 0, 0, 1, 1, 2], [0], [0]>} : vector<8x2x2xf32>, vector<8x2x8xf32>, vector<8x2x8xf32> -> vector<8x2x8xf32>
    "tpu.trace_stop"() : () -> ()
    %c0_59 = arith.constant 0 : index
    %c0_60 = arith.constant 0 : index
    %c16_61 = arith.constant 16 : index
    %75 = vector.load %arg10[%c0_59, %c0_60, %c16_61] : memref<8x2x32xf32, #tpu.memory_space<vmem>>, vector<8x2x8xf32>
    tpu.vector_store %arg10[%c0_59, %c0_60, %c16_61], %74 {strides = array<i32>} : memref<8x2x32xf32, #tpu.memory_space<vmem>>, vector<8x2x8xf32>,
    %c0_62 = arith.constant 0 : index
    %c0_63 = arith.constant 0 : index
    %c24 = arith.constant 24 : index
    %76 = vector.load %arg9[%c0_62, %c0_63, %c24] : memref<8x2x96xf32, #tpu.memory_space<vmem>>, vector<8x2x8xf32>
    %cst_64 = arith.constant 0.353553385 : f32
    %77 = vector.broadcast %cst_64 : f32 to vector<8x2x8xf32>
    %78 = arith.mulf %76, %77 : vector<8x2x8xf32>
    %c0_65 = arith.constant 0 : index
    %c0_66 = arith.constant 0 : index
    %c56 = arith.constant 56 : index
    %79 = vector.load %arg9[%c0_65, %c0_66, %c56] : memref<8x2x96xf32, #tpu.memory_space<vmem>>, vector<8x2x8xf32>
    %c0_67 = arith.constant 0 : index
    %c0_68 = arith.constant 0 : index
    %c88 = arith.constant 88 : index
    %80 = vector.load %arg9[%c0_67, %c0_68, %c88] : memref<8x2x96xf32, #tpu.memory_space<vmem>>, vector<8x2x8xf32>
    "tpu.trace_start"() <{level = 10 : i32, message = "sae,sbe->sab"}> : () -> ()
    %cst_69 = arith.constant dense<0.000000e+00> : vector<8x2x2xf32>
    %81 = tpu.matmul %78, %79, %cst_69 {dimension_numbers = #tpu.dot_dimension_numbers<[2], [2], [1], [1], [0, 0, 0, 1, 1, 1], [0], [0]>} : vector<8x2x8xf32>, vector<8x2x8xf32>, vector<8x2x2xf32> -> vector<8x2x2xf32>
    "tpu.trace_stop"() : () -> ()
    %cst_70 = arith.constant dense<0xFF800000> : vector<8x2xf32>
    %82 = vector.multi_reduction <maximumf>, %81, %cst_70 [2] : vector<8x2x2xf32> to vector<8x2xf32>
    %83 = vector.shape_cast %82 : vector<8x2xf32> to vector<8x2x1xf32>
    %84 = vector.broadcast %83 : vector<8x2x1xf32> to vector<8x2x2xf32>
    %85 = arith.subf %81, %84 : vector<8x2x2xf32>
    %86 = math.exp %85 : vector<8x2x2xf32>
    %cst_71 = arith.constant dense<0.000000e+00> : vector<8x2xf32>
    %87 = vector.multi_reduction <add>, %86, %cst_71 [2] : vector<8x2x2xf32> to vector<8x2xf32>
    %88 = vector.shape_cast %87 : vector<8x2xf32> to vector<8x2x1xf32>
    %89 = tpu.reciprocal %88 {approx = true} : vector<8x2x1xf32> -> vector<8x2x1xf32>
    %90 = vector.broadcast %89 : vector<8x2x1xf32> to vector<8x2x2xf32>
    %91 = arith.mulf %86, %90 : vector<8x2x2xf32>
    "tpu.trace_start"() <{level = 10 : i32, message = "sab,sbe->sae"}> : () -> ()
    %cst_72 = arith.constant dense<0.000000e+00> : vector<8x2x8xf32>
    %92 = tpu.matmul %91, %80, %cst_72 {dimension_numbers = #tpu.dot_dimension_numbers<[2], [1], [1], [2], [0, 0, 0, 1, 1, 2], [0], [0]>} : vector<8x2x2xf32>, vector<8x2x8xf32>, vector<8x2x8xf32> -> vector<8x2x8xf32>
    "tpu.trace_stop"() : () -> ()
    %c0_73 = arith.constant 0 : index
    %c0_74 = arith.constant 0 : index
    %c24_75 = arith.constant 24 : index
    %93 = vector.load %arg10[%c0_73, %c0_74, %c24_75] : memref<8x2x32xf32, #tpu.memory_space<vmem>>, vector<8x2x8xf32>
    tpu.vector_store %arg10[%c0_73, %c0_74, %c24_75], %92 {strides = array<i32>} : memref<8x2x32xf32, #tpu.memory_space<vmem>>, vector<8x2x8xf32>,
    %c0_76 = arith.constant 0 : index
    %c0_77 = arith.constant 0 : index
    %c0_78 = arith.constant 0 : index
    %94 = vector.load %arg10[%c0_76, %c0_77, %c0_78] : memref<8x2x32xf32, #tpu.memory_space<vmem>>, vector<8x1x32xf32>
    %95 = vector.shape_cast %94 : vector<8x1x32xf32> to vector<8x32xf32>
    %96 = arith.truncf %95 : vector<8x32xf32> to vector<8x32xbf16>
    %c0_79 = arith.constant 0 : index
    %c0_80 = arith.constant 0 : index
    %97 = vector.load %arg4[%c0_79, %c0_80] : memref<32x32xbf16, #tpu.memory_space<vmem>>, vector<32x32xbf16>
    %cst_81 = arith.constant dense<0.000000e+00> : vector<8x32xf32>
    %98 = tpu.matmul %96, %97, %cst_81 {dimension_numbers = #tpu.dot_dimension_numbers<[1], [0], [0], [1], [0, 0, 1, 1], [], []>} : vector<8x32xbf16>, vector<32x32xbf16>, vector<8x32xf32> -> vector<8x32xf32>
    %c0_82 = arith.constant 0 : index
    %c0_83 = arith.constant 0 : index
    %99 = vector.load %arg5[%c0_82, %c0_83] : memref<1x32xf32, #tpu.memory_space<vmem>>, vector<1x32xf32>
    %100 = vector.broadcast %99 : vector<1x32xf32> to vector<8x32xf32>
    %101 = arith.addf %98, %100 : vector<8x32xf32>
    %c0_84 = arith.constant 0 : index
    %c0_85 = arith.constant 0 : index
    %c0_86 = arith.constant 0 : index
    %102 = vector.load %arg1[%c0_84, %c0_85, %c0_86] : memref<8x2x32xf32, #tpu.memory_space<vmem>>, vector<8x1x32xf32>
    %103 = vector.shape_cast %102 : vector<8x1x32xf32> to vector<8x32xf32>
    %104 = arith.addf %101, %103 : vector<8x32xf32>
    %cst_87 = arith.constant dense<0.000000e+00> : vector<8xf32>
    %105 = vector.multi_reduction <add>, %104, %cst_87 [1] : vector<8x32xf32> to vector<8xf32>
    %106 = vector.shape_cast %105 : vector<8xf32> to vector<8x1xf32>
    %cst_88 = arith.constant 3.200000e+01 : f32
    %107 = vector.broadcast %cst_88 : f32 to vector<8x1xf32>
    %108 = arith.divf %106, %107 : vector<8x1xf32>
    %109 = vector.broadcast %108 : vector<8x1xf32> to vector<8x32xf32>
    %110 = arith.subf %104, %109 : vector<8x32xf32>
    %111 = arith.mulf %110, %110 : vector<8x32xf32>
    %cst_89 = arith.constant dense<0.000000e+00> : vector<8xf32>
    %112 = vector.multi_reduction <add>, %111, %cst_89 [1] : vector<8x32xf32> to vector<8xf32>
    %113 = vector.shape_cast %112 : vector<8xf32> to vector<8x1xf32>
    %cst_90 = arith.constant 3.200000e+01 : f32
    %114 = vector.broadcast %cst_90 : f32 to vector<8x1xf32>
    %115 = arith.divf %113, %114 : vector<8x1xf32>
    %cst_91 = arith.constant 9.99999974E-6 : f32
    %116 = vector.broadcast %cst_91 : f32 to vector<8x1xf32>
    %117 = arith.addf %115, %116 : vector<8x1xf32>
    %118 = math.rsqrt %117 : vector<8x1xf32>
    %119 = vector.broadcast %118 : vector<8x1xf32> to vector<8x32xf32>
    %120 = arith.mulf %110, %119 : vector<8x32xf32>
    %c0_92 = arith.constant 0 : index
    %c0_93 = arith.constant 0 : index
    %121 = vector.load %arg6[%c0_92, %c0_93] : memref<1x32xf32, #tpu.memory_space<vmem>>, vector<1x32xf32>
    %122 = vector.broadcast %121 : vector<1x32xf32> to vector<8x32xf32>
    %123 = arith.mulf %120, %122 : vector<8x32xf32>
    %c0_94 = arith.constant 0 : index
    %c0_95 = arith.constant 0 : index
    %124 = vector.load %arg7[%c0_94, %c0_95] : memref<1x32xf32, #tpu.memory_space<vmem>>, vector<1x32xf32>
    %125 = vector.broadcast %124 : vector<1x32xf32> to vector<8x32xf32>
    %126 = arith.addf %123, %125 : vector<8x32xf32>
    %c0_96 = arith.constant 0 : index
    %c0_97 = arith.constant 0 : index
    %c0_98 = arith.constant 0 : index
    %127 = vector.load %arg8[%c0_96, %c0_97, %c0_98] : memref<8x2x32xf32, #tpu.memory_space<vmem>>, vector<8x1x32xf32>
    %128 = vector.shape_cast %127 : vector<8x1x32xf32> to vector<8x32xf32>
    %129 = vector.shape_cast %126 : vector<8x32xf32> to vector<8x1x32xf32>
    tpu.vector_store %arg8[%c0_96, %c0_97, %c0_98], %129 {strides = array<i32>} : memref<8x2x32xf32, #tpu.memory_space<vmem>>, vector<8x1x32xf32>,
    %c0_99 = arith.constant 0 : index
    %c1_100 = arith.constant 1 : index
    %c0_101 = arith.constant 0 : index
    %130 = vector.load %arg10[%c0_99, %c1_100, %c0_101] : memref<8x2x32xf32, #tpu.memory_space<vmem>>, vector<8x1x32xf32>
    %131 = vector.shape_cast %130 : vector<8x1x32xf32> to vector<8x32xf32>
    %132 = arith.truncf %131 : vector<8x32xf32> to vector<8x32xbf16>
    %c0_102 = arith.constant 0 : index
    %c0_103 = arith.constant 0 : index
    %133 = vector.load %arg4[%c0_102, %c0_103] : memref<32x32xbf16, #tpu.memory_space<vmem>>, vector<32x32xbf16>
    %cst_104 = arith.constant dense<0.000000e+00> : vector<8x32xf32>
    %134 = tpu.matmul %132, %133, %cst_104 {dimension_numbers = #tpu.dot_dimension_numbers<[1], [0], [0], [1], [0, 0, 1, 1], [], []>} : vector<8x32xbf16>, vector<32x32xbf16>, vector<8x32xf32> -> vector<8x32xf32>
    %c0_105 = arith.constant 0 : index
    %c0_106 = arith.constant 0 : index
    %135 = vector.load %arg5[%c0_105, %c0_106] : memref<1x32xf32, #tpu.memory_space<vmem>>, vector<1x32xf32>
    %136 = vector.broadcast %135 : vector<1x32xf32> to vector<8x32xf32>
    %137 = arith.addf %134, %136 : vector<8x32xf32>
    %c0_107 = arith.constant 0 : index
    %c1_108 = arith.constant 1 : index
    %c0_109 = arith.constant 0 : index
    %138 = vector.load %arg1[%c0_107, %c1_108, %c0_109] : memref<8x2x32xf32, #tpu.memory_space<vmem>>, vector<8x1x32xf32>
    %139 = vector.shape_cast %138 : vector<8x1x32xf32> to vector<8x32xf32>
    %140 = arith.addf %137, %139 : vector<8x32xf32>
    %cst_110 = arith.constant dense<0.000000e+00> : vector<8xf32>
    %141 = vector.multi_reduction <add>, %140, %cst_110 [1] : vector<8x32xf32> to vector<8xf32>
    %142 = vector.shape_cast %141 : vector<8xf32> to vector<8x1xf32>
    %cst_111 = arith.constant 3.200000e+01 : f32
    %143 = vector.broadcast %cst_111 : f32 to vector<8x1xf32>
    %144 = arith.divf %142, %143 : vector<8x1xf32>
    %145 = vector.broadcast %144 : vector<8x1xf32> to vector<8x32xf32>
    %146 = arith.subf %140, %145 : vector<8x32xf32>
    %147 = arith.mulf %146, %146 : vector<8x32xf32>
    %cst_112 = arith.constant dense<0.000000e+00> : vector<8xf32>
    %148 = vector.multi_reduction <add>, %147, %cst_112 [1] : vector<8x32xf32> to vector<8xf32>
    %149 = vector.shape_cast %148 : vector<8xf32> to vector<8x1xf32>
    %cst_113 = arith.constant 3.200000e+01 : f32
    %150 = vector.broadcast %cst_113 : f32 to vector<8x1xf32>
    %151 = arith.divf %149, %150 : vector<8x1xf32>
    %cst_114 = arith.constant 9.99999974E-6 : f32
    %152 = vector.broadcast %cst_114 : f32 to vector<8x1xf32>
    %153 = arith.addf %151, %152 : vector<8x1xf32>
    %154 = math.rsqrt %153 : vector<8x1xf32>
    %155 = vector.broadcast %154 : vector<8x1xf32> to vector<8x32xf32>
    %156 = arith.mulf %146, %155 : vector<8x32xf32>
    %c0_115 = arith.constant 0 : index
    %c0_116 = arith.constant 0 : index
    %157 = vector.load %arg6[%c0_115, %c0_116] : memref<1x32xf32, #tpu.memory_space<vmem>>, vector<1x32xf32>
    %158 = vector.broadcast %157 : vector<1x32xf32> to vector<8x32xf32>
    %159 = arith.mulf %156, %158 : vector<8x32xf32>
    %c0_117 = arith.constant 0 : index
    %c0_118 = arith.constant 0 : index
    %160 = vector.load %arg7[%c0_117, %c0_118] : memref<1x32xf32, #tpu.memory_space<vmem>>, vector<1x32xf32>
    %161 = vector.broadcast %160 : vector<1x32xf32> to vector<8x32xf32>
    %162 = arith.addf %159, %161 : vector<8x32xf32>
    %c0_119 = arith.constant 0 : index
    %c1_120 = arith.constant 1 : index
    %c0_121 = arith.constant 0 : index
    %163 = vector.load %arg8[%c0_119, %c1_120, %c0_121] : memref<8x2x32xf32, #tpu.memory_space<vmem>>, vector<8x1x32xf32>
    %164 = vector.shape_cast %163 : vector<8x1x32xf32> to vector<8x32xf32>
    %165 = vector.shape_cast %162 : vector<8x32xf32> to vector<8x1x32xf32>
    tpu.vector_store %arg8[%c0_119, %c1_120, %c0_121], %165 {strides = array<i32>} : memref<8x2x32xf32, #tpu.memory_space<vmem>>, vector<8x1x32xf32>,
    return
  }
  func.func @transform_0(%arg0: i32) -> (i32, i32, i32) {
    %c0_i32 = arith.constant 0 : i32
    %c0_i32_0 = arith.constant 0 : i32
    %c0_i32_1 = arith.constant 0 : i32
    return %arg0, %c0_i32, %c0_i32_0 : i32, i32, i32
  }
  func.func @transform_1(%arg0: i32) -> (i32, i32) {
    %c0_i32 = arith.constant 0 : i32
    %c0_i32_0 = arith.constant 0 : i32
    %c0_i32_1 = arith.constant 0 : i32
    return %c0_i32, %c0_i32_0 : i32, i32
  }
  func.func @transform_2(%arg0: i32) -> (i32, i32) {
    %c0_i32 = arith.constant 0 : i32
    %c0_i32_0 = arith.constant 0 : i32
    %c0_i32_1 = arith.constant 0 : i32
    return %c0_i32, %c0_i32_0 : i32, i32
  }
  func.func @transform_3(%arg0: i32) -> (i32, i32) {
    %c0_i32 = arith.constant 0 : i32
    %c0_i32_0 = arith.constant 0 : i32
    %c0_i32_1 = arith.constant 0 : i32
    return %c0_i32, %c0_i32_0 : i32, i32
  }
  func.func @transform_4(%arg0: i32) -> (i32, i32) {
    %c0_i32 = arith.constant 0 : i32
    %c0_i32_0 = arith.constant 0 : i32
    %c0_i32_1 = arith.constant 0 : i32
    return %c0_i32, %c0_i32_0 : i32, i32
  }
  func.func @transform_5(%arg0: i32) -> (i32, i32) {
    %c0_i32 = arith.constant 0 : i32
    %c0_i32_0 = arith.constant 0 : i32
    %c0_i32_1 = arith.constant 0 : i32
    return %c0_i32, %c0_i32_0 : i32, i32
  }
  func.func @transform_6(%arg0: i32) -> (i32, i32) {
    %c0_i32 = arith.constant 0 : i32
    %c0_i32_0 = arith.constant 0 : i32
    %c0_i32_1 = arith.constant 0 : i32
    return %c0_i32, %c0_i32_0 : i32, i32
  }
  func.func @transform_7(%arg0: i32) -> (i32, i32, i32) {
    %c0_i32 = arith.constant 0 : i32
    %c0_i32_0 = arith.constant 0 : i32
    %c0_i32_1 = arith.constant 0 : i32
    return %arg0, %c0_i32, %c0_i32_0 : i32, i32, i32
  }
}

module attributes {stable_mosaic.version = 11 : i64} {
  func.func @_logits_lsm_kernel(%arg0: i32, %arg1: memref<16x32xf32, #tpu.memory_space<vmem>>, %arg2: memref<32x64xbf16, #tpu.memory_space<vmem>>, %arg3: memref<1x64xf32, #tpu.memory_space<vmem>>, %arg4: memref<16x64xf32, #tpu.memory_space<vmem>>) attributes {dimension_semantics = [#tpu.dimension_semantics<parallel>], iteration_bounds = array<i64: 1>, scalar_prefetch = 0 : i64, scratch_operands = 0 : i64, tpu.core_type = #tpu.core_type<tc>, window_params = [{transform_indices = @transform_0, window_bounds = array<i64: 16, 32>}, {pipeline_mode = #tpu.pipeline_mode<synchronous>, transform_indices = @transform_1, window_bounds = array<i64: 32, 64>}, {pipeline_mode = #tpu.pipeline_mode<synchronous>, transform_indices = @transform_2, window_bounds = array<i64: 1, 64>}, {transform_indices = @transform_3, window_bounds = array<i64: 16, 64>}]} {
    %c0 = arith.constant 0 : index
    %c0_0 = arith.constant 0 : index
    %0 = vector.load %arg1[%c0, %c0_0] : memref<16x32xf32, #tpu.memory_space<vmem>>, vector<16x32xf32>
    %1 = arith.truncf %0 : vector<16x32xf32> to vector<16x32xbf16>
    %c0_1 = arith.constant 0 : index
    %c0_2 = arith.constant 0 : index
    %2 = vector.load %arg2[%c0_1, %c0_2] : memref<32x64xbf16, #tpu.memory_space<vmem>>, vector<32x64xbf16>
    %cst = arith.constant dense<0.000000e+00> : vector<16x64xf32>
    %3 = tpu.matmul %1, %2, %cst {dimension_numbers = #tpu.dot_dimension_numbers<[1], [0], [0], [1], [0, 0, 1, 1], [], []>} : vector<16x32xbf16>, vector<32x64xbf16>, vector<16x64xf32> -> vector<16x64xf32>
    %c0_3 = arith.constant 0 : index
    %c0_4 = arith.constant 0 : index
    %4 = vector.load %arg3[%c0_3, %c0_4] : memref<1x64xf32, #tpu.memory_space<vmem>>, vector<1x64xf32>
    %5 = vector.broadcast %4 : vector<1x64xf32> to vector<16x64xf32>
    %6 = arith.addf %3, %5 : vector<16x64xf32>
    %cst_5 = arith.constant dense<0xFF800000> : vector<16xf32>
    %7 = vector.multi_reduction <maximumf>, %6, %cst_5 [1] : vector<16x64xf32> to vector<16xf32>
    %8 = vector.shape_cast %7 : vector<16xf32> to vector<16x1xf32>
    %9 = vector.broadcast %8 : vector<16x1xf32> to vector<16x64xf32>
    %10 = arith.subf %6, %9 : vector<16x64xf32>
    %11 = math.exp %10 : vector<16x64xf32>
    %cst_6 = arith.constant dense<0.000000e+00> : vector<16xf32>
    %12 = vector.multi_reduction <add>, %11, %cst_6 [1] : vector<16x64xf32> to vector<16xf32>
    %13 = vector.shape_cast %12 : vector<16xf32> to vector<16x1xf32>
    %14 = math.log %13 : vector<16x1xf32>
    %15 = vector.broadcast %14 : vector<16x1xf32> to vector<16x64xf32>
    %16 = arith.subf %10, %15 : vector<16x64xf32>
    %c0_7 = arith.constant 0 : index
    %c0_8 = arith.constant 0 : index
    %17 = vector.load %arg4[%c0_7, %c0_8] : memref<16x64xf32, #tpu.memory_space<vmem>>, vector<16x64xf32>
    tpu.vector_store %arg4[%c0_7, %c0_8], %16 {strides = array<i32>} : memref<16x64xf32, #tpu.memory_space<vmem>>, vector<16x64xf32>,
    return
  }
  func.func @transform_0(%arg0: i32) -> (i32, i32) {
    %c0_i32 = arith.constant 0 : i32
    %c0_i32_0 = arith.constant 0 : i32
    return %arg0, %c0_i32 : i32, i32
  }
  func.func @transform_1(%arg0: i32) -> (i32, i32) {
    %c0_i32 = arith.constant 0 : i32
    %c0_i32_0 = arith.constant 0 : i32
    %c0_i32_1 = arith.constant 0 : i32
    return %c0_i32, %c0_i32_0 : i32, i32
  }
  func.func @transform_2(%arg0: i32) -> (i32, i32) {
    %c0_i32 = arith.constant 0 : i32
    %c0_i32_0 = arith.constant 0 : i32
    %c0_i32_1 = arith.constant 0 : i32
    return %c0_i32, %c0_i32_0 : i32, i32
  }
  func.func @transform_3(%arg0: i32) -> (i32, i32) {
    %c0_i32 = arith.constant 0 : i32
    %c0_i32_0 = arith.constant 0 : i32
    return %arg0, %c0_i32 : i32, i32
  }
}

</mosaic_0001>

<bundles_post_ra>
// kernel: switch_transformer_forward.9
= control target key start
LH: loop header
LB: loop body
LE: loop exit
PB: predicated region body
PF: predicated region fallthrough
CT: control target
= control target key end

     0   :  { %v244_v0 = vmov 0.0   ;;  %vm245_vm0 = vmmov 0   ;;  %vm53_vm1 = vcmask 261120   ;;  %vm111_vm2 = vcmask 1043456   ;;  %s326_s1 = inlined_call_operand.vmem [shape: bf16[32,8], index: 1, kind: input, shape index: {}]   ;;  %s327_s0 = inlined_call_operand.vmem [shape: f32[16,32], index: 0, kind: input, shape index: {}]   ;;  %s328_s3 = inlined_call_operand.vmem [shape: bf16[8,32], index: 3, kind: input, shape index: {}]   ;;  %s329_s2 = inlined_call_operand.vmem [shape: f32[1,8], index: 2, kind: input, shape index: {}]   ;;  %s330_s4 = inlined_call_operand.vmem [shape: f32[1,32], index: 4, kind: input, shape index: {}]   ;;  %s331_s5 = inlined_call_operand.vmem [shape: f32[1,32], index: 5, kind: input, shape index: {}]   ;;  %s332_s6 = inlined_call_operand.vmem [shape: f32[1,32], index: 6, kind: input, shape index: {}]   ;;  %s333_s7 = inlined_call_operand.vmem [shape: f32[16,32], index: 7, kind: output, shape index: {}]  }
   0x1   :  { %222 = vmatprep.subr.bf16.mxu0 %v244_v0  ;;  %v238_v1 = vld [vmem:[%s326_s1 + $0x8] sm:$0xff]   ;;  %226 = vmatprep.mubr.msk.bf16.mxu0 %vm245_vm0, %v244_v0  ;;  %v239_v2 = vld [vmem:[%s326_s1] sm:$0xff]   ;;  %vm107_vm3 = vcmask 64512  }
   0x2   :  { %230 = vmatprep.subr.bf16.mxu1 %v244_v0  ;;  %232 = vmatprep.mubr.msk.bf16.mxu1 %vm245_vm0, %v244_v0  ;;  %v27_v3 = vld [vmem:[%s327_s0] sm:$0xff]  ;;  %v28_v4 = vld [vmem:[%s327_s0 + $0x8] sm:$0xff] }
   0x3   :  { %223 = vmatpush3.bf16.msra.mxu0 %v238_v1  ;;  %v29_v5 = vpack.c.bf16 %v28_v4, %v27_v3  ;;  %v99_v6 = vld [vmem:[%s328_s3] sm:$0xf] }
   0x4   :  { %224 = vmatprep.subr.bf16.mxu0 %v244_v0  ;;  %v113_v7 = vsel %vm111_vm2, %v99_v6, 0  ;;  %v209_v9 = vld [vmem:[%s329_s2] ss:$0 sm:$0xff] }
   0x5   :  { %231 = vmatpush3.bf16.msra.mxu1 %v113_v7  ;;  %v213_v16 = vld [vmem:[%s330_s4] ss:$0 sm:$0xff] }
   0x6   :  { %v215_v44 = vld [vmem:[%s331_s5] ss:$0 sm:$0xff] }
   0x7   :  { %225 = vmatpush3.bf16.msra.mxu0 %v239_v2  ;;  %v216_v46 = vld [vmem:[%s332_s6] ss:$0 sm:$0xff] }
   0xa   :  { %227 = vmatmul.mubr.msk.bf16.vlgmr.msra.gmra.mxu0 %vm53_vm1, %v29_v5 }
  0xca   :  { %v91_v8 = vpop.f32.mrf.mxu0 }
  0xcb   :  { %v92_v12 = vadd.f32 %v209_v9, %v91_v8 }
  0xcc   :  { %v228_v10 = vpop.f32.mrf.mxu0 }
  0xce   :  { %v94_v11 = vpop.f32.mrf.mxu0 }
  0xcf   :  { %v95_v13 = vadd.f32 %v209_v9, %v94_v11 }
  0xd0   :  { %v229_v14 = vpop.f32.mrf.mxu0 }
  0xd1   :  { %v98_v15 = vpack.c.bf16 %v95_v13, %v92_v12 }
  0xd3   :  { %233 = vmatmul.mubr.msk.bf16.vlgmr.msra.gmra.mxu1 %vm107_vm3, %v98_v15 }
 0x193   :  { %v149_v17 = vpop.f32.mrf.mxu1 }
 0x194   :  { %v150_v18 = vadd.f32 %v213_v16, %v149_v17 }
 0x195   :  { %v234_v19 = vpop.f32.mrf.mxu1 }
 0x196   :  { %v156_v20 = vadd.f32 %v150_v18, %v27_v3 }
 0x197   :  { %v152_v21 = vpop.f32.mrf.mxu1 }
 0x198   :  { %v153_v22 = vadd.f32 %v213_v16, %v152_v21  ;;  %v158_v23 = vsel %vm53_vm1, %v156_v20, 0.0 }
 0x199   :  { %159 = vadd.xlane.f32.xlu0 %v158_v23  ;;  %v235_v24 = vpop.f32.mrf.mxu1 }
 0x19a   :  { %v157_v25 = vadd.f32 %v153_v22, %v28_v4 }
 0x19c   :  { %v161_v26 = vsel %vm53_vm1, %v157_v25, 0.0 }
 0x19d   :  { %162 = vadd.xlane.f32.xlu0 %v161_v26 }
 0x222   :  { %v160_v27 = vpop.xlane.xlu0 %159 }
 0x223   :  { %v165_v28 = vmul.f32 0.03125, %v160_v27 }
 0x225   :  { %v167_v29 = vsub.f32 %v156_v20, %v165_v28 }
 0x226   :  { %v163_v30 = vpop.xlane.xlu0 %162 }
 0x227   :  { %v166_v31 = vmul.f32 0.03125, %v163_v30  ;;  %v169_v32 = vmul.f32 %v167_v29, %v167_v29 }
 0x229   :  { %v168_v33 = vsub.f32 %v157_v25, %v166_v31  ;;  %v171_v34 = vsel %vm53_vm1, %v169_v32, 0.0 }
 0x22a   :  { %172 = vadd.xlane.f32.xlu1 %v171_v34 }
 0x22b   :  { %v170_v35 = vmul.f32 %v168_v33, %v168_v33 }
 0x22d   :  { %v174_v36 = vsel %vm53_vm1, %v170_v35, 0.0 }
 0x22e   :  { %175 = vadd.xlane.f32.xlu1 %v174_v36 }
 0x2b3   :  { %v173_v37 = vpop.xlane.xlu1 %172 }
 0x2b4   :  { %v177_v38 = vmul.f32 0.03125, %v173_v37 }
 0x2b6   :  { %v179_v39 = vadd.f32 1e-05, %v177_v38 }
 0x2b7   :  { %v176_v40 = vpop.xlane.xlu1 %175 }
 0x2b8   :  { %240 = vrsqrt.f32 %v179_v39  ;;  %v178_v41 = vmul.f32 0.03125, %v176_v40 }
 0x2ba   :  { %v180_v42 = vadd.f32 1e-05, %v178_v41 }
 0x2bc   :  { %242 = vrsqrt.f32 %v180_v42 }
 0x2c5   :  { %v241_v43 = vpop.eup %240 }
 0x2c6   :  { %v183_v45 = vmul.f32 %v241_v43, %v167_v29 }
 0x2c8   :  { %v192_v47 = vmul.f32 %v215_v44, %v183_v45 }
 0x2c9   :  { %v243_v48 = vpop.eup %242 }
 0x2ca   :  { %v201_v49 = vadd.f32 %v216_v46, %v192_v47  ;;  %v184_v50 = vmul.f32 %v243_v48, %v168_v33 }
 0x2cc   :  { %203 = vst.msk [vmem:[%s333_s7] sm:$0xff] %vm53_vm1, %v201_v49  ;;  %v193_v51 = vmul.f32 %v215_v44, %v184_v50 }
 0x2ce   :  { %v202_v52 = vadd.f32 %v216_v46, %v193_v51 }
 0x2d0   :  { %204 = vst.msk [vmem:[%s333_s7 + $0x8] sm:$0xff] %vm53_vm1, %v202_v52 }

// kernel: switch_transformer_forward.13
= control target key start
LH: loop header
LB: loop body
LE: loop exit
PB: predicated region body
PF: predicated region fallthrough
CT: control target
= control target key end

     0   :  { %v144_v0 = vmov 0.0   ;;  %vm145_vm0 = vmmov 0   ;;  %vm41_vm1 = vcmask 261120   ;;  %vm86_vm2 = vcmask 523264   ;;  %s193_s1 = inlined_call_operand.vmem [shape: bf16[32,64], index: 1, kind: input, shape index: {}]   ;;  %s194_s0 = inlined_call_operand.vmem [shape: f32[16,32], index: 0, kind: input, shape index: {}]   ;;  %s195_s2 = inlined_call_operand.vmem [shape: f32[1,64], index: 2, kind: input, shape index: {}]   ;;  %s196_s3 = inlined_call_operand.vmem [shape: f32[16,64], index: 3, kind: output, shape index: {}]  }
   0x1   :  { %124 = vmatprep.subr.bf16.mxu0 %v144_v0  ;;  %v134_v1 = vld [vmem:[%s193_s1 + $0x8] sm:$0xff]   ;;  %128 = vmatprep.mubr.msk.bf16.mxu0 %vm145_vm0, %v144_v0  ;;  %v135_v2 = vld [vmem:[%s193_s1] sm:$0xff]  }
   0x2   :  { %125 = vmatpush3.bf16.msra.mxu0 %v134_v1  ;;  %v15_v3 = vld [vmem:[%s194_s0] sm:$0xff]  ;;  %v16_v4 = vld [vmem:[%s194_s0 + $0x8] sm:$0xff] }
   0x3   :  { %126 = vmatprep.subr.bf16.mxu0 %v144_v0  ;;  %v17_v5 = vpack.c.bf16 %v16_v4, %v15_v3  ;;  %v117_v6 = vld [vmem:[%s195_s2] ss:$0 sm:$0xff] }
   0x6   :  { %127 = vmatpush3.bf16.msra.mxu0 %v135_v2 }
   0x9   :  { %129 = vmatmul.mubr.msk.bf16.vlgmr.msra.gmra.mxu0 %vm41_vm1, %v17_v5 }
  0xc9   :  { %v79_v7 = vpop.f32.mrf.mxu0 }
  0xca   :  { %v80_v8 = vadd.f32 %v117_v6, %v79_v7 }
  0xcb   :  { %v130_v9 = vpop.f32.mrf.mxu0 }
  0xcc   :  { %v87_v10 = vsel %vm86_vm2, %v80_v8, -inf }
  0xcd   :  { %88 = vmax.xlane.f32.xlu0 %v87_v10  ;;  %v82_v11 = vpop.f32.mrf.mxu0 }
  0xce   :  { %v83_v12 = vadd.f32 %v117_v6, %v82_v11 }
  0xcf   :  { %v131_v13 = vpop.f32.mrf.mxu0 }
  0xd0   :  { %v90_v14 = vsel %vm86_vm2, %v83_v12, -inf }
  0xd1   :  { %91 = vmax.xlane.f32.xlu0 %v90_v14 }
 0x156   :  { %v89_v15 = vpop.xlane.xlu0 %88 }
 0x157   :  { %v93_v16 = vsub.f32 %v80_v8, %v89_v15 }
 0x159   :  { %v95_v17 = vmul.f32 1.442695, %v93_v16 }
 0x15a   :  { %v92_v18 = vpop.xlane.xlu0 %91 }
 0x15b   :  { %136 = vpow2.f32 %v95_v17  ;;  %v94_v19 = vsub.f32 %v83_v12, %v92_v18 }
 0x15d   :  { %v97_v20 = vmul.f32 1.442695, %v94_v19 }
 0x15f   :  { %138 = vpow2.f32 %v97_v20 }
 0x168   :  { %v137_v21 = vpop.eup %136 }
 0x169   :  { %v99_v22 = vsel %vm86_vm2, %v137_v21, 0.0 }
 0x16a   :  { %100 = vadd.xlane.f32.xlu1 %v99_v22 }
 0x16c   :  { %v139_v23 = vpop.eup %138 }
 0x16d   :  { %v102_v24 = vsel %vm86_vm2, %v139_v23, 0.0 }
 0x16e   :  { %103 = vadd.xlane.f32.xlu1 %v102_v24 }
 0x1f3   :  { %v101_v25 = vpop.xlane.xlu1 %100 }
 0x1f4   :  { %140 = vlog2.f32 %v101_v25 }
 0x1f7   :  { %v104_v26 = vpop.xlane.xlu1 %103 }
 0x1f8   :  { %142 = vlog2.f32 %v104_v26 }
 0x201   :  { %v141_v27 = vpop.eup %140 }
 0x202   :  { %v106_v28 = vmul.f32 0.6931472, %v141_v27 }
 0x204   :  { %v109_v29 = vsub.f32 %v93_v16, %v106_v28 }
 0x205   :  { %v143_v30 = vpop.eup %142 }
 0x206   :  { %111 = vst.msk [vmem:[%s196_s3] sm:$0xff] %vm86_vm2, %v109_v29  ;;  %v108_v31 = vmul.f32 0.6931472, %v143_v30 }
 0x208   :  { %v110_v32 = vsub.f32 %v94_v19, %v108_v31 }
 0x20a   :  { %112 = vst.msk [vmem:[%s196_s3 + $0x8] sm:$0xff] %vm86_vm2, %v110_v32 }

// kernel: switch_transformer_forward.8
= control target key start
LH: loop header
LB: loop body
LE: loop exit
PB: predicated region body
PF: predicated region fallthrough
CT: control target
= control target key end

     0   :  { %v290_v0 = vmov 0.0   ;;  %vm291_vm0 = vmmov 0   ;;  %vm53_vm1 = vcmask 261120   ;;  %vm140_vm2 = vcmask 523264   ;;  %s381_s1 = inlined_call_operand.vmem [shape: bf16[32,64], index: 1, kind: input, shape index: {}]   ;;  %s382_s0 = inlined_call_operand.vmem [shape: f32[16,32], index: 0, kind: input, shape index: {}]   ;;  %s383_s3 = inlined_call_operand.vmem [shape: bf16[64,32], index: 3, kind: input, shape index: {}]   ;;  %s384_s2 = inlined_call_operand.vmem [shape: f32[1,64], index: 2, kind: input, shape index: {}]   ;;  %s385_s4 = inlined_call_operand.vmem [shape: f32[1,32], index: 4, kind: input, shape index: {}]   ;;  %s386_s5 = inlined_call_operand.vmem [shape: f32[1,32], index: 5, kind: input, shape index: {}]   ;;  %s387_s6 = inlined_call_operand.vmem [shape: f32[1,32], index: 6, kind: input, shape index: {}]   ;;  %s388_s7 = inlined_call_operand.vmem [shape: f32[16,32], index: 7, kind: output, shape index: {}]  }
   0x1   :  { %258 = vmatprep.subr.bf16.mxu0 %v290_v0  ;;  %v280_v1 = vld [vmem:[%s381_s1 + $0x8] sm:$0xff]   ;;  %262 = vmatprep.mubr.msk.bf16.mxu0 %vm291_vm0, %v290_v0  ;;  %v281_v2 = vld [vmem:[%s381_s1] sm:$0xff]   ;;  %v282_v5 = vld [vmem:[%s383_s3 + $0x18] sm:$0xff]  }
   0x2   :  { %266 = vmatprep.subr.bf16.mxu1 %v290_v0  ;;  %274 = vmatprep.mubr.msk.bf16.mxu1 %vm291_vm0, %v290_v0  ;;  %v27_v3 = vld [vmem:[%s382_s0] sm:$0xff]  ;;  %v28_v4 = vld [vmem:[%s382_s0 + $0x8] sm:$0xff]  ;;  %v283_v7 = vld [vmem:[%s383_s3 + $0x10] sm:$0xff]  }
   0x3   :  { %259 = vmatpush3.bf16.msra.mxu0 %v280_v1  ;;  %v29_v6 = vpack.c.bf16 %v28_v4, %v27_v3  ;;  %267 = vmatpush3.bf16.msra.mxu1 %v282_v5  ;;  %v284_v8 = vld [vmem:[%s383_s3 + $0x8] sm:$0xff]   ;;  %v285_v9 = vld [vmem:[%s383_s3] sm:$0xff]  }
   0x4   :  { %260 = vmatprep.subr.bf16.mxu0 %v290_v0  ;;  %268 = vmatprep.subr.bf16.mxu1 %v290_v0  ;;  %v238_v10 = vld [vmem:[%s384_s2] ss:$0 sm:$0xff] }
   0x5   :  { %v242_v20 = vld [vmem:[%s385_s4] ss:$0 sm:$0xff] }
   0x6   :  { %v248_v48 = vld [vmem:[%s386_s5] ss:$0 sm:$0xff] }
   0x7   :  { %261 = vmatpush3.bf16.msra.mxu0 %v281_v2  ;;  %269 = vmatpush3.bf16.msra.mxu1 %v283_v7  ;;  %v249_v50 = vld [vmem:[%s387_s6] ss:$0 sm:$0xff] }
   0x8   :  { %270 = vmatprep.subr.bf16.mxu1 %v290_v0 }
   0xa   :  { %263 = vmatmul.mubr.msk.bf16.vlgmr.msra.gmra.mxu0 %vm53_vm1, %v29_v6 }
   0xb   :  { %271 = vmatpush3.bf16.msra.mxu1 %v284_v8 }
   0xc   :  { %272 = vmatprep.subr.bf16.mxu1 %v290_v0 }
   0xf   :  { %273 = vmatpush3.bf16.msra.mxu1 %v285_v9 }
  0xca   :  { %v91_v11 = vpop.f32.mrf.mxu0 }
  0xcb   :  { %v92_v13 = vadd.f32 %v238_v10, %v91_v11 }
  0xcc   :  { %v264_v12 = vpop.f32.mrf.mxu0 }
  0xcd   :  { %v98_v17 = vmax.f32 %v92_v13, 0.0 }
  0xce   :  { %v94_v14 = vpop.f32.mrf.mxu0 }
  0xcf   :  { %v95_v15 = vadd.f32 %v238_v10, %v94_v14 }
  0xd0   :  { %v265_v16 = vpop.f32.mrf.mxu0 }
  0xd1   :  { %v99_v18 = vmax.f32 %v95_v15, 0.0 }
  0xd3   :  { %v100_v19 = vpack.c.bf16 %v99_v18, %v98_v17 }
  0xd5   :  { %275 = vmatmul.mubr.msk.bf16.vlgmr.msra.gmra.mxu1 %vm140_vm2, %v100_v19 }
 0x195   :  { %v178_v21 = vpop.f32.mrf.mxu1 }
 0x196   :  { %v179_v22 = vadd.f32 %v242_v20, %v178_v21 }
 0x197   :  { %v276_v23 = vpop.f32.mrf.mxu1 }
 0x198   :  { %v185_v24 = vadd.f32 %v179_v22, %v27_v3 }
 0x199   :  { %v181_v25 = vpop.f32.mrf.mxu1 }
 0x19a   :  { %v182_v26 = vadd.f32 %v242_v20, %v181_v25  ;;  %v187_v27 = vsel %vm53_vm1, %v185_v24, 0.0 }
 0x19b   :  { %188 = vadd.xlane.f32.xlu0 %v187_v27  ;;  %v277_v28 = vpop.f32.mrf.mxu1 }
 0x19c   :  { %v186_v29 = vadd.f32 %v182_v26, %v28_v4 }
 0x19e   :  { %v190_v30 = vsel %vm53_vm1, %v186_v29, 0.0 }
 0x19f   :  { %191 = vadd.xlane.f32.xlu0 %v190_v30 }
 0x224   :  { %v189_v31 = vpop.xlane.xlu0 %188 }
 0x225   :  { %v194_v32 = vmul.f32 0.03125, %v189_v31 }
 0x227   :  { %v196_v33 = vsub.f32 %v185_v24, %v194_v32 }
 0x228   :  { %v192_v34 = vpop.xlane.xlu0 %191 }
 0x229   :  { %v195_v35 = vmul.f32 0.03125, %v192_v34  ;;  %v198_v36 = vmul.f32 %v196_v33, %v196_v33 }
 0x22b   :  { %v197_v37 = vsub.f32 %v186_v29, %v195_v35  ;;  %v200_v38 = vsel %vm53_vm1, %v198_v36, 0.0 }
 0x22c   :  { %201 = vadd.xlane.f32.xlu1 %v200_v38 }
 0x22d   :  { %v199_v39 = vmul.f32 %v197_v37, %v197_v37 }
 0x22f   :  { %v203_v40 = vsel %vm53_vm1, %v199_v39, 0.0 }
 0x230   :  { %204 = vadd.xlane.f32.xlu1 %v203_v40 }
 0x2b5   :  { %v202_v41 = vpop.xlane.xlu1 %201 }
 0x2b6   :  { %v206_v42 = vmul.f32 0.03125, %v202_v41 }
 0x2b8   :  { %v208_v43 = vadd.f32 1e-05, %v206_v42 }
 0x2b9   :  { %v205_v44 = vpop.xlane.xlu1 %204 }
 0x2ba   :  { %286 = vrsqrt.f32 %v208_v43  ;;  %v207_v45 = vmul.f32 0.03125, %v205_v44 }
 0x2bc   :  { %v209_v46 = vadd.f32 1e-05, %v207_v45 }
 0x2be   :  { %288 = vrsqrt.f32 %v209_v46 }
 0x2c7   :  { %v287_v47 = vpop.eup %286 }
 0x2c8   :  { %v212_v49 = vmul.f32 %v287_v47, %v196_v33 }
 0x2ca   :  { %v221_v51 = vmul.f32 %v248_v48, %v212_v49 }
 0x2cb   :  { %v289_v52 = vpop.eup %288 }
 0x2cc   :  { %v230_v53 = vadd.f32 %v249_v50, %v221_v51  ;;  %v213_v54 = vmul.f32 %v289_v52, %v197_v37 }
 0x2ce   :  { %232 = vst.msk [vmem:[%s388_s7] sm:$0xff] %vm53_vm1, %v230_v53  ;;  %v222_v55 = vmul.f32 %v248_v48, %v213_v54 }
 0x2d0   :  { %v231_v56 = vadd.f32 %v249_v50, %v222_v55 }
 0x2d2   :  { %233 = vst.msk [vmem:[%s388_s7 + $0x8] sm:$0xff] %vm53_vm1, %v231_v56 }

// kernel: switch_transformer_forward.7
= control target key start
LH: loop header
LB: loop body
LE: loop exit
PB: predicated region body
PF: predicated region fallthrough
CT: control target
= control target key end

     0   :  { %v7237_v0 = vmov 0.0   ;;  %vm71_vm0 = vcmask 1041409   ;;  %vm7238_vm1 = vmmov 0   ;;  %vm74_vm2 = vcmask 1042434   ;;  %s7241_s18 = smov 64   ;;  %s7242_s19 = smov 88   ;;  %s8514_s1 = inlined_call_operand.vmem [shape: bf16[32,96], index: 1, kind: input, shape index: {}]   ;;  %s8515_s0 = inlined_call_operand.vmem [shape: f32[8,2,32], index: 0, kind: input, shape index: {}]   ;;  %s8516_s2 = inlined_call_operand.vmem [shape: f32[1,96], index: 2, kind: input, shape index: {}]   ;;  %s8517_s3 = inlined_call_operand.vmem [shape: bf16[32,32], index: 3, kind: input, shape index: {}]   ;;  %s8518_s4 = inlined_call_operand.vmem [shape: f32[1,32], index: 4, kind: input, shape index: {}]   ;;  %s8519_s5 = inlined_call_operand.vmem [shape: f32[1,32], index: 5, kind: input, shape index: {}]   ;;  %s8520_s6 = inlined_call_operand.vmem [shape: f32[1,32], index: 6, kind: input, shape index: {}]   ;;  %s8521_s7 = inlined_call_operand.vmem [shape: f32[8,2,32], index: 7, kind: output, shape index: {}]  }
   0x1   :  { %6728 = vmatprep.subr.bf16.mxu0 %v7237_v0  ;;  %6736 = vmatprep.subr.bf16.mxu1 %v7237_v0  ;;  %v7097_v1 = vld [vmem:[%s8514_s1 + $0x8] sm:$0xff]   ;;  %v7099_v3 = vld [vmem:[%s8514_s1] sm:$0xff]   ;;  %vm77_vm3 = vcmask 1043459   ;;  %vm80_vm4 = vcmask 1044484   ;;  %vm83_vm5 = vcmask 1045509   ;;  %vm86_vm6 = vcmask 1046534  }
   0x2   :  { %v7098_v2 = vld [vmem:[%s8514_s1 + $0x8] sm:$0xff]   ;;  %6732 = vmatprep.mubr.msk.bf16.mxu0 %vm7238_vm1, %v7237_v0  ;;  %6740 = vmatprep.mubr.msk.bf16.mxu1 %vm7238_vm1, %v7237_v0  ;;  %v7100_v4 = vld [vmem:[%s8514_s1] sm:$0xff]   ;;  %vm89_vm7 = vcmask 1047559   ;;  %vm104_vm8 = vcmask 261120   ;;  %vm206_vm9 = vcmask 778240   ;;  %vm413_vm10 = vcmask 64512  }
   0x3   :  { %6729 = vmatpush3.bf16.msra.mxu0 %v7097_v1  ;;  %6737 = vmatpush3.bf16.msra.mxu1 %v7098_v2  ;;  %v27_v5 = vld [vmem:[%s8515_s0] sm:$0x1]  ;;  %v28_v6 = vld [vmem:[%s8515_s0 + $0x2] sm:$0x1]  ;;  %v29_v7 = vld [vmem:[%s8515_s0 + $0x4] sm:$0x1] }
   0x4   :  { %6730 = vmatprep.subr.bf16.mxu0 %v7237_v0  ;;  %6738 = vmatprep.subr.bf16.mxu1 %v7237_v0  ;;  %v30_v8 = vld [vmem:[%s8515_s0 + $0x6] sm:$0x1]  ;;  %v31_v9 = vld [vmem:[%s8515_s0 + $0x8] sm:$0x1]  ;;  %v32_v10 = vld [vmem:[%s8515_s0 + $0xa] sm:$0x1]  ;;  %v35_v11 = vpack.c.bf16 %v27_v5, %v27_v5  ;;  %v36_v12 = vpack.c.bf16 %v28_v6, %v28_v6  ;;  %v37_v13 = vpack.c.bf16 %v29_v7, %v29_v7 }
   0x5   :  { %v33_v14 = vld [vmem:[%s8515_s0 + $0xc] sm:$0x1]  ;;  %v34_v15 = vld [vmem:[%s8515_s0 + $0xe] sm:$0x1]  ;;  %v38_v16 = vpack.c.bf16 %v30_v8, %v30_v8  ;;  %v39_v17 = vpack.c.bf16 %v31_v9, %v31_v9  ;;  %v40_v18 = vpack.c.bf16 %v32_v10, %v32_v10  ;;  %v215_v23 = vld [vmem:[%s8515_s0 + $0x1] sm:$0x1] }
   0x6   :  { %v41_v19 = vpack.c.bf16 %v33_v14, %v33_v14  ;;  %v42_v20 = vpack.c.bf16 %v34_v15, %v34_v15  ;;  %v62_v21 = vunpack.c.l.b16 %v35_v11  ;;  %v63_v22 = vunpack.c.l.b16 %v36_v12  ;;  %v216_v28 = vld [vmem:[%s8515_s0 + $0x3] sm:$0x1]  ;;  %v217_v29 = vld [vmem:[%s8515_s0 + $0x5] sm:$0x1]  ;;  %v218_v30 = vld [vmem:[%s8515_s0 + $0x7] sm:$0x1] }
   0x7   :  { %6731 = vmatpush3.bf16.msra.mxu0 %v7099_v3  ;;  %6739 = vmatpush3.bf16.msra.mxu1 %v7100_v4  ;;  %v64_v24 = vunpack.c.l.b16 %v37_v13  ;;  %v65_v25 = vunpack.c.l.b16 %v38_v16  ;;  %v66_v26 = vunpack.c.l.b16 %v39_v17  ;;  %v67_v27 = vunpack.c.l.b16 %v40_v18  ;;  %v219_v34 = vld [vmem:[%s8515_s0 + $0x9] sm:$0x1]  ;;  %v220_v35 = vld [vmem:[%s8515_s0 + $0xb] sm:$0x1]  ;;  %v221_v40 = vld [vmem:[%s8515_s0 + $0xd] sm:$0x1] }
   0x8   :  { %6744 = vmatprep.subr.mxu0 %v7237_v0  ;;  %6749 = vmatprep.subr.mxu1 %v7237_v0  ;;  %v68_v31 = vunpack.c.l.b16 %v41_v19  ;;  %v69_v32 = vunpack.c.l.b16 %v42_v20  ;;  %v70_v33 = vrot.slane %v63_v22, 7  ;;  %v222_v44 = vld [vmem:[%s8515_s0 + $0xf] sm:$0x1]  ;;  %v223_v45 = vpack.c.bf16 %v215_v23, %v215_v23  ;;  %s7243_s20 = smov 120   ;;  %s7244_s21 = smov 56  }
   0x9   :  { %v73_v36 = vrot.slane %v64_v24, 6  ;;  %v76_v37 = vrot.slane %v65_v25, 5  ;;  %v79_v38 = vrot.slane %v66_v26, 4  ;;  %v82_v39 = vrot.slane %v67_v27, 3  ;;  %v6440_v25 = vld [vmem:[%s8516_s2] ss:$0 sm:$0xff] }
   0xa   :  { %v72_v41 = vsel %vm71_vm0, %v70_v33, %v62_v21  ;;  %v85_v42 = vrot.slane %v68_v31, 2  ;;  %v88_v43 = vrot.slane %v69_v32, 1  ;;  %v224_v47 = vpack.c.bf16 %v216_v28, %v216_v28  ;;  %s7240_s2 = smov 96   ;;  %s7245_s22 = smov 80  }
   0xb   :  { %v75_v46 = vsel %vm74_vm2, %v73_v36, %v72_v41  ;;  %v225_v48 = vpack.c.bf16 %v217_v29, %v217_v29  ;;  %v226_v49 = vpack.c.bf16 %v218_v30, %v218_v30  ;;  %v227_v51 = vpack.c.bf16 %v219_v34, %v219_v34  ;;  %s7246_s23 = smov 112   ;;  %s7247_s24 = smov 48  }
   0xc   :  { %v78_v50 = vsel %vm77_vm3, %v76_v37, %v75_v46  ;;  %v228_v52 = vpack.c.bf16 %v220_v35, %v220_v35  ;;  %v229_v53 = vpack.c.bf16 %v221_v40, %v221_v40  ;;  %v230_v55 = vpack.c.bf16 %v222_v44, %v222_v44  ;;  %s7248_s25 = smov 72   ;;  %s7249_s26 = smov 104  }
   0xd   :  { %v81_v54 = vsel %vm80_vm4, %v79_v38, %v78_v50  ;;  %v250_v56 = vunpack.c.l.b16 %v223_v45  ;;  %v251_v57 = vunpack.c.l.b16 %v224_v47  ;;  %v252_v59 = vunpack.c.l.b16 %v225_v48  ;;  %s7250_s27 = smov 40   ;;  %s7251_s28 = smov 8  }
   0xe   :  { %v84_v58 = vsel %vm83_vm5, %v82_v39, %v81_v54  ;;  %v253_v60 = vunpack.c.l.b16 %v226_v49  ;;  %v254_v61 = vunpack.c.l.b16 %v227_v51  ;;  %v255_v63 = vunpack.c.l.b16 %v228_v52  ;;  %s7252_s29 = smov 16   ;;  %s7253_s30 = smov 24  }
   0xf   :  { %v87_v62 = vsel %vm86_vm6, %v85_v42, %v84_v58  ;;  %v256_v1 = vunpack.c.l.b16 %v229_v53  ;;  %v257_v2 = vunpack.c.l.b16 %v230_v55  ;;  %v258_v4 = vrot.slane %v251_v57, 7 }
  0x10   :  { %v90_v3 = vsel %vm89_vm7, %v88_v43, %v87_v62  ;;  %v260_v5 = vrot.slane %v252_v59, 6  ;;  %v262_v6 = vrot.slane %v253_v60, 5  ;;  %v264_v8 = vrot.slane %v254_v61, 4 }
  0x11   :  { %v91_v7 = vpack.c.b16 %v90_v3, %v90_v3  ;;  %v259_v9 = vsel %vm71_vm0, %v258_v4, %v250_v56  ;;  %v266_v10 = vrot.slane %v255_v63, 3  ;;  %v268_v12 = vrot.slane %v256_v1, 2 }
  0x12   :  { %v261_v11 = vsel %vm74_vm2, %v260_v5, %v259_v9  ;;  %v270_v14 = vrot.slane %v257_v2, 1  ;;  %v7239_v20 = vmov 1966171168   ;;  %v153_v22 = vlaneseq }
  0x13   :  { %6733 = vmatmul.mubr.msk.bf16.vlgmr.msra.gmra.mxu0 %vm104_vm8, %v91_v7  ;;  %v263_v13 = vsel %vm77_vm3, %v262_v6, %v261_v11  ;;  %v151_v21 = vunpack.c.l.s4 %v7239_v20  ;;  %vm1130_vm11 = vcmask 1041408   ;;  %vm1035_vm12 = vcmask 9216  }
  0x14   :  { %6746 = vmatprep.mubr.msk.f32.mxu0 %vm7238_vm1, %v7237_v0  ;;  %v265_v15 = vsel %vm80_vm4, %v264_v8, %v263_v13  ;;  %v154_v24 = vshrl.u32 %v153_v22, 7  ;;  %vm1126_vm13 = vcmask 15360   ;;  %vm1742_vm14 = vcmask 58368  }
  0x15   :  { %v267_v16 = vsel %vm83_vm5, %v266_v10, %v265_v15  ;;  %v152_v23 = vunpack.c.0.s8 %v151_v21  ;;  %vm3143_vm15 = vcmask 123968  }
  0x16   :  { %v269_v17 = vsel %vm86_vm6, %v268_v12, %v267_v16 }
  0x17   :  { %v271_v18 = vsel %vm89_vm7, %v270_v14, %v269_v17  ;;  %v7387_v26 = vsub.s32 %v152_v23, %v154_v24 }
  0x18   :  { %v272_v19 = vpack.c.b16 %v271_v18, %v271_v18 }
  0x1a   :  { %6741 = vmatmul.mubr.msk.bf16.vlgmr.msra.gmra.mxu1 %vm104_vm8, %v272_v19 }
  0x1b   :  { %6751 = vmatprep.mubr.msk.f32.mxu1 %vm7238_vm1, %v7237_v0 }
  0xd3   :  { %v142_v27 = vpop.f32.mrf.mxu0 }
  0xd4   :  { %v143_v28 = vadd.f32 %v6440_v25, %v142_v27 }
  0xd5   :  { %v6734_v29 = vpop.f32.mrf.mxu0 }
  0xd6   :  { %v149_v30 = vcombine.high %v143_v28, %v143_v28  ;;  %v156_v31 = vrot.slane %v143_v28, %v7387_v26 }
  0xd7   :  { %v145_v32 = vpop.f32.mrf.mxu0 }
  0xd8   :  { %v163_v33 = vrot.slane %v149_v30, %v7387_v26  ;;  %v164_v34 = vcombine.high %v156_v31, %v156_v31  ;;  %v172_v35 = vrot.slane %v156_v31, %v7387_v26 }
  0xd9   :  { %v6735_v36 = vpop.f32.mrf.mxu0 }
  0xda   :  { %v165_v37 = vcombine.high %v163_v33, %v163_v33  ;;  %v179_v38 = vrot.slane %v163_v33, %v7387_v26  ;;  %v186_v39 = vrot.slane %v164_v34, %v7387_v26  ;;  %v194_v40 = vcombine.high %v172_v35, %v172_v35  ;;  %207 = vst.msk [vmem:[#allocation2] sm:$0x1] %vm206_vm9, %v172_v35  ;;  %v322_v41 = vpop.f32.mrf.mxu1 }
  0xdb   :  { %v323_v45 = vadd.f32 %v6440_v25, %v322_v41 }
  0xdc   :  { %v193_v42 = vrot.slane %v165_v37, %v7387_v26  ;;  %v195_v43 = vcombine.high %v179_v38, %v179_v38  ;;  %v196_v44 = vcombine.high %v186_v39, %v186_v39  ;;  %208 = vst.msk [vmem:[#allocation2 + $0x2] sm:$0x1] %vm206_vm9, %v186_v39  ;;  %209 = vst.msk [vmem:[#allocation2 + $0x4] sm:$0x1] %vm206_vm9, %v194_v40  ;;  %v6742_v46 = vpop.f32.mrf.mxu1 }
  0xdd   :  { %211 = vst.msk [vmem:[#allocation2 + $0x8] sm:$0x1] %vm206_vm9, %v179_v38  ;;  %v329_v48 = vcombine.high %v323_v45, %v323_v45  ;;  %v336_v49 = vrot.slane %v323_v45, %v7387_v26 }
  0xde   :  { %v197_v47 = vcombine.high %v193_v42, %v193_v42  ;;  %210 = vst.msk [vmem:[#allocation2 + $0x6] sm:$0x1] %vm206_vm9, %v196_v44  ;;  %212 = vst.msk [vmem:[#allocation2 + $0xa] sm:$0x1] %vm206_vm9, %v193_v42  ;;  %v325_v50 = vpop.f32.mrf.mxu1 }
  0xdf   :  { %213 = vst.msk [vmem:[#allocation2 + $0xc] sm:$0x1] %vm206_vm9, %v195_v43  ;;  %v343_v51 = vrot.slane %v329_v48, %v7387_v26  ;;  %v344_v52 = vcombine.high %v336_v49, %v336_v49  ;;  %v352_v53 = vrot.slane %v336_v49, %v7387_v26 }
  0xe0   :  { %214 = vst.msk [vmem:[#allocation2 + $0xe] sm:$0x1] %vm206_vm9, %v197_v47  ;;  %v6743_v54 = vpop.f32.mrf.mxu1 }
  0xe1   :  { %v345_v55 = vcombine.high %v343_v51, %v343_v51  ;;  %v359_v56 = vrot.slane %v343_v51, %v7387_v26  ;;  %v366_v57 = vrot.slane %v344_v52, %v7387_v26  ;;  %v374_v58 = vcombine.high %v352_v53, %v352_v53  ;;  %386 = vst.msk [vmem:[#allocation2 + $0x1] sm:$0x1] %vm206_vm9, %v352_v53 }
  0xe3   :  { %v373_v59 = vrot.slane %v345_v55, %v7387_v26  ;;  %v375_v60 = vcombine.high %v359_v56, %v359_v56  ;;  %v376_v61 = vcombine.high %v366_v57, %v366_v57  ;;  %387 = vst.msk [vmem:[#allocation2 + $0x3] sm:$0x1] %vm206_vm9, %v366_v57  ;;  %388 = vst.msk [vmem:[#allocation2 + $0x5] sm:$0x1] %vm206_vm9, %v374_v58 }
  0xe4   :  { %390 = vst.msk [vmem:[#allocation2 + $0x9] sm:$0x1] %vm206_vm9, %v359_v56 }
  0xe5   :  { %v377_v62 = vcombine.high %v373_v59, %v373_v59  ;;  %389 = vst.msk [vmem:[#allocation2 + $0x7] sm:$0x1] %vm206_vm9, %v376_v61  ;;  %391 = vst.msk [vmem:[#allocation2 + $0xb] sm:$0x1] %vm206_vm9, %v373_v59 }
  0xe6   :  { %392 = vst.msk [vmem:[#allocation2 + $0xd] sm:$0x1] %vm206_vm9, %v375_v60 }
  0xe7   :  { %393 = vst.msk [vmem:[#allocation2 + $0xf] sm:$0x1] %vm206_vm9, %v377_v62  ;;  %vm4544_vm9 = vcmask 189568  }
  0xe8   :  { %v394_v63 = vld [vmem:[#allocation2] sm:$0x3] }
  0xe9   :  { %411 = vrot.lane.b32.xlu0 %v394_v63, %s7240_s2  ;;  %v402_v9 = vmul.f32 0.35355338, %v394_v63  ;;  %v7516_v52 = vld [vmem:[#allocation2] sm:$0x3] }
  0xea   :  { %v7417_v1 = vld [vmem:[#allocation2 + $0x4] sm:$0x3]  ;;  %v7420_v2 = vld [vmem:[#allocation2 + $0x2] sm:$0x3]  ;;  %v1759_v54 = vmul.f32 0.35355338, %v7516_v52 }
  0xeb   :  { %568 = vrot.lane.b32.xlu1 %v7417_v1, %s7240_s2  ;;  %v7426_v4 = vld [vmem:[#allocation2 + $0x8] sm:$0x3]  ;;  %v404_v12 = vmul.f32 0.35355338, %v7417_v1  ;;  %v403_v13 = vmul.f32 0.35355338, %v7420_v2 }
  0xec   :  { %v7423_v3 = vld [vmem:[#allocation2 + $0x6] sm:$0x3]  ;;  %v7429_v5 = vld [vmem:[#allocation2 + $0xa] sm:$0x3]  ;;  %v406_v17 = vmul.f32 0.35355338, %v7426_v4 }
  0xed   :  { %490 = vrot.lane.b32.xlu0 %v7420_v2, %s7240_s2  ;;  %v7432_v6 = vld [vmem:[#allocation2 + $0xc] sm:$0x3]  ;;  %v405_v16 = vmul.f32 0.35355338, %v7423_v3  ;;  %v407_v20 = vmul.f32 0.35355338, %v7429_v5 }
  0xee   :  { %v7435_v7 = vld [vmem:[#allocation2 + $0xe] sm:$0x3]  ;;  %v408_v21 = vmul.f32 0.35355338, %v7432_v6  ;;  %v7508_v50 = vld [vmem:[#allocation2 + $0x2] sm:$0x3] }
  0xef   :  { %646 = vrot.lane.b32.xlu1 %v7423_v3, %s7240_s2  ;;  %v409_v23 = vmul.f32 0.35355338, %v7435_v7  ;;  %v1760_v51 = vmul.f32 0.35355338, %v7508_v50  ;;  %v7520_v53 = vld [vmem:[#allocation2 + $0x6] sm:$0x3] }
  0xf0   :  { %v1762_v55 = vmul.f32 0.35355338, %v7520_v53  ;;  %v7528_v56 = vld [vmem:[#allocation2 + $0x4] sm:$0x3] }
  0xf1   :  { %724 = vrot.lane.b32.xlu0 %v7426_v4, %s7240_s2  ;;  %v1761_v57 = vmul.f32 0.35355338, %v7528_v56 }
  0xf3   :  { %802 = vrot.lane.b32.xlu1 %v7429_v5, %s7240_s2 }
  0xf5   :  { %880 = vrot.lane.b32.xlu0 %v7432_v6, %s7240_s2 }
  0xf7   :  { %958 = vrot.lane.b32.xlu1 %v7435_v7, %s7240_s2 }
  0xfb   :  { %1124 = vrot.lane.b32.xlu1 %v394_v63, %s7241_s18 }
 0x15b   :  { %v412_v8 = vpop.permute.xlu0 %411 }
 0x15c   :  { %6745 = vmatpush3.xpose.msk.msra.mxu0 %vm413_vm10, %v412_v8 }
 0x15d   :  { %v569_v10 = vpop.permute.xlu1 %568  ;;  %6754 = vmatprep.subr.mxu0 %v7237_v0 }
 0x15f   :  { %6747 = vmatmul.mubr.msk.f32.vlgmr.msra.gmra.mxu0 %vm413_vm10, %v402_v9  ;;  %v491_v11 = vpop.permute.xlu0 %490 }
 0x160   :  { %6750 = vmatpush3.xpose.msk.msra.mxu1 %vm413_vm10, %v491_v11  ;;  %6755 = vmatpush3.xpose.msk.msra.mxu0 %vm413_vm10, %v569_v10 }
 0x161   :  { %v647_v14 = vpop.permute.xlu1 %646  ;;  %6756 = vmatprep.mubr.msk.f32.mxu0 %vm7238_vm1, %v7237_v0  ;;  %6759 = vmatprep.subr.mxu1 %v7237_v0 }
 0x162   :  { %6764 = vmatprep.subr.mxu0 %v7237_v0 }
 0x163   :  { %6752 = vmatmul.mubr.msk.f32.vlgmr.msra.gmra.mxu1 %vm413_vm10, %v403_v13  ;;  %6757 = vmatmul.mubr.msk.f32.vlgmr.msra.gmra.mxu0 %vm413_vm10, %v404_v12  ;;  %v725_v15 = vpop.permute.xlu0 %724 }
 0x164   :  { %6760 = vmatpush3.xpose.msk.msra.mxu1 %vm413_vm10, %v647_v14  ;;  %6765 = vmatpush3.xpose.msk.msra.mxu0 %vm413_vm10, %v725_v15 }
 0x165   :  { %v803_v18 = vpop.permute.xlu1 %802  ;;  %6761 = vmatprep.mubr.msk.f32.mxu1 %vm7238_vm1, %v7237_v0  ;;  %6766 = vmatprep.mubr.msk.f32.mxu0 %vm7238_vm1, %v7237_v0 }
 0x166   :  { %6769 = vmatprep.subr.mxu1 %v7237_v0  ;;  %6774 = vmatprep.subr.mxu0 %v7237_v0 }
 0x167   :  { %6762 = vmatmul.mubr.msk.f32.vlgmr.msra.gmra.mxu1 %vm413_vm10, %v405_v16  ;;  %6767 = vmatmul.mubr.msk.f32.vlgmr.msra.gmra.mxu0 %vm413_vm10, %v406_v17  ;;  %v881_v19 = vpop.permute.xlu0 %880 }
 0x168   :  { %6770 = vmatpush3.xpose.msk.msra.mxu1 %vm413_vm10, %v803_v18  ;;  %6775 = vmatpush3.xpose.msk.msra.mxu0 %vm413_vm10, %v881_v19 }
 0x169   :  { %v959_v22 = vpop.permute.xlu1 %958  ;;  %6771 = vmatprep.mubr.msk.f32.mxu1 %vm7238_vm1, %v7237_v0  ;;  %6776 = vmatprep.mubr.msk.f32.mxu0 %vm7238_vm1, %v7237_v0 }
 0x16a   :  { %6779 = vmatprep.subr.mxu1 %v7237_v0  ;;  %6784 = vmatprep.subr.mxu0 %v7237_v0 }
 0x16b   :  { %6772 = vmatmul.mubr.msk.f32.vlgmr.msra.gmra.mxu1 %vm413_vm10, %v407_v20  ;;  %6777 = vmatmul.mubr.msk.f32.vlgmr.msra.gmra.mxu0 %vm413_vm10, %v408_v21 }
 0x16c   :  { %6780 = vmatpush3.xpose.msk.msra.mxu1 %vm413_vm10, %v959_v22  ;;  %6781 = vmatprep.mubr.msk.f32.mxu1 %vm7238_vm1, %v7237_v0 }
 0x16d   :  { %v1125_v24 = vpop.permute.xlu1 %1124  ;;  %6789 = vmatprep.subr.mxu1 %v7237_v0  ;;  %6786 = vmatprep.mubr.msk.f32.mxu0 %vm7238_vm1, %v7237_v0 }
 0x16e   :  { %6785 = vmatpush3.msk.msra.mxu0 %vm1130_vm11, %v1125_v24 }
 0x16f   :  { %6782 = vmatmul.mubr.msk.f32.vlgmr.msra.gmra.mxu1 %vm413_vm10, %v409_v23  ;;  %6794 = vmatprep.subr.mxu0 %v7237_v0 }
 0x170   :  { %6791 = vmatprep.mubr.msk.f32.mxu1 %vm7238_vm1, %v7237_v0 }
 0x21f   :  { %v485_v25 = vpop.f32.mrf.mxu0 }
 0x220   :  { %v1036_v27 = vsel %vm1035_vm12, %v485_v25, -inf }
 0x221   :  { %1037 = vmax.xlane.f32.xlu0 %v1036_v27  ;;  %v6748_v28 = vpop.f32.mrf.mxu0 }
 0x223   :  { %v563_v29 = vpop.f32.mrf.mxu1  ;;  %v641_v30 = vpop.f32.mrf.mxu0 }
 0x224   :  { %v1039_v31 = vsel %vm1035_vm12, %v563_v29, -inf  ;;  %v1042_v32 = vsel %vm1035_vm12, %v641_v30, -inf }
 0x225   :  { %v6753_v33 = vpop.f32.mrf.mxu1  ;;  %1040 = vmax.xlane.f32.xlu1 %v1039_v31  ;;  %1043 = vmax.xlane.f32.xlu0 %v1042_v32  ;;  %v6758_v34 = vpop.f32.mrf.mxu0 }
 0x227   :  { %v719_v35 = vpop.f32.mrf.mxu1  ;;  %v797_v36 = vpop.f32.mrf.mxu0 }
 0x228   :  { %v1045_v37 = vsel %vm1035_vm12, %v719_v35, -inf  ;;  %v1048_v38 = vsel %vm1035_vm12, %v797_v36, -inf }
 0x229   :  { %v6763_v39 = vpop.f32.mrf.mxu1  ;;  %1046 = vmax.xlane.f32.xlu0 %v1045_v37  ;;  %1049 = vmax.xlane.f32.xlu1 %v1048_v38  ;;  %v6768_v40 = vpop.f32.mrf.mxu0  ;;  %v7568_v37 = vld [vmem:[#allocation2 + $0xa] sm:$0x3] }
 0x22a   :  { %v1764_v38 = vmul.f32 0.35355338, %v7568_v37  ;;  %v7574_v39 = vld [vmem:[#allocation2 + $0xe] sm:$0x3]  ;;  %v7576_v40 = vld [vmem:[#allocation2 + $0x8] sm:$0x3] }
 0x22b   :  { %v875_v41 = vpop.f32.mrf.mxu1  ;;  %v953_v42 = vpop.f32.mrf.mxu0 }
 0x22c   :  { %v1051_v43 = vsel %vm1035_vm12, %v875_v41, -inf  ;;  %v1054_v44 = vsel %vm1035_vm12, %v953_v42, -inf }
 0x22d   :  { %v6773_v45 = vpop.f32.mrf.mxu1  ;;  %1052 = vmax.xlane.f32.xlu0 %v1051_v43  ;;  %1055 = vmax.xlane.f32.xlu1 %v1054_v44  ;;  %v6778_v46 = vpop.f32.mrf.mxu0  ;;  %v7586_v43 = vld [vmem:[#allocation2 + $0xc] sm:$0x3] }
 0x22e   :  { %v1765_v44 = vmul.f32 0.35355338, %v7586_v43 }
 0x22f   :  { %v1031_v47 = vpop.f32.mrf.mxu1 }
 0x230   :  { %v1057_v48 = vsel %vm1035_vm12, %v1031_v47, -inf }
 0x231   :  { %v6783_v49 = vpop.f32.mrf.mxu1  ;;  %1058 = vmax.xlane.f32.xlu0 %v1057_v48 }
 0x23e   :  { %1280 = vrot.lane.b32.xlu1 %v7417_v1, %s7241_s18 }
 0x242   :  { %1357 = vrot.lane.b32.xlu1 %v7423_v3, %s7241_s18 }
 0x246   :  { %1511 = vrot.lane.b32.xlu1 %v7429_v5, %s7241_s18 }
 0x247   :  { %1203 = vrot.lane.b32.xlu0 %v7420_v2, %s7241_s18 }
 0x24a   :  { %1665 = vrot.lane.b32.xlu1 %v7435_v7, %s7241_s18 }
 0x24b   :  { %1434 = vrot.lane.b32.xlu0 %v7426_v4, %s7241_s18 }
 0x24e   :  { %1851 = vrot.lane.b32.xlu1 %v7508_v50, %s7242_s19 }
 0x24f   :  { %1588 = vrot.lane.b32.xlu0 %v7432_v6, %s7241_s18 }
 0x252   :  { %1848 = vrot.lane.b32.xlu1 %v1760_v51, %s7243_s20 }
 0x253   :  { %1771 = vrot.lane.b32.xlu0 %v7516_v52, %s7242_s19 }
 0x256   :  { %2011 = vrot.lane.b32.xlu1 %v7520_v53, %s7242_s19 }
 0x257   :  { %1768 = vrot.lane.b32.xlu0 %v1759_v54, %s7243_s20 }
 0x25a   :  { %2008 = vrot.lane.b32.xlu1 %v1762_v55, %s7243_s20 }
 0x25b   :  { %1931 = vrot.lane.b32.xlu0 %v7528_v56, %s7242_s19 }
 0x25f   :  { %1928 = vrot.lane.b32.xlu0 %v1761_v57, %s7243_s20 }
 0x2aa   :  { %v1038_v58 = vpop.xlane.xlu0 %1037 }
 0x2ab   :  { %v1060_v59 = vsub.f32 %v485_v25, %v1038_v58 }
 0x2ad   :  { %v1068_v60 = vmul.f32 1.442695, %v1060_v59 }
 0x2ae   :  { %v1041_v61 = vpop.xlane.xlu1 %1040  ;;  %v1044_v62 = vpop.xlane.xlu0 %1043 }
 0x2af   :  { %7105 = vpow2.f32 %v1068_v60  ;;  %v1061_v63 = vsub.f32 %v563_v29, %v1041_v61  ;;  %v1062_v1 = vsub.f32 %v641_v30, %v1044_v62 }
 0x2b1   :  { %v1070_v2 = vmul.f32 1.442695, %v1061_v63  ;;  %v1072_v3 = vmul.f32 1.442695, %v1062_v1 }
 0x2b2   :  { %v1047_v4 = vpop.xlane.xlu0 %1046  ;;  %v1050_v5 = vpop.xlane.xlu1 %1049 }
 0x2b3   :  { %7107 = vpow2.f32 %v1070_v2  ;;  %v1063_v6 = vsub.f32 %v719_v35, %v1047_v4  ;;  %v1064_v7 = vsub.f32 %v797_v36, %v1050_v5 }
 0x2b4   :  { %7109 = vpow2.f32 %v1072_v3 }
 0x2b5   :  { %v1074_v8 = vmul.f32 1.442695, %v1063_v6  ;;  %v1076_v9 = vmul.f32 1.442695, %v1064_v7 }
 0x2b6   :  { %v1053_v10 = vpop.xlane.xlu0 %1052  ;;  %v1056_v11 = vpop.xlane.xlu1 %1055 }
 0x2b7   :  { %7111 = vpow2.f32 %v1074_v8  ;;  %v1065_v12 = vsub.f32 %v875_v41, %v1053_v10  ;;  %v1066_v13 = vsub.f32 %v953_v42, %v1056_v11  ;;  %v1766_v41 = vmul.f32 0.35355338, %v7574_v39 }
 0x2b8   :  { %7113 = vpow2.f32 %v1076_v9  ;;  %v1763_v42 = vmul.f32 0.35355338, %v7576_v40 }
 0x2b9   :  { %v1078_v14 = vmul.f32 1.442695, %v1065_v12  ;;  %v1080_v15 = vmul.f32 1.442695, %v1066_v13 }
 0x2ba   :  { %v1059_v16 = vpop.xlane.xlu0 %1058  ;;  %v1281_v45 = vpop.permute.xlu1 %1280 }
 0x2bb   :  { %7115 = vpow2.f32 %v1078_v14  ;;  %v1067_v17 = vsub.f32 %v1031_v47, %v1059_v16 }
 0x2bc   :  { %v7534_v18 = vpop.eup %7105  ;;  %7117 = vpow2.f32 %v1080_v15 }
 0x2bd   :  { %v1082_v19 = vmul.f32 1.442695, %v1067_v17  ;;  %v1084_v20 = vsel %vm1035_vm12, %v7534_v18, 0.0 }
 0x2be   :  { %v1204_v21 = vpop.permute.xlu0 %1203  ;;  %1085 = vadd.xlane.f32.xlu1 %v1084_v20  ;;  %v1358_v46 = vpop.permute.xlu1 %1357 }
 0x2bf   :  { %7119 = vpow2.f32 %v1082_v19  ;;  %6790 = vmatpush3.msk.msra.mxu1 %vm1130_vm11, %v1204_v21 }
 0x2c0   :  { %v7539_v22 = vpop.eup %7107  ;;  %6799 = vmatprep.subr.mxu1 %v7237_v0 }
 0x2c1   :  { %v7542_v23 = vpop.eup %7109  ;;  %v1087_v24 = vsel %vm1035_vm12, %v7539_v22, 0.0 }
 0x2c2   :  { %1088 = vadd.xlane.f32.xlu0 %v1087_v24  ;;  %v1090_v25 = vsel %vm1035_vm12, %v7542_v23, 0.0  ;;  %v1512_v47 = vpop.permute.xlu1 %1511  ;;  %v1435_v48 = vpop.permute.xlu0 %1434 }
 0x2c3   :  { %1091 = vadd.xlane.f32.xlu1 %v1090_v25 }
 0x2c4   :  { %v7548_v27 = vpop.eup %7111 }
 0x2c5   :  { %v7550_v28 = vpop.eup %7113  ;;  %v1093_v29 = vsel %vm1035_vm12, %v7548_v27, 0.0 }
 0x2c6   :  { %1094 = vadd.xlane.f32.xlu0 %v1093_v29  ;;  %v1096_v30 = vsel %vm1035_vm12, %v7550_v28, 0.0  ;;  %v7594_v49 = vpop.permute.xlu1 %1665  ;;  %v1589_v51 = vpop.permute.xlu0 %1588 }
 0x2c7   :  { %1097 = vadd.xlane.f32.xlu1 %v1096_v30 }
 0x2c8   :  { %v7556_v31 = vpop.eup %7115 }
 0x2c9   :  { %v7558_v32 = vpop.eup %7117  ;;  %v1099_v33 = vsel %vm1035_vm12, %v7556_v31, 0.0 }
 0x2ca   :  { %1100 = vadd.xlane.f32.xlu0 %v1099_v33  ;;  %v1102_v34 = vsel %vm1035_vm12, %v7558_v32, 0.0  ;;  %v7596_v54 = vpop.permute.xlu1 %1851  ;;  %v7598_v55 = vpop.permute.xlu0 %1771 }
 0x2cb   :  { %1103 = vadd.xlane.f32.xlu1 %v1102_v34 }
 0x2cc   :  { %v7564_v35 = vpop.eup %7119 }
 0x2cd   :  { %v1105_v36 = vsel %vm1035_vm12, %v7564_v35, 0.0 }
 0x2ce   :  { %1106 = vadd.xlane.f32.xlu0 %v1105_v36  ;;  %v7600_v57 = vpop.permute.xlu1 %1848 }
 0x2d2   :  { %v7604_v58 = vpop.permute.xlu1 %2011 }
 0x2d6   :  { %v7608_v60 = vpop.permute.xlu1 %2008 }
 0x2dc   :  { %2171 = vrot.lane.b32.xlu1 %v7568_v37, %s7242_s19 }
 0x2e0   :  { %2168 = vrot.lane.b32.xlu1 %v1764_v38, %s7243_s20 }
 0x2e4   :  { %2331 = vrot.lane.b32.xlu1 %v7574_v39, %s7242_s19  ;;  %2091 = vrot.lane.b32.xlu0 %v7576_v40, %s7242_s19 }
 0x2e8   :  { %2328 = vrot.lane.b32.xlu1 %v1766_v41, %s7243_s20  ;;  %2088 = vrot.lane.b32.xlu0 %v1763_v42, %s7243_s20 }
 0x2ec   :  { %2495 = vrot.lane.b32.xlu1 %v7516_v52, %s7244_s21  ;;  %2251 = vrot.lane.b32.xlu0 %v7586_v43, %s7242_s19  ;;  %v7602_v52 = vpop.permute.xlu0 %1768 }
 0x2f0   :  { %2248 = vrot.lane.b32.xlu0 %v1765_v44, %s7243_s20  ;;  %v7606_v59 = vpop.permute.xlu0 %1931 }
 0x2f4   :  { %v7610_v61 = vpop.permute.xlu0 %1928 }
 0x347   :  { %v1086_v62 = vpop.xlane.xlu1 %1085 }
 0x348   :  { %7121 = vrcp.f32 %v1086_v62 }
 0x34b   :  { %v1089_v63 = vpop.xlane.xlu0 %1088 }
 0x34c   :  { %7123 = vrcp.f32 %v1089_v63  ;;  %v1092_v1 = vpop.xlane.xlu1 %1091 }
 0x34d   :  { %7125 = vrcp.f32 %v1092_v1 }
 0x34f   :  { %v1095_v2 = vpop.xlane.xlu0 %1094 }
 0x350   :  { %7127 = vrcp.f32 %v1095_v2  ;;  %v1098_v3 = vpop.xlane.xlu1 %1097 }
 0x351   :  { %7129 = vrcp.f32 %v1098_v3 }
 0x353   :  { %v1101_v4 = vpop.xlane.xlu0 %1100 }
 0x354   :  { %7131 = vrcp.f32 %v1101_v4  ;;  %v1104_v5 = vpop.xlane.xlu1 %1103 }
 0x355   :  { %v7122_v6 = vpop.eup %7121  ;;  %7133 = vrcp.f32 %v1104_v5 }
 0x356   :  { %v1116_v7 = vmul.f32 %v7122_v6, %v7534_v18 }
 0x357   :  { %v1107_v8 = vpop.xlane.xlu0 %1106 }
 0x358   :  { %7135 = vrcp.f32 %v1107_v8  ;;  %6787 = vmatmul.mubr.msk.f32.vlgmr.msra.gmra.mxu0 %vm1126_vm13, %v1116_v7  ;;  %v2172_v14 = vpop.permute.xlu1 %2171 }
 0x359   :  { %v7124_v9 = vpop.eup %7123  ;;  %6795 = vmatpush3.msk.msra.mxu0 %vm1130_vm11, %v1281_v45  ;;  %6796 = vmatprep.mubr.msk.f32.mxu0 %vm7238_vm1, %v7237_v0 }
 0x35a   :  { %v7126_v10 = vpop.eup %7125  ;;  %6804 = vmatprep.subr.mxu0 %v7237_v0  ;;  %v1117_v11 = vmul.f32 %v7124_v9, %v7539_v22 }
 0x35b   :  { %v1118_v12 = vmul.f32 %v7126_v10, %v7542_v23  ;;  %v2092_v20 = vpop.permute.xlu0 %2091 }
 0x35c   :  { %6792 = vmatmul.mubr.msk.f32.vlgmr.msra.gmra.mxu1 %vm1126_vm13, %v1117_v11  ;;  %v2169_v22 = vpop.permute.xlu1 %2168 }
 0x35d   :  { %v7128_v13 = vpop.eup %7127  ;;  %6797 = vmatmul.mubr.msk.f32.vlgmr.msra.gmra.mxu0 %vm1126_vm13, %v1118_v12  ;;  %6800 = vmatpush3.msk.msra.mxu1 %vm1130_vm11, %v1358_v46 }
 0x35e   :  { %v7130_v15 = vpop.eup %7129  ;;  %6805 = vmatpush3.msk.msra.mxu0 %vm1130_vm11, %v1435_v48  ;;  %6801 = vmatprep.mubr.msk.f32.mxu1 %vm7238_vm1, %v7237_v0  ;;  %v1119_v16 = vmul.f32 %v7128_v13, %v7548_v27 }
 0x35f   :  { %6806 = vmatprep.mubr.msk.f32.mxu0 %vm7238_vm1, %v7237_v0  ;;  %6809 = vmatprep.subr.mxu1 %v7237_v0  ;;  %v1120_v17 = vmul.f32 %v7130_v15, %v7550_v28  ;;  %v2089_v27 = vpop.permute.xlu0 %2088 }
 0x360   :  { %6814 = vmatprep.subr.mxu0 %v7237_v0  ;;  %6802 = vmatmul.mubr.msk.f32.vlgmr.msra.gmra.mxu1 %vm1126_vm13, %v1119_v16  ;;  %v2332_v28 = vpop.permute.xlu1 %2331 }
 0x361   :  { %v7132_v18 = vpop.eup %7131  ;;  %6807 = vmatmul.mubr.msk.f32.vlgmr.msra.gmra.mxu0 %vm1126_vm13, %v1120_v17  ;;  %6810 = vmatpush3.msk.msra.mxu1 %vm1130_vm11, %v1512_v47  ;;  %v7735_v17 = vld [vmem:[#allocation2 + $0x2] sm:$0x3] }
 0x362   :  { %v7134_v19 = vpop.eup %7133  ;;  %6815 = vmatpush3.msk.msra.mxu0 %vm1130_vm11, %v1589_v51  ;;  %6811 = vmatprep.mubr.msk.f32.mxu1 %vm7238_vm1, %v7237_v0  ;;  %v1121_v21 = vmul.f32 %v7132_v18, %v7556_v31 }
 0x363   :  { %6816 = vmatprep.mubr.msk.f32.mxu0 %vm7238_vm1, %v7237_v0  ;;  %6819 = vmatprep.subr.mxu1 %v7237_v0  ;;  %v1122_v23 = vmul.f32 %v7134_v19, %v7558_v32  ;;  %v2252_v29 = vpop.permute.xlu0 %2251 }
 0x364   :  { %6824 = vmatprep.subr.mxu0 %v7237_v0  ;;  %6812 = vmatmul.mubr.msk.f32.vlgmr.msra.gmra.mxu1 %vm1126_vm13, %v1121_v21  ;;  %v2329_v30 = vpop.permute.xlu1 %2328 }
 0x365   :  { %v7136_v24 = vpop.eup %7135  ;;  %6817 = vmatmul.mubr.msk.f32.vlgmr.msra.gmra.mxu0 %vm1126_vm13, %v1122_v23  ;;  %6820 = vmatpush3.msk.msra.mxu1 %vm1130_vm11, %v7594_v49 }
 0x366   :  { %6825 = vmatpush3.xpose.msk.msra.mxu0 %vm413_vm10, %v7598_v55  ;;  %6821 = vmatprep.mubr.msk.f32.mxu1 %vm7238_vm1, %v7237_v0  ;;  %v1123_v25 = vmul.f32 %v7136_v24, %v7564_v35 }
 0x367   :  { %6826 = vmatprep.mubr.msk.f32.mxu0 %vm7238_vm1, %v7237_v0  ;;  %6829 = vmatprep.subr.mxu1 %v7237_v0  ;;  %v2249_v31 = vpop.permute.xlu0 %2248 }
 0x368   :  { %6834 = vmatprep.subr.mxu0 %v7237_v0  ;;  %6822 = vmatmul.mubr.msk.f32.vlgmr.msra.gmra.mxu1 %vm1126_vm13, %v1123_v25  ;;  %v2496_v32 = vpop.permute.xlu1 %2495 }
 0x369   :  { %6827 = vmatmul.mubr.msk.f32.vlgmr.msra.gmra.mxu0 %vm413_vm10, %v7602_v52  ;;  %6830 = vmatpush3.xpose.msk.msra.mxu1 %vm413_vm10, %v7596_v54 }
 0x36a   :  { %6835 = vmatpush3.xpose.msk.msra.mxu0 %vm413_vm10, %v7606_v59  ;;  %6831 = vmatprep.mubr.msk.f32.mxu1 %vm7238_vm1, %v7237_v0 }
 0x36b   :  { %6836 = vmatprep.mubr.msk.f32.mxu0 %vm7238_vm1, %v7237_v0  ;;  %6839 = vmatprep.subr.mxu1 %v7237_v0 }
 0x36c   :  { %6844 = vmatprep.subr.mxu0 %v7237_v0  ;;  %6832 = vmatmul.mubr.msk.f32.vlgmr.msra.gmra.mxu1 %vm413_vm10, %v7600_v57 }
 0x36d   :  { %6837 = vmatmul.mubr.msk.f32.vlgmr.msra.gmra.mxu0 %vm413_vm10, %v7610_v61  ;;  %6840 = vmatpush3.xpose.msk.msra.mxu1 %vm413_vm10, %v7604_v58 }
 0x36e   :  { %6845 = vmatpush3.xpose.msk.msra.mxu0 %vm413_vm10, %v2092_v20  ;;  %6841 = vmatprep.mubr.msk.f32.mxu1 %vm7238_vm1, %v7237_v0 }
 0x36f   :  { %6846 = vmatprep.mubr.msk.f32.mxu0 %vm7238_vm1, %v7237_v0  ;;  %6849 = vmatprep.subr.mxu1 %v7237_v0 }
 0x370   :  { %6854 = vmatprep.subr.mxu0 %v7237_v0  ;;  %6842 = vmatmul.mubr.msk.f32.vlgmr.msra.gmra.mxu1 %vm413_vm10, %v7608_v60 }
 0x371   :  { %6847 = vmatmul.mubr.msk.f32.vlgmr.msra.gmra.mxu0 %vm413_vm10, %v2089_v27  ;;  %6850 = vmatpush3.xpose.msk.msra.mxu1 %vm413_vm10, %v2172_v14 }
 0x372   :  { %6855 = vmatpush3.xpose.msk.msra.mxu0 %vm413_vm10, %v2252_v29  ;;  %6851 = vmatprep.mubr.msk.f32.mxu1 %vm7238_vm1, %v7237_v0 }
 0x373   :  { %6856 = vmatprep.mubr.msk.f32.mxu0 %vm7238_vm1, %v7237_v0  ;;  %6859 = vmatprep.subr.mxu1 %v7237_v0 }
 0x374   :  { %6864 = vmatprep.subr.mxu0 %v7237_v0  ;;  %6852 = vmatmul.mubr.msk.f32.vlgmr.msra.gmra.mxu1 %vm413_vm10, %v2169_v22 }
 0x375   :  { %6857 = vmatmul.mubr.msk.f32.vlgmr.msra.gmra.mxu0 %vm413_vm10, %v2249_v31  ;;  %6860 = vmatpush3.xpose.msk.msra.mxu1 %vm413_vm10, %v2332_v28 }
 0x376   :  { %6865 = vmatpush3.msk.msra.mxu0 %vm1130_vm11, %v2496_v32  ;;  %6861 = vmatprep.mubr.msk.f32.mxu1 %vm7238_vm1, %v7237_v0 }
 0x377   :  { %6869 = vmatprep.subr.mxu1 %v7237_v0  ;;  %6866 = vmatprep.mubr.msk.f32.mxu0 %vm7238_vm1, %v7237_v0 }
 0x378   :  { %6862 = vmatmul.mubr.msk.f32.vlgmr.msra.gmra.mxu1 %vm413_vm10, %v2329_v30  ;;  %6874 = vmatprep.subr.mxu0 %v7237_v0 }
 0x379   :  { %6871 = vmatprep.mubr.msk.f32.mxu1 %vm7238_vm1, %v7237_v0 }
 0x418   :  { %v1199_v33 = vpop.f32.mrf.mxu0 }
 0x419   :  { %1743 = vst.msk [vmem:[#allocation3] sm:$0x3] %vm1742_vm14, %v1199_v33 }
 0x41a   :  { %v6788_v34 = vpop.f32.mrf.mxu0 }
 0x41c   :  { %v1276_v35 = vpop.f32.mrf.mxu1 }
 0x41d   :  { %1744 = vst.msk [vmem:[#allocation3 + $0x2] sm:$0x3] %vm1742_vm14, %v1276_v35  ;;  %v1353_v36 = vpop.f32.mrf.mxu0 }
 0x41e   :  { %1745 = vst.msk [vmem:[#allocation3 + $0x4] sm:$0x3] %vm1742_vm14, %v1353_v36  ;;  %v6793_v38 = vpop.f32.mrf.mxu1 }
 0x41f   :  { %v6798_v41 = vpop.f32.mrf.mxu0 }
 0x420   :  { %v1430_v42 = vpop.f32.mrf.mxu1 }
 0x421   :  { %1746 = vst.msk [vmem:[#allocation3 + $0x6] sm:$0x3] %vm1742_vm14, %v1430_v42  ;;  %v1507_v44 = vpop.f32.mrf.mxu0 }
 0x422   :  { %1747 = vst.msk [vmem:[#allocation3 + $0x8] sm:$0x3] %vm1742_vm14, %v1507_v44  ;;  %v6803_v45 = vpop.f32.mrf.mxu1 }
 0x423   :  { %v6808_v46 = vpop.f32.mrf.mxu0 }
 0x424   :  { %v1584_v47 = vpop.f32.mrf.mxu1 }
 0x425   :  { %1748 = vst.msk [vmem:[#allocation3 + $0xa] sm:$0x3] %vm1742_vm14, %v1584_v47  ;;  %v1661_v48 = vpop.f32.mrf.mxu0 }
 0x426   :  { %1749 = vst.msk [vmem:[#allocation3 + $0xc] sm:$0x3] %vm1742_vm14, %v1661_v48  ;;  %v6813_v49 = vpop.f32.mrf.mxu1 }
 0x427   :  { %v6818_v51 = vpop.f32.mrf.mxu0 }
 0x428   :  { %v1738_v54 = vpop.f32.mrf.mxu1 }
 0x429   :  { %1750 = vst.msk [vmem:[#allocation3 + $0xe] sm:$0x3] %vm1742_vm14, %v1738_v54  ;;  %v1843_v55 = vpop.f32.mrf.mxu0 }
 0x42a   :  { %v6823_v57 = vpop.f32.mrf.mxu1  ;;  %v2407_v52 = vsel %vm1035_vm12, %v1843_v55, -inf }
 0x42b   :  { %2408 = vmax.xlane.f32.xlu0 %v2407_v52  ;;  %v6828_v58 = vpop.f32.mrf.mxu0 }
 0x42c   :  { %v1923_v59 = vpop.f32.mrf.mxu1 }
 0x42d   :  { %v2003_v60 = vpop.f32.mrf.mxu0  ;;  %v2410_v61 = vsel %vm1035_vm12, %v1923_v59, -inf }
 0x42e   :  { %2411 = vmax.xlane.f32.xlu1 %v2410_v61  ;;  %v6833_v62 = vpop.f32.mrf.mxu1  ;;  %v2413_v63 = vsel %vm1035_vm12, %v2003_v60, -inf }
 0x42f   :  { %2414 = vmax.xlane.f32.xlu0 %v2413_v63  ;;  %v6838_v1 = vpop.f32.mrf.mxu0 }
 0x430   :  { %v2083_v2 = vpop.f32.mrf.mxu1 }
 0x431   :  { %v2163_v3 = vpop.f32.mrf.mxu0  ;;  %v2416_v4 = vsel %vm1035_vm12, %v2083_v2, -inf }
 0x432   :  { %v6843_v5 = vpop.f32.mrf.mxu1  ;;  %v2419_v6 = vsel %vm1035_vm12, %v2163_v3, -inf }
 0x433   :  { %2417 = vmax.xlane.f32.xlu0 %v2416_v4  ;;  %2420 = vmax.xlane.f32.xlu1 %v2419_v6  ;;  %v6848_v7 = vpop.f32.mrf.mxu0  ;;  %v7795_v4 = vld [vmem:[#allocation2 + $0xa] sm:$0x3]  ;;  %v7801_v6 = vld [vmem:[#allocation2 + $0xe] sm:$0x3] }
 0x434   :  { %v2243_v8 = vpop.f32.mrf.mxu1  ;;  %v3165_v5 = vmul.f32 0.35355338, %v7795_v4  ;;  %v7803_v7 = vld [vmem:[#allocation2 + $0x8] sm:$0x3] }
 0x435   :  { %v2323_v9 = vpop.f32.mrf.mxu0  ;;  %v2422_v10 = vsel %vm1035_vm12, %v2243_v8, -inf }
 0x436   :  { %v6853_v11 = vpop.f32.mrf.mxu1  ;;  %v2425_v12 = vsel %vm1035_vm12, %v2323_v9, -inf }
 0x437   :  { %2423 = vmax.xlane.f32.xlu0 %v2422_v10  ;;  %2426 = vmax.xlane.f32.xlu1 %v2425_v12  ;;  %v6858_v13 = vpop.f32.mrf.mxu0  ;;  %v7813_v10 = vld [vmem:[#allocation2 + $0xc] sm:$0x3] }
 0x438   :  { %v2403_v14 = vpop.f32.mrf.mxu1  ;;  %v3166_v11 = vmul.f32 0.35355338, %v7813_v10 }
 0x439   :  { %v2428_v15 = vsel %vm1035_vm12, %v2403_v14, -inf }
 0x43a   :  { %v6863_v16 = vpop.f32.mrf.mxu1 }
 0x43b   :  { %2429 = vmax.xlane.f32.xlu0 %v2428_v15 }
 0x448   :  { %2649 = vrot.lane.b32.xlu1 %v7528_v56, %s7244_s21  ;;  %v7747_v56 = vld [vmem:[#allocation2 + $0x6] sm:$0x3] }
 0x44c   :  { %2726 = vrot.lane.b32.xlu1 %v7520_v53, %s7244_s21  ;;  %v3161_v53 = vmul.f32 0.35355338, %v7735_v17 }
 0x450   :  { %2880 = vrot.lane.b32.xlu1 %v7568_v37, %s7244_s21 }
 0x451   :  { %2572 = vrot.lane.b32.xlu0 %v7508_v50, %s7244_s21  ;;  %v7743_v50 = vld [vmem:[#allocation2] sm:$0x3] }
 0x452   :  { %v3160_v37 = vmul.f32 0.35355338, %v7743_v50 }
 0x454   :  { %3034 = vrot.lane.b32.xlu1 %v7574_v39, %s7244_s21  ;;  %v3163_v39 = vmul.f32 0.35355338, %v7747_v56 }
 0x455   :  { %2803 = vrot.lane.b32.xlu0 %v7576_v40, %s7244_s21  ;;  %v7755_v40 = vld [vmem:[#allocation2 + $0x4] sm:$0x3] }
 0x458   :  { %3252 = vrot.lane.b32.xlu1 %v7735_v17, %s7245_s22 }
 0x459   :  { %2957 = vrot.lane.b32.xlu0 %v7586_v43, %s7244_s21  ;;  %v3162_v43 = vmul.f32 0.35355338, %v7755_v40 }
 0x45c   :  { %3249 = vrot.lane.b32.xlu1 %v3161_v53, %s7246_s23 }
 0x45d   :  { %3172 = vrot.lane.b32.xlu0 %v7743_v50, %s7245_s22 }
 0x460   :  { %3412 = vrot.lane.b32.xlu1 %v7747_v56, %s7245_s22 }
 0x461   :  { %3169 = vrot.lane.b32.xlu0 %v3160_v37, %s7246_s23 }
 0x464   :  { %3409 = vrot.lane.b32.xlu1 %v3163_v39, %s7246_s23 }
 0x465   :  { %3332 = vrot.lane.b32.xlu0 %v7755_v40, %s7245_s22 }
 0x469   :  { %3329 = vrot.lane.b32.xlu0 %v3162_v43, %s7246_s23 }
 0x4b4   :  { %v2409_v18 = vpop.xlane.xlu0 %2408 }
 0x4b5   :  { %v2431_v19 = vsub.f32 %v1843_v55, %v2409_v18 }
 0x4b7   :  { %v2439_v20 = vmul.f32 1.442695, %v2431_v19  ;;  %v2412_v21 = vpop.xlane.xlu1 %2411 }
 0x4b8   :  { %v2432_v22 = vsub.f32 %v1923_v59, %v2412_v21  ;;  %v2415_v23 = vpop.xlane.xlu0 %2414 }
 0x4b9   :  { %7137 = vpow2.f32 %v2439_v20  ;;  %v2433_v24 = vsub.f32 %v2003_v60, %v2415_v23 }
 0x4ba   :  { %v2441_v25 = vmul.f32 1.442695, %v2432_v22 }
 0x4bb   :  { %v2443_v27 = vmul.f32 1.442695, %v2433_v24 }
 0x4bc   :  { %7139 = vpow2.f32 %v2441_v25  ;;  %v2418_v28 = vpop.xlane.xlu0 %2417  ;;  %v2421_v29 = vpop.xlane.xlu1 %2420 }
 0x4bd   :  { %7141 = vpow2.f32 %v2443_v27  ;;  %v2434_v30 = vsub.f32 %v2083_v2, %v2418_v28  ;;  %v2435_v31 = vsub.f32 %v2163_v3, %v2421_v29 }
 0x4bf   :  { %v2445_v32 = vmul.f32 1.442695, %v2434_v30  ;;  %v2447_v33 = vmul.f32 1.442695, %v2435_v31 }
 0x4c0   :  { %v2424_v34 = vpop.xlane.xlu0 %2423  ;;  %v2427_v35 = vpop.xlane.xlu1 %2426 }
 0x4c1   :  { %7143 = vpow2.f32 %v2445_v32  ;;  %v2436_v36 = vsub.f32 %v2243_v8, %v2424_v34  ;;  %v2437_v38 = vsub.f32 %v2323_v9, %v2427_v35  ;;  %v3167_v8 = vmul.f32 0.35355338, %v7801_v6 }
 0x4c2   :  { %7145 = vpow2.f32 %v2447_v33  ;;  %v3164_v9 = vmul.f32 0.35355338, %v7803_v7 }
 0x4c3   :  { %v2449_v41 = vmul.f32 1.442695, %v2436_v36  ;;  %v2451_v42 = vmul.f32 1.442695, %v2437_v38 }
 0x4c4   :  { %v2430_v44 = vpop.xlane.xlu0 %2429  ;;  %v2650_v12 = vpop.permute.xlu1 %2649 }
 0x4c5   :  { %7147 = vpow2.f32 %v2449_v41  ;;  %v2438_v45 = vsub.f32 %v2403_v14, %v2430_v44 }
 0x4c6   :  { %v7761_v46 = vpop.eup %7137  ;;  %7149 = vpow2.f32 %v2451_v42 }
 0x4c7   :  { %v2453_v47 = vmul.f32 1.442695, %v2438_v45  ;;  %v2455_v48 = vsel %vm1035_vm12, %v7761_v46, 0.0 }
 0x4c8   :  { %v2573_v49 = vpop.permute.xlu0 %2572  ;;  %2456 = vadd.xlane.f32.xlu1 %v2455_v48  ;;  %v2727_v13 = vpop.permute.xlu1 %2726 }
 0x4c9   :  { %v7765_v51 = vpop.eup %7139  ;;  %7151 = vpow2.f32 %v2453_v47  ;;  %6870 = vmatpush3.msk.msra.mxu1 %vm1130_vm11, %v2573_v49 }
 0x4ca   :  { %v7768_v54 = vpop.eup %7141  ;;  %v2458_v55 = vsel %vm1035_vm12, %v7765_v51, 0.0  ;;  %6879 = vmatprep.subr.mxu1 %v7237_v0 }
 0x4cb   :  { %2459 = vadd.xlane.f32.xlu0 %v2458_v55  ;;  %v2461_v57 = vsel %vm1035_vm12, %v7768_v54, 0.0 }
 0x4cc   :  { %2462 = vadd.xlane.f32.xlu1 %v2461_v57  ;;  %v2881_v14 = vpop.permute.xlu1 %2880  ;;  %v2804_v15 = vpop.permute.xlu0 %2803 }
 0x4ce   :  { %v7775_v52 = vpop.eup %7143 }
 0x4cf   :  { %v7777_v58 = vpop.eup %7145  ;;  %v2464_v59 = vsel %vm1035_vm12, %v7775_v52, 0.0 }
 0x4d0   :  { %2465 = vadd.xlane.f32.xlu0 %v2464_v59  ;;  %v2467_v60 = vsel %vm1035_vm12, %v7777_v58, 0.0  ;;  %v7821_v16 = vpop.permute.xlu1 %3034  ;;  %v2958_v53 = vpop.permute.xlu0 %2957 }
 0x4d1   :  { %2468 = vadd.xlane.f32.xlu1 %v2467_v60 }
 0x4d2   :  { %v7783_v61 = vpop.eup %7147 }
 0x4d3   :  { %v7785_v62 = vpop.eup %7149  ;;  %v2470_v63 = vsel %vm1035_vm12, %v7783_v61, 0.0 }
 0x4d4   :  { %2471 = vadd.xlane.f32.xlu0 %v2470_v63  ;;  %v2473_v1 = vsel %vm1035_vm12, %v7785_v62, 0.0  ;;  %v7823_v37 = vpop.permute.xlu1 %3252  ;;  %v7825_v39 = vpop.permute.xlu0 %3172 }
 0x4d5   :  { %2474 = vadd.xlane.f32.xlu1 %v2473_v1 }
 0x4d6   :  { %v7791_v2 = vpop.eup %7151 }
 0x4d7   :  { %v2476_v3 = vsel %vm1035_vm12, %v7791_v2, 0.0 }
 0x4d8   :  { %2477 = vadd.xlane.f32.xlu0 %v2476_v3  ;;  %v7827_v43 = vpop.permute.xlu1 %3249 }
 0x4dc   :  { %v7831_v18 = vpop.permute.xlu1 %3412 }
 0x4e0   :  { %v7835_v20 = vpop.permute.xlu1 %3409 }
 0x4e6   :  { %3572 = vrot.lane.b32.xlu1 %v7795_v4, %s7245_s22 }
 0x4ea   :  { %3569 = vrot.lane.b32.xlu1 %v3165_v5, %s7246_s23 }
 0x4ee   :  { %3732 = vrot.lane.b32.xlu1 %v7801_v6, %s7245_s22  ;;  %3492 = vrot.lane.b32.xlu0 %v7803_v7, %s7245_s22 }
 0x4f2   :  { %3729 = vrot.lane.b32.xlu1 %v3167_v8, %s7246_s23  ;;  %3489 = vrot.lane.b32.xlu0 %v3164_v9, %s7246_s23 }
 0x4f6   :  { %3896 = vrot.lane.b32.xlu1 %v7743_v50, %s7247_s24  ;;  %3652 = vrot.lane.b32.xlu0 %v7813_v10, %s7245_s22  ;;  %v7829_v50 = vpop.permute.xlu0 %3169 }
 0x4fa   :  { %3649 = vrot.lane.b32.xlu0 %v3166_v11, %s7246_s23  ;;  %v7833_v19 = vpop.permute.xlu0 %3332 }
 0x4fe   :  { %v7837_v21 = vpop.permute.xlu0 %3329 }
 0x551   :  { %v2457_v22 = vpop.xlane.xlu1 %2456 }
 0x552   :  { %7153 = vrcp.f32 %v2457_v22 }
 0x554   :  { %v2460_v23 = vpop.xlane.xlu0 %2459 }
 0x555   :  { %7155 = vrcp.f32 %v2460_v23  ;;  %v2463_v24 = vpop.xlane.xlu1 %2462 }
 0x556   :  { %7157 = vrcp.f32 %v2463_v24 }
 0x559   :  { %v2466_v25 = vpop.xlane.xlu0 %2465 }
 0x55a   :  { %7159 = vrcp.f32 %v2466_v25  ;;  %v2469_v27 = vpop.xlane.xlu1 %2468 }
 0x55b   :  { %7161 = vrcp.f32 %v2469_v27 }
 0x55d   :  { %v2472_v28 = vpop.xlane.xlu0 %2471 }
 0x55e   :  { %7163 = vrcp.f32 %v2472_v28  ;;  %v2475_v29 = vpop.xlane.xlu1 %2474 }
 0x55f   :  { %v7154_v30 = vpop.eup %7153  ;;  %7165 = vrcp.f32 %v2475_v29 }
 0x560   :  { %v2487_v31 = vmul.f32 %v7154_v30, %v7761_v46 }
 0x561   :  { %v2478_v32 = vpop.xlane.xlu0 %2477 }
 0x562   :  { %v7156_v33 = vpop.eup %7155  ;;  %7167 = vrcp.f32 %v2478_v32  ;;  %6867 = vmatmul.mubr.msk.f32.vlgmr.msra.gmra.mxu0 %vm1126_vm13, %v2487_v31  ;;  %v3573_v41 = vpop.permute.xlu1 %3572 }
 0x563   :  { %v7158_v34 = vpop.eup %7157  ;;  %6875 = vmatpush3.msk.msra.mxu0 %vm1130_vm11, %v2650_v12  ;;  %6876 = vmatprep.mubr.msk.f32.mxu0 %vm7238_vm1, %v7237_v0  ;;  %v2488_v35 = vmul.f32 %v7156_v33, %v7765_v51 }
 0x564   :  { %6884 = vmatprep.subr.mxu0 %v7237_v0  ;;  %v2489_v36 = vmul.f32 %v7158_v34, %v7768_v54 }
 0x565   :  { %6872 = vmatmul.mubr.msk.f32.vlgmr.msra.gmra.mxu1 %vm1126_vm13, %v2488_v35  ;;  %v3493_v48 = vpop.permute.xlu0 %3492 }
 0x566   :  { %6877 = vmatmul.mubr.msk.f32.vlgmr.msra.gmra.mxu0 %vm1126_vm13, %v2489_v36  ;;  %6880 = vmatpush3.msk.msra.mxu1 %vm1130_vm11, %v2727_v13  ;;  %v3570_v51 = vpop.permute.xlu1 %3569 }
 0x567   :  { %v7160_v38 = vpop.eup %7159  ;;  %6885 = vmatpush3.msk.msra.mxu0 %vm1130_vm11, %v2804_v15  ;;  %6881 = vmatprep.mubr.msk.f32.mxu1 %vm7238_vm1, %v7237_v0 }
 0x568   :  { %v7162_v42 = vpop.eup %7161  ;;  %6886 = vmatprep.mubr.msk.f32.mxu0 %vm7238_vm1, %v7237_v0  ;;  %6889 = vmatprep.subr.mxu1 %v7237_v0  ;;  %v2490_v44 = vmul.f32 %v7160_v38, %v7775_v52 }
 0x569   :  { %6894 = vmatprep.subr.mxu0 %v7237_v0  ;;  %v2491_v45 = vmul.f32 %v7162_v42, %v7777_v58  ;;  %v3490_v52 = vpop.permute.xlu0 %3489 }
 0x56a   :  { %6882 = vmatmul.mubr.msk.f32.vlgmr.msra.gmra.mxu1 %vm1126_vm13, %v2490_v44  ;;  %v3733_v58 = vpop.permute.xlu1 %3732 }
 0x56b   :  { %v7164_v46 = vpop.eup %7163  ;;  %6887 = vmatmul.mubr.msk.f32.vlgmr.msra.gmra.mxu0 %vm1126_vm13, %v2491_v45  ;;  %6890 = vmatpush3.msk.msra.mxu1 %vm1130_vm11, %v2881_v14  ;;  %v7970_v45 = vld [vmem:[#allocation2 + $0x2] sm:$0x3] }
 0x56c   :  { %v7166_v47 = vpop.eup %7165  ;;  %6895 = vmatpush3.msk.msra.mxu0 %vm1130_vm11, %v2958_v53  ;;  %6891 = vmatprep.mubr.msk.f32.mxu1 %vm7238_vm1, %v7237_v0  ;;  %v2492_v49 = vmul.f32 %v7164_v46, %v7783_v61 }
 0x56d   :  { %6896 = vmatprep.mubr.msk.f32.mxu0 %vm7238_vm1, %v7237_v0  ;;  %6899 = vmatprep.subr.mxu1 %v7237_v0  ;;  %v2493_v54 = vmul.f32 %v7166_v47, %v7785_v62  ;;  %v3653_v59 = vpop.permute.xlu0 %3652 }
 0x56e   :  { %6904 = vmatprep.subr.mxu0 %v7237_v0  ;;  %6892 = vmatmul.mubr.msk.f32.vlgmr.msra.gmra.mxu1 %vm1126_vm13, %v2492_v49  ;;  %v3730_v60 = vpop.permute.xlu1 %3729 }
 0x56f   :  { %v7168_v55 = vpop.eup %7167  ;;  %6897 = vmatmul.mubr.msk.f32.vlgmr.msra.gmra.mxu0 %vm1126_vm13, %v2493_v54  ;;  %6900 = vmatpush3.msk.msra.mxu1 %vm1130_vm11, %v7821_v16 }
 0x570   :  { %6905 = vmatpush3.xpose.msk.msra.mxu0 %vm413_vm10, %v7825_v39  ;;  %6901 = vmatprep.mubr.msk.f32.mxu1 %vm7238_vm1, %v7237_v0  ;;  %v2494_v57 = vmul.f32 %v7168_v55, %v7791_v2 }
 0x571   :  { %6906 = vmatprep.mubr.msk.f32.mxu0 %vm7238_vm1, %v7237_v0  ;;  %6909 = vmatprep.subr.mxu1 %v7237_v0  ;;  %v3650_v61 = vpop.permute.xlu0 %3649 }
 0x572   :  { %6914 = vmatprep.subr.mxu0 %v7237_v0  ;;  %6902 = vmatmul.mubr.msk.f32.vlgmr.msra.gmra.mxu1 %vm1126_vm13, %v2494_v57  ;;  %v3897_v62 = vpop.permute.xlu1 %3896 }
 0x573   :  { %6907 = vmatmul.mubr.msk.f32.vlgmr.msra.gmra.mxu0 %vm413_vm10, %v7829_v50  ;;  %6910 = vmatpush3.xpose.msk.msra.mxu1 %vm413_vm10, %v7823_v37 }
 0x574   :  { %6915 = vmatpush3.xpose.msk.msra.mxu0 %vm413_vm10, %v7833_v19  ;;  %6911 = vmatprep.mubr.msk.f32.mxu1 %vm7238_vm1, %v7237_v0 }
 0x575   :  { %6916 = vmatprep.mubr.msk.f32.mxu0 %vm7238_vm1, %v7237_v0  ;;  %6919 = vmatprep.subr.mxu1 %v7237_v0 }
 0x576   :  { %6924 = vmatprep.subr.mxu0 %v7237_v0  ;;  %6912 = vmatmul.mubr.msk.f32.vlgmr.msra.gmra.mxu1 %vm413_vm10, %v7827_v43 }
 0x577   :  { %6917 = vmatmul.mubr.msk.f32.vlgmr.msra.gmra.mxu0 %vm413_vm10, %v7837_v21  ;;  %6920 = vmatpush3.xpose.msk.msra.mxu1 %vm413_vm10, %v7831_v18 }
 0x578   :  { %6925 = vmatpush3.xpose.msk.msra.mxu0 %vm413_vm10, %v3493_v48  ;;  %6921 = vmatprep.mubr.msk.f32.mxu1 %vm7238_vm1, %v7237_v0 }
 0x579   :  { %6926 = vmatprep.mubr.msk.f32.mxu0 %vm7238_vm1, %v7237_v0  ;;  %6929 = vmatprep.subr.mxu1 %v7237_v0 }
 0x57a   :  { %6934 = vmatprep.subr.mxu0 %v7237_v0  ;;  %6922 = vmatmul.mubr.msk.f32.vlgmr.msra.gmra.mxu1 %vm413_vm10, %v7835_v20 }
 0x57b   :  { %6927 = vmatmul.mubr.msk.f32.vlgmr.msra.gmra.mxu0 %vm413_vm10, %v3490_v52  ;;  %6930 = vmatpush3.xpose.msk.msra.mxu1 %vm413_vm10, %v3573_v41 }
 0x57c   :  { %6935 = vmatpush3.xpose.msk.msra.mxu0 %vm413_vm10, %v3653_v59  ;;  %6931 = vmatprep.mubr.msk.f32.mxu1 %vm7238_vm1, %v7237_v0 }
 0x57d   :  { %6936 = vmatprep.mubr.msk.f32.mxu0 %vm7238_vm1, %v7237_v0  ;;  %6939 = vmatprep.subr.mxu1 %v7237_v0 }
 0x57e   :  { %6944 = vmatprep.subr.mxu0 %v7237_v0  ;;  %6932 = vmatmul.mubr.msk.f32.vlgmr.msra.gmra.mxu1 %vm413_vm10, %v3570_v51 }
 0x57f   :  { %6937 = vmatmul.mubr.msk.f32.vlgmr.msra.gmra.mxu0 %vm413_vm10, %v3650_v61  ;;  %6940 = vmatpush3.xpose.msk.msra.mxu1 %vm413_vm10, %v3733_v58 }
 0x580   :  { %6945 = vmatpush3.msk.msra.mxu0 %vm1130_vm11, %v3897_v62  ;;  %6941 = vmatprep.mubr.msk.f32.mxu1 %vm7238_vm1, %v7237_v0 }
 0x581   :  { %6949 = vmatprep.subr.mxu1 %v7237_v0  ;;  %6946 = vmatprep.mubr.msk.f32.mxu0 %vm7238_vm1, %v7237_v0 }
 0x582   :  { %6942 = vmatmul.mubr.msk.f32.vlgmr.msra.gmra.mxu1 %vm413_vm10, %v3730_v60  ;;  %6954 = vmatprep.subr.mxu0 %v7237_v0 }
 0x583   :  { %6951 = vmatprep.mubr.msk.f32.mxu1 %vm7238_vm1, %v7237_v0 }
 0x622   :  { %v7934_v63 = vpop.f32.mrf.mxu0 }
 0x624   :  { %v6868_v1 = vpop.f32.mrf.mxu0 }
 0x625   :  { %v7936_v2 = vpop.f32.mrf.mxu1 }
 0x626   :  { %v7938_v3 = vpop.f32.mrf.mxu0 }
 0x627   :  { %v6873_v5 = vpop.f32.mrf.mxu1 }
 0x628   :  { %v6878_v8 = vpop.f32.mrf.mxu0 }
 0x62a   :  { %v7940_v9 = vpop.f32.mrf.mxu1 }
 0x62b   :  { %v7942_v11 = vpop.f32.mrf.mxu0 }
 0x62c   :  { %v6883_v12 = vpop.f32.mrf.mxu1 }
 0x62d   :  { %v6888_v13 = vpop.f32.mrf.mxu0 }
 0x62e   :  { %v7944_v14 = vpop.f32.mrf.mxu1 }
 0x62f   :  { %v7946_v15 = vpop.f32.mrf.mxu0 }
 0x630   :  { %v6893_v16 = vpop.f32.mrf.mxu1 }
 0x631   :  { %v6898_v53 = vpop.f32.mrf.mxu0 }
 0x632   :  { %v7948_v37 = vpop.f32.mrf.mxu1 }
 0x633   :  { %v3244_v39 = vpop.f32.mrf.mxu0 }
 0x634   :  { %v6903_v43 = vpop.f32.mrf.mxu1  ;;  %v3808_v50 = vsel %vm1035_vm12, %v3244_v39, -inf }
 0x635   :  { %3809 = vmax.xlane.f32.xlu0 %v3808_v50  ;;  %v6908_v18 = vpop.f32.mrf.mxu0 }
 0x636   :  { %v3324_v19 = vpop.f32.mrf.mxu1 }
 0x637   :  { %v3404_v20 = vpop.f32.mrf.mxu0  ;;  %v3811_v21 = vsel %vm1035_vm12, %v3324_v19, -inf }
 0x638   :  { %3812 = vmax.xlane.f32.xlu1 %v3811_v21  ;;  %v6913_v22 = vpop.f32.mrf.mxu1  ;;  %v3814_v23 = vsel %vm1035_vm12, %v3404_v20, -inf }
 0x639   :  { %3815 = vmax.xlane.f32.xlu0 %v3814_v23  ;;  %v6918_v24 = vpop.f32.mrf.mxu0 }
 0x63a   :  { %v3484_v25 = vpop.f32.mrf.mxu1 }
 0x63b   :  { %v3564_v27 = vpop.f32.mrf.mxu0  ;;  %v3817_v28 = vsel %vm1035_vm12, %v3484_v25, -inf }
 0x63c   :  { %v6923_v29 = vpop.f32.mrf.mxu1  ;;  %v3820_v30 = vsel %vm1035_vm12, %v3564_v27, -inf }
 0x63d   :  { %3818 = vmax.xlane.f32.xlu0 %v3817_v28  ;;  %3821 = vmax.xlane.f32.xlu1 %v3820_v30  ;;  %v6928_v31 = vpop.f32.mrf.mxu0 }
 0x63e   :  { %v3644_v32 = vpop.f32.mrf.mxu1 }
 0x63f   :  { %v3724_v33 = vpop.f32.mrf.mxu0  ;;  %v3823_v34 = vsel %vm1035_vm12, %v3644_v32, -inf }
 0x640   :  { %v6933_v35 = vpop.f32.mrf.mxu1  ;;  %v3826_v36 = vsel %vm1035_vm12, %v3724_v33, -inf }
 0x641   :  { %3824 = vmax.xlane.f32.xlu0 %v3823_v34  ;;  %3827 = vmax.xlane.f32.xlu1 %v3826_v36  ;;  %v6938_v38 = vpop.f32.mrf.mxu0  ;;  %v8030_v36 = vld [vmem:[#allocation2 + $0xa] sm:$0x3] }
 0x642   :  { %v3804_v41 = vpop.f32.mrf.mxu1  ;;  %v4566_v38 = vmul.f32 0.35355338, %v8030_v36 }
 0x643   :  { %v3829_v42 = vsel %vm1035_vm12, %v3804_v41, -inf }
 0x644   :  { %v6943_v44 = vpop.f32.mrf.mxu1 }
 0x645   :  { %3830 = vmax.xlane.f32.xlu0 %v3829_v42  ;;  %v8038_v42 = vld [vmem:[#allocation2 + $0x8] sm:$0x3] }
 0x652   :  { %4050 = vrot.lane.b32.xlu1 %v7755_v40, %s7247_s24 }
 0x656   :  { %4127 = vrot.lane.b32.xlu1 %v7747_v56, %s7247_s24  ;;  %v4562_v56 = vmul.f32 0.35355338, %v7970_v45 }
 0x65a   :  { %4281 = vrot.lane.b32.xlu1 %v7795_v4, %s7247_s24  ;;  %v7983_v4 = vld [vmem:[#allocation2 + $0x6] sm:$0x3] }
 0x65b   :  { %3973 = vrot.lane.b32.xlu0 %v7735_v17, %s7247_s24  ;;  %v7978_v17 = vld [vmem:[#allocation2] sm:$0x3] }
 0x65c   :  { %v4561_v40 = vmul.f32 0.35355338, %v7978_v17 }
 0x65e   :  { %4435 = vrot.lane.b32.xlu1 %v7801_v6, %s7247_s24  ;;  %v4564_v6 = vmul.f32 0.35355338, %v7983_v4 }
 0x65f   :  { %4204 = vrot.lane.b32.xlu0 %v7803_v7, %s7247_s24  ;;  %v7990_v7 = vld [vmem:[#allocation2 + $0x4] sm:$0x3] }
 0x662   :  { %4653 = vrot.lane.b32.xlu1 %v7970_v45, %s7248_s25 }
 0x663   :  { %4358 = vrot.lane.b32.xlu0 %v7813_v10, %s7247_s24  ;;  %v4563_v10 = vmul.f32 0.35355338, %v7990_v7 }
 0x666   :  { %4650 = vrot.lane.b32.xlu1 %v4562_v56, %s7249_s26  ;;  %v4565_v56 = vmul.f32 0.35355338, %v8038_v42 }
 0x667   :  { %4573 = vrot.lane.b32.xlu0 %v7978_v17, %s7248_s25 }
 0x66a   :  { %4813 = vrot.lane.b32.xlu1 %v7983_v4, %s7248_s25 }
 0x66b   :  { %4570 = vrot.lane.b32.xlu0 %v4561_v40, %s7249_s26  ;;  %v8048_v40 = vld [vmem:[#allocation2 + $0xc] sm:$0x3] }
 0x66e   :  { %4810 = vrot.lane.b32.xlu1 %v4564_v6, %s7249_s26  ;;  %v4567_v6 = vmul.f32 0.35355338, %v8048_v40 }
 0x66f   :  { %4733 = vrot.lane.b32.xlu0 %v7990_v7, %s7248_s25 }
 0x673   :  { %4730 = vrot.lane.b32.xlu0 %v4563_v10, %s7249_s26 }
 0x6be   :  { %v3810_v46 = vpop.xlane.xlu0 %3809 }
 0x6bf   :  { %v3832_v47 = vsub.f32 %v3244_v39, %v3810_v46 }
 0x6c1   :  { %v3840_v48 = vmul.f32 1.442695, %v3832_v47  ;;  %v3813_v49 = vpop.xlane.xlu1 %3812 }
 0x6c2   :  { %v3833_v51 = vsub.f32 %v3324_v19, %v3813_v49  ;;  %v3816_v54 = vpop.xlane.xlu0 %3815 }
 0x6c3   :  { %7169 = vpow2.f32 %v3840_v48  ;;  %v3834_v55 = vsub.f32 %v3404_v20, %v3816_v54 }
 0x6c4   :  { %v3842_v57 = vmul.f32 1.442695, %v3833_v51 }
 0x6c5   :  { %v3844_v52 = vmul.f32 1.442695, %v3834_v55 }
 0x6c6   :  { %7171 = vpow2.f32 %v3842_v57  ;;  %v3819_v58 = vpop.xlane.xlu0 %3818  ;;  %v3822_v59 = vpop.xlane.xlu1 %3821 }
 0x6c7   :  { %7173 = vpow2.f32 %v3844_v52  ;;  %v3835_v60 = vsub.f32 %v3484_v25, %v3819_v58  ;;  %v3836_v61 = vsub.f32 %v3564_v27, %v3822_v59 }
 0x6c9   :  { %v3846_v62 = vmul.f32 1.442695, %v3835_v60  ;;  %v3848_v1 = vmul.f32 1.442695, %v3836_v61 }
 0x6ca   :  { %v3825_v5 = vpop.xlane.xlu0 %3824  ;;  %v3828_v8 = vpop.xlane.xlu1 %3827 }
 0x6cb   :  { %7175 = vpow2.f32 %v3846_v62  ;;  %v3837_v12 = vsub.f32 %v3644_v32, %v3825_v5  ;;  %v3838_v13 = vsub.f32 %v3724_v33, %v3828_v8 }
 0x6cc   :  { %7177 = vpow2.f32 %v3848_v1 }
 0x6cd   :  { %v3850_v16 = vmul.f32 1.442695, %v3837_v12  ;;  %v3852_v53 = vmul.f32 1.442695, %v3838_v13 }
 0x6ce   :  { %v3831_v39 = vpop.xlane.xlu0 %3830  ;;  %v4051_v10 = vpop.permute.xlu1 %4050 }
 0x6cf   :  { %7179 = vpow2.f32 %v3850_v16  ;;  %v3839_v43 = vsub.f32 %v3804_v41, %v3831_v39  ;;  %v8036_v41 = vld [vmem:[#allocation2 + $0xe] sm:$0x3] }
 0x6d0   :  { %v7996_v50 = vpop.eup %7169  ;;  %7181 = vpow2.f32 %v3852_v53  ;;  %v4568_v44 = vmul.f32 0.35355338, %v8036_v41 }
 0x6d1   :  { %v3854_v18 = vmul.f32 1.442695, %v3839_v43  ;;  %v3856_v19 = vsel %vm1035_vm12, %v7996_v50, 0.0 }
 0x6d2   :  { %v3974_v20 = vpop.permute.xlu0 %3973  ;;  %3857 = vadd.xlane.f32.xlu1 %v3856_v19  ;;  %v4128_v46 = vpop.permute.xlu1 %4127 }
 0x6d3   :  { %v8000_v21 = vpop.eup %7171  ;;  %7183 = vpow2.f32 %v3854_v18  ;;  %6950 = vmatpush3.msk.msra.mxu1 %vm1130_vm11, %v3974_v20 }
 0x6d4   :  { %v8003_v22 = vpop.eup %7173  ;;  %v3859_v23 = vsel %vm1035_vm12, %v8000_v21, 0.0  ;;  %6959 = vmatprep.subr.mxu1 %v7237_v0 }
 0x6d5   :  { %3860 = vadd.xlane.f32.xlu0 %v3859_v23  ;;  %v3862_v24 = vsel %vm1035_vm12, %v8003_v22, 0.0 }
 0x6d6   :  { %3863 = vadd.xlane.f32.xlu1 %v3862_v24  ;;  %v4282_v47 = vpop.permute.xlu1 %4281  ;;  %v4205_v48 = vpop.permute.xlu0 %4204 }
 0x6d8   :  { %v8010_v25 = vpop.eup %7175 }
 0x6d9   :  { %v8012_v27 = vpop.eup %7177  ;;  %v3865_v28 = vsel %vm1035_vm12, %v8010_v25, 0.0 }
 0x6da   :  { %3866 = vadd.xlane.f32.xlu0 %v3865_v28  ;;  %v3868_v29 = vsel %vm1035_vm12, %v8012_v27, 0.0  ;;  %v8054_v49 = vpop.permute.xlu1 %4435  ;;  %v4359_v51 = vpop.permute.xlu0 %4358 }
 0x6db   :  { %3869 = vadd.xlane.f32.xlu1 %v3868_v29 }
 0x6dc   :  { %v8018_v30 = vpop.eup %7179 }
 0x6dd   :  { %v8020_v31 = vpop.eup %7181  ;;  %v3871_v32 = vsel %vm1035_vm12, %v8018_v30, 0.0 }
 0x6de   :  { %3872 = vadd.xlane.f32.xlu0 %v3871_v32  ;;  %v3874_v33 = vsel %vm1035_vm12, %v8020_v31, 0.0  ;;  %v8056_v54 = vpop.permute.xlu1 %4653  ;;  %v8058_v55 = vpop.permute.xlu0 %4573 }
 0x6df   :  { %3875 = vadd.xlane.f32.xlu1 %v3874_v33 }
 0x6e0   :  { %v8026_v34 = vpop.eup %7183 }
 0x6e1   :  { %v3877_v35 = vsel %vm1035_vm12, %v8026_v34, 0.0 }
 0x6e2   :  { %3878 = vadd.xlane.f32.xlu0 %v3877_v35  ;;  %v8060_v57 = vpop.permute.xlu1 %4650  ;;  %v8062_v52 = vpop.permute.xlu0 %4570 }
 0x6e6   :  { %v8064_v58 = vpop.permute.xlu1 %4813  ;;  %v8066_v59 = vpop.permute.xlu0 %4733 }
 0x6ea   :  { %v8068_v60 = vpop.permute.xlu1 %4810  ;;  %v8070_v61 = vpop.permute.xlu0 %4730 }
 0x6f0   :  { %4973 = vrot.lane.b32.xlu1 %v8030_v36, %s7248_s25 }
 0x6f4   :  { %4970 = vrot.lane.b32.xlu1 %v4566_v38, %s7249_s26 }
 0x6f8   :  { %5133 = vrot.lane.b32.xlu1 %v8036_v41, %s7248_s25  ;;  %4893 = vrot.lane.b32.xlu0 %v8038_v42, %s7248_s25 }
 0x6fc   :  { %5130 = vrot.lane.b32.xlu1 %v4568_v44, %s7249_s26  ;;  %4890 = vrot.lane.b32.xlu0 %v4565_v56, %s7249_s26 }
 0x700   :  { %5053 = vrot.lane.b32.xlu0 %v8048_v40, %s7248_s25 }
 0x704   :  { %5050 = vrot.lane.b32.xlu0 %v4567_v6, %s7249_s26 }
 0x75b   :  { %v3858_v62 = vpop.xlane.xlu1 %3857 }
 0x75c   :  { %7185 = vrcp.f32 %v3858_v62 }
 0x75e   :  { %v3861_v1 = vpop.xlane.xlu0 %3860 }
 0x75f   :  { %7187 = vrcp.f32 %v3861_v1  ;;  %v3864_v5 = vpop.xlane.xlu1 %3863 }
 0x760   :  { %7189 = vrcp.f32 %v3864_v5 }
 0x763   :  { %v3867_v8 = vpop.xlane.xlu0 %3866 }
 0x764   :  { %7191 = vrcp.f32 %v3867_v8  ;;  %v3870_v12 = vpop.xlane.xlu1 %3869 }
 0x765   :  { %7193 = vrcp.f32 %v3870_v12 }
 0x767   :  { %v3873_v13 = vpop.xlane.xlu0 %3872 }
 0x768   :  { %7195 = vrcp.f32 %v3873_v13  ;;  %v3876_v16 = vpop.xlane.xlu1 %3875 }
 0x769   :  { %v7186_v53 = vpop.eup %7185  ;;  %7197 = vrcp.f32 %v3876_v16 }
 0x76a   :  { %v3888_v39 = vmul.f32 %v7186_v53, %v7996_v50 }
 0x76b   :  { %v3879_v43 = vpop.xlane.xlu0 %3878 }
 0x76c   :  { %v7188_v18 = vpop.eup %7187  ;;  %7199 = vrcp.f32 %v3879_v43  ;;  %6947 = vmatmul.mubr.msk.f32.vlgmr.msra.gmra.mxu0 %vm1126_vm13, %v3888_v39  ;;  %v4974_v35 = vpop.permute.xlu1 %4973 }
 0x76d   :  { %v7190_v19 = vpop.eup %7189  ;;  %6955 = vmatpush3.msk.msra.mxu0 %vm1130_vm11, %v4051_v10  ;;  %6956 = vmatprep.mubr.msk.f32.mxu0 %vm7238_vm1, %v7237_v0  ;;  %v3889_v20 = vmul.f32 %v7188_v18, %v8000_v21 }
 0x76e   :  { %6964 = vmatprep.subr.mxu0 %v7237_v0  ;;  %v3890_v23 = vmul.f32 %v7190_v19, %v8003_v22 }
 0x76f   :  { %6952 = vmatmul.mubr.msk.f32.vlgmr.msra.gmra.mxu1 %vm1126_vm13, %v3889_v20  ;;  %v4894_v32 = vpop.permute.xlu0 %4893 }
 0x770   :  { %6957 = vmatmul.mubr.msk.f32.vlgmr.msra.gmra.mxu0 %vm1126_vm13, %v3890_v23  ;;  %6960 = vmatpush3.msk.msra.mxu1 %vm1130_vm11, %v4128_v46 }
 0x771   :  { %v7192_v50 = vpop.eup %7191  ;;  %6965 = vmatpush3.msk.msra.mxu0 %vm1130_vm11, %v4205_v48  ;;  %6961 = vmatprep.mubr.msk.f32.mxu1 %vm7238_vm1, %v7237_v0 }
 0x772   :  { %v7194_v24 = vpop.eup %7193  ;;  %6966 = vmatprep.mubr.msk.f32.mxu0 %vm7238_vm1, %v7237_v0  ;;  %6969 = vmatprep.subr.mxu1 %v7237_v0  ;;  %v3891_v21 = vmul.f32 %v7192_v50, %v8010_v25 }
 0x773   :  { %6974 = vmatprep.subr.mxu0 %v7237_v0  ;;  %v3892_v22 = vmul.f32 %v7194_v24, %v8012_v27 }
 0x774   :  { %6962 = vmatmul.mubr.msk.f32.vlgmr.msra.gmra.mxu1 %vm1126_vm13, %v3891_v21 }
 0x775   :  { %v7196_v28 = vpop.eup %7195  ;;  %6967 = vmatmul.mubr.msk.f32.vlgmr.msra.gmra.mxu0 %vm1126_vm13, %v3892_v22  ;;  %6970 = vmatpush3.msk.msra.mxu1 %vm1130_vm11, %v4282_v47 }
 0x776   :  { %v7198_v29 = vpop.eup %7197  ;;  %6975 = vmatpush3.msk.msra.mxu0 %vm1130_vm11, %v4359_v51  ;;  %6971 = vmatprep.mubr.msk.f32.mxu1 %vm7238_vm1, %v7237_v0  ;;  %v3893_v25 = vmul.f32 %v7196_v28, %v8018_v30 }
 0x777   :  { %6976 = vmatprep.mubr.msk.f32.mxu0 %vm7238_vm1, %v7237_v0  ;;  %6979 = vmatprep.subr.mxu1 %v7237_v0  ;;  %v3894_v27 = vmul.f32 %v7198_v29, %v8020_v31  ;;  %v4891_v31 = vpop.permute.xlu0 %4890 }
 0x778   :  { %6984 = vmatprep.subr.mxu0 %v7237_v0  ;;  %6972 = vmatmul.mubr.msk.f32.vlgmr.msra.gmra.mxu1 %vm1126_vm13, %v3893_v25 }
 0x779   :  { %v7200_v33 = vpop.eup %7199  ;;  %6977 = vmatmul.mubr.msk.f32.vlgmr.msra.gmra.mxu0 %vm1126_vm13, %v3894_v27  ;;  %6980 = vmatpush3.msk.msra.mxu1 %vm1130_vm11, %v8054_v49 }
 0x77a   :  { %6985 = vmatpush3.xpose.msk.msra.mxu0 %vm413_vm10, %v8058_v55  ;;  %6981 = vmatprep.mubr.msk.f32.mxu1 %vm7238_vm1, %v7237_v0  ;;  %v3895_v30 = vmul.f32 %v7200_v33, %v8026_v34  ;;  %v4971_v34 = vpop.permute.xlu1 %4970 }
 0x77b   :  { %6986 = vmatprep.mubr.msk.f32.mxu0 %vm7238_vm1, %v7237_v0  ;;  %6989 = vmatprep.subr.mxu1 %v7237_v0  ;;  %v5054_v38 = vpop.permute.xlu0 %5053 }
 0x77c   :  { %6994 = vmatprep.subr.mxu0 %v7237_v0  ;;  %6982 = vmatmul.mubr.msk.f32.vlgmr.msra.gmra.mxu1 %vm1126_vm13, %v3895_v30 }
 0x77d   :  { %6987 = vmatmul.mubr.msk.f32.vlgmr.msra.gmra.mxu0 %vm413_vm10, %v8062_v52  ;;  %6990 = vmatpush3.xpose.msk.msra.mxu1 %vm413_vm10, %v8056_v54 }
 0x77e   :  { %6995 = vmatpush3.xpose.msk.msra.mxu0 %vm413_vm10, %v8066_v59  ;;  %6991 = vmatprep.mubr.msk.f32.mxu1 %vm7238_vm1, %v7237_v0  ;;  %v5134_v44 = vpop.permute.xlu1 %5133 }
 0x77f   :  { %6996 = vmatprep.mubr.msk.f32.mxu0 %vm7238_vm1, %v7237_v0  ;;  %6999 = vmatprep.subr.mxu1 %v7237_v0  ;;  %v5051_v56 = vpop.permute.xlu0 %5050 }
 0x780   :  { %7004 = vmatprep.subr.mxu0 %v7237_v0  ;;  %6992 = vmatmul.mubr.msk.f32.vlgmr.msra.gmra.mxu1 %vm413_vm10, %v8060_v57 }
 0x781   :  { %6997 = vmatmul.mubr.msk.f32.vlgmr.msra.gmra.mxu0 %vm413_vm10, %v8070_v61  ;;  %7000 = vmatpush3.xpose.msk.msra.mxu1 %vm413_vm10, %v8064_v58 }
 0x782   :  { %7005 = vmatpush3.xpose.msk.msra.mxu0 %vm413_vm10, %v4894_v32  ;;  %7001 = vmatprep.mubr.msk.f32.mxu1 %vm7238_vm1, %v7237_v0  ;;  %v5131_v6 = vpop.permute.xlu1 %5130 }
 0x783   :  { %7006 = vmatprep.mubr.msk.f32.mxu0 %vm7238_vm1, %v7237_v0  ;;  %7009 = vmatprep.subr.mxu1 %v7237_v0 }
 0x784   :  { %7014 = vmatprep.subr.mxu0 %v7237_v0  ;;  %7002 = vmatmul.mubr.msk.f32.vlgmr.msra.gmra.mxu1 %vm413_vm10, %v8068_v60 }
 0x785   :  { %7007 = vmatmul.mubr.msk.f32.vlgmr.msra.gmra.mxu0 %vm413_vm10, %v4891_v31  ;;  %7010 = vmatpush3.xpose.msk.msra.mxu1 %vm413_vm10, %v4974_v35 }
 0x786   :  { %7015 = vmatpush3.xpose.msk.msra.mxu0 %vm413_vm10, %v5054_v38  ;;  %7011 = vmatprep.mubr.msk.f32.mxu1 %vm7238_vm1, %v7237_v0 }
 0x787   :  { %7016 = vmatprep.mubr.msk.f32.mxu0 %vm7238_vm1, %v7237_v0  ;;  %7019 = vmatprep.subr.mxu1 %v7237_v0 }
 0x788   :  { %7012 = vmatmul.mubr.msk.f32.vlgmr.msra.gmra.mxu1 %vm413_vm10, %v4971_v34  ;;  %7024 = vmatprep.subr.mxu0 %v7237_v0 }
 0x789   :  { %7017 = vmatmul.mubr.msk.f32.vlgmr.msra.gmra.mxu0 %vm413_vm10, %v5051_v56  ;;  %7020 = vmatpush3.xpose.msk.msra.mxu1 %vm413_vm10, %v5134_v44 }
 0x78a   :  { %7021 = vmatprep.mubr.msk.f32.mxu1 %vm7238_vm1, %v7237_v0  ;;  %7029 = vmatprep.subr.mxu1 %v7237_v0 }
 0x78b   :  { %7026 = vmatprep.mubr.msk.f32.mxu0 %vm7238_vm1, %v7237_v0 }
 0x78c   :  { %7022 = vmatmul.mubr.msk.f32.vlgmr.msra.gmra.mxu1 %vm413_vm10, %v5131_v6 }
 0x78d   :  { %7031 = vmatprep.mubr.msk.f32.mxu1 %vm7238_vm1, %v7237_v0 }
 0x82c   :  { %v8165_v10 = vpop.f32.mrf.mxu0 }
 0x82e   :  { %v6948_v46 = vpop.f32.mrf.mxu0 }
 0x82f   :  { %v8167_v47 = vpop.f32.mrf.mxu1 }
 0x830   :  { %v8169_v48 = vpop.f32.mrf.mxu0 }
 0x831   :  { %v6953_v49 = vpop.f32.mrf.mxu1 }
 0x832   :  { %v6958_v51 = vpop.f32.mrf.mxu0 }
 0x834   :  { %v8171_v54 = vpop.f32.mrf.mxu1 }
 0x835   :  { %v8173_v55 = vpop.f32.mrf.mxu0 }
 0x836   :  { %v6963_v57 = vpop.f32.mrf.mxu1 }
 0x837   :  { %v6968_v52 = vpop.f32.mrf.mxu0 }
 0x838   :  { %v8175_v58 = vpop.f32.mrf.mxu1 }
 0x839   :  { %v8177_v59 = vpop.f32.mrf.mxu0 }
 0x83a   :  { %v6973_v60 = vpop.f32.mrf.mxu1 }
 0x83b   :  { %v6978_v61 = vpop.f32.mrf.mxu0 }
 0x83c   :  { %v8179_v62 = vpop.f32.mrf.mxu1 }
 0x83d   :  { %v4645_v1 = vpop.f32.mrf.mxu0 }
 0x83e   :  { %v6983_v5 = vpop.f32.mrf.mxu1  ;;  %v5209_v8 = vsel %vm1035_vm12, %v4645_v1, -inf }
 0x83f   :  { %5210 = vmax.xlane.f32.xlu0 %v5209_v8  ;;  %v6988_v12 = vpop.f32.mrf.mxu0 }
 0x840   :  { %v4725_v13 = vpop.f32.mrf.mxu1 }
 0x841   :  { %v4805_v16 = vpop.f32.mrf.mxu0  ;;  %v5212_v53 = vsel %vm1035_vm12, %v4725_v13, -inf }
 0x842   :  { %5213 = vmax.xlane.f32.xlu1 %v5212_v53  ;;  %v6993_v39 = vpop.f32.mrf.mxu1  ;;  %v5215_v43 = vsel %vm1035_vm12, %v4805_v16, -inf }
 0x843   :  { %5216 = vmax.xlane.f32.xlu0 %v5215_v43  ;;  %v6998_v18 = vpop.f32.mrf.mxu0 }
 0x844   :  { %v4885_v19 = vpop.f32.mrf.mxu1 }
 0x845   :  { %v4965_v20 = vpop.f32.mrf.mxu0  ;;  %v5218_v23 = vsel %vm1035_vm12, %v4885_v19, -inf }
 0x846   :  { %v7003_v50 = vpop.f32.mrf.mxu1  ;;  %v5221_v24 = vsel %vm1035_vm12, %v4965_v20, -inf }
 0x847   :  { %5219 = vmax.xlane.f32.xlu0 %v5218_v23  ;;  %5222 = vmax.xlane.f32.xlu1 %v5221_v24  ;;  %v7008_v21 = vpop.f32.mrf.mxu0 }
 0x848   :  { %v5045_v22 = vpop.f32.mrf.mxu1 }
 0x849   :  { %v5125_v28 = vpop.f32.mrf.mxu0  ;;  %v5224_v29 = vsel %vm1035_vm12, %v5045_v22, -inf }
 0x84a   :  { %v7013_v32 = vpop.f32.mrf.mxu1  ;;  %v5227_v25 = vsel %vm1035_vm12, %v5125_v28, -inf }
 0x84b   :  { %5225 = vmax.xlane.f32.xlu0 %v5224_v29  ;;  %5228 = vmax.xlane.f32.xlu1 %v5227_v25  ;;  %v7018_v27 = vpop.f32.mrf.mxu0 }
 0x84c   :  { %v5205_v33 = vpop.f32.mrf.mxu1 }
 0x84d   :  { %v5230_v35 = vsel %vm1035_vm12, %v5205_v33, -inf }
 0x84e   :  { %v7023_v30 = vpop.f32.mrf.mxu1 }
 0x84f   :  { %5231 = vmax.xlane.f32.xlu0 %v5230_v35 }
 0x85c   :  { %5297 = vrot.lane.b32.xlu1 %v7978_v17, %s7250_s27 }
 0x860   :  { %5451 = vrot.lane.b32.xlu1 %v7990_v7, %s7250_s27 }
 0x864   :  { %5528 = vrot.lane.b32.xlu1 %v7983_v4, %s7250_s27 }
 0x865   :  { %5374 = vrot.lane.b32.xlu0 %v7970_v45, %s7250_s27 }
 0x868   :  { %5682 = vrot.lane.b32.xlu1 %v8030_v36, %s7250_s27 }
 0x869   :  { %5605 = vrot.lane.b32.xlu0 %v8038_v42, %s7250_s27 }
 0x8c8   :  { %v5211_v31 = vpop.xlane.xlu0 %5210 }
 0x8c9   :  { %v5233_v34 = vsub.f32 %v4645_v1, %v5211_v31 }
 0x8cb   :  { %v5241_v38 = vmul.f32 1.442695, %v5233_v34  ;;  %v5214_v44 = vpop.xlane.xlu1 %5213 }
 0x8cc   :  { %v5234_v17 = vsub.f32 %v4725_v13, %v5214_v44  ;;  %v5217_v56 = vpop.xlane.xlu0 %5216 }
 0x8cd   :  { %7201 = vpow2.f32 %v5241_v38  ;;  %v5235_v7 = vsub.f32 %v4805_v16, %v5217_v56 }
 0x8ce   :  { %v5243_v6 = vmul.f32 1.442695, %v5234_v17 }
 0x8cf   :  { %v5245_v46 = vmul.f32 1.442695, %v5235_v7 }
 0x8d0   :  { %7203 = vpow2.f32 %v5243_v6  ;;  %v5220_v4 = vpop.xlane.xlu0 %5219  ;;  %v5223_v49 = vpop.xlane.xlu1 %5222 }
 0x8d1   :  { %7205 = vpow2.f32 %v5245_v46  ;;  %v5236_v45 = vsub.f32 %v4885_v19, %v5220_v4  ;;  %v5237_v51 = vsub.f32 %v4965_v20, %v5223_v49 }
 0x8d3   :  { %v5247_v36 = vmul.f32 1.442695, %v5236_v45  ;;  %v5249_v57 = vmul.f32 1.442695, %v5237_v51 }
 0x8d4   :  { %v5226_v52 = vpop.xlane.xlu0 %5225  ;;  %v5229_v42 = vpop.xlane.xlu1 %5228 }
 0x8d5   :  { %7207 = vpow2.f32 %v5247_v36  ;;  %v5238_v60 = vsub.f32 %v5045_v22, %v5226_v52  ;;  %v5239_v61 = vsub.f32 %v5125_v28, %v5229_v42 }
 0x8d6   :  { %7209 = vpow2.f32 %v5249_v57 }
 0x8d7   :  { %v5251_v1 = vmul.f32 1.442695, %v5238_v60  ;;  %v5253_v5 = vmul.f32 1.442695, %v5239_v61 }
 0x8d8   :  { %v5232_v8 = vpop.xlane.xlu0 %5231  ;;  %v5298_v12 = vpop.permute.xlu1 %5297 }
 0x8d9   :  { %7211 = vpow2.f32 %v5251_v1  ;;  %v5240_v13 = vsub.f32 %v5205_v33, %v5232_v8  ;;  %7025 = vmatpush3.msk.msra.mxu0 %vm1130_vm11, %v5298_v12 }
 0x8da   :  { %v8202_v16 = vpop.eup %7201  ;;  %7213 = vpow2.f32 %v5253_v5  ;;  %7034 = vmatprep.subr.mxu0 %v7237_v0 }
 0x8db   :  { %v5255_v53 = vmul.f32 1.442695, %v5240_v13  ;;  %v5257_v39 = vsel %vm1035_vm12, %v8202_v16, 0.0 }
 0x8dc   :  { %v5375_v43 = vpop.permute.xlu0 %5374  ;;  %5258 = vadd.xlane.f32.xlu1 %v5257_v39 }
 0x8dd   :  { %v8207_v18 = vpop.eup %7203  ;;  %7215 = vpow2.f32 %v5255_v53  ;;  %7030 = vmatpush3.msk.msra.mxu1 %vm1130_vm11, %v5375_v43 }
 0x8de   :  { %v8210_v19 = vpop.eup %7205  ;;  %v5260_v20 = vsel %vm1035_vm12, %v8207_v18, 0.0  ;;  %7039 = vmatprep.subr.mxu1 %v7237_v0 }
 0x8df   :  { %5261 = vadd.xlane.f32.xlu0 %v5260_v20  ;;  %v5263_v23 = vsel %vm1035_vm12, %v8210_v19, 0.0 }
 0x8e0   :  { %5264 = vadd.xlane.f32.xlu1 %v5263_v23 }
 0x8e2   :  { %v8217_v50 = vpop.eup %7207 }
 0x8e3   :  { %v8219_v24 = vpop.eup %7209  ;;  %v5266_v21 = vsel %vm1035_vm12, %v8217_v50, 0.0 }
 0x8e4   :  { %5267 = vadd.xlane.f32.xlu0 %v5266_v21  ;;  %v5269_v22 = vsel %vm1035_vm12, %v8219_v24, 0.0 }
 0x8e5   :  { %5270 = vadd.xlane.f32.xlu1 %v5269_v22  ;;  %v7102_v22 = vld [vmem:[%s8517_s3 + $0x8] sm:$0xff]  }
 0x8e6   :  { %v8225_v28 = vpop.eup %7211 }
 0x8e7   :  { %v8227_v29 = vpop.eup %7213  ;;  %v5272_v32 = vsel %vm1035_vm12, %v8225_v28, 0.0 }
 0x8e8   :  { %5273 = vadd.xlane.f32.xlu0 %v5272_v32  ;;  %v5275_v25 = vsel %vm1035_vm12, %v8227_v29, 0.0 }
 0x8e9   :  { %5276 = vadd.xlane.f32.xlu1 %v5275_v25  ;;  %v7104_v25 = vld [vmem:[%s8517_s3] sm:$0xff]  }
 0x8ea   :  { %v8233_v27 = vpop.eup %7215 }
 0x8eb   :  { %v5278_v33 = vsel %vm1035_vm12, %v8233_v27, 0.0 }
 0x8ec   :  { %5279 = vadd.xlane.f32.xlu0 %v5278_v33 }
 0x8fa   :  { %5836 = vrot.lane.b32.xlu1 %v8036_v41, %s7250_s27 }
 0x8fe   :  { %3123 = vrot.lane.b32.xlu1 %v7938_v3, %s7251_s28 }
 0x902   :  { %3119 = vrot.lane.b32.xlu1 %v7934_v63, %s7251_s28  ;;  %5759 = vrot.lane.b32.xlu0 %v8048_v40, %s7250_s27  ;;  %v5452_v63 = vpop.permute.xlu1 %5451 }
 0x906   :  { %4524 = vrot.lane.b32.xlu1 %v8169_v48, %s7252_s29  ;;  %3121 = vrot.lane.b32.xlu0 %v7936_v2, %s7251_s28  ;;  %v5529_v2 = vpop.permute.xlu1 %5528 }
 0x90a   :  { %3127 = vrot.lane.b32.xlu1 %v7942_v11, %s7251_s28  ;;  %4522 = vrot.lane.b32.xlu0 %v8167_v47, %s7252_s29  ;;  %v5683_v3 = vpop.permute.xlu1 %5682 }
 0x90e   :  { %4526 = vrot.lane.b32.xlu1 %v8171_v54, %s7252_s29  ;;  %3125 = vrot.lane.b32.xlu0 %v7940_v9, %s7251_s28  ;;  %v5606_v9 = vpop.permute.xlu0 %5605 }
 0x912   :  { %3129 = vrot.lane.b32.xlu1 %v7944_v14, %s7251_s28  ;;  %4520 = vrot.lane.b32.xlu0 %v8165_v10, %s7252_s29 }
 0x916   :  { %3131 = vrot.lane.b32.xlu1 %v7946_v15, %s7251_s28  ;;  %4528 = vrot.lane.b32.xlu0 %v8173_v55, %s7252_s29 }
 0x91a   :  { %4532 = vrot.lane.b32.xlu1 %v8177_v59, %s7252_s29  ;;  %4530 = vrot.lane.b32.xlu0 %v8175_v58, %s7252_s29 }
 0x91e   :  { %4534 = vrot.lane.b32.xlu1 %v8179_v62, %s7252_s29  ;;  %3133 = vrot.lane.b32.xlu0 %v7948_v37, %s7251_s28 }
 0x965   :  { %v5259_v11 = vpop.xlane.xlu1 %5258 }
 0x966   :  { %7217 = vrcp.f32 %v5259_v11 }
 0x968   :  { %v5262_v14 = vpop.xlane.xlu0 %5261 }
 0x969   :  { %7219 = vrcp.f32 %v5262_v14  ;;  %v5265_v41 = vpop.xlane.xlu1 %5264 }
 0x96a   :  { %7221 = vrcp.f32 %v5265_v41 }
 0x96d   :  { %v5268_v15 = vpop.xlane.xlu0 %5267 }
 0x96e   :  { %7223 = vrcp.f32 %v5268_v15  ;;  %v5271_v40 = vpop.xlane.xlu1 %5270 }
 0x96f   :  { %7225 = vrcp.f32 %v5271_v40 }
 0x971   :  { %v5274_v10 = vpop.xlane.xlu0 %5273 }
 0x972   :  { %7227 = vrcp.f32 %v5274_v10  ;;  %v5277_v47 = vpop.xlane.xlu1 %5276 }
 0x973   :  { %v7218_v48 = vpop.eup %7217  ;;  %7229 = vrcp.f32 %v5277_v47 }
 0x974   :  { %v5289_v37 = vmul.f32 %v7218_v48, %v8202_v16 }
 0x975   :  { %v5280_v54 = vpop.xlane.xlu0 %5279 }
 0x976   :  { %v7220_v55 = vpop.eup %7219  ;;  %7231 = vrcp.f32 %v5280_v54  ;;  %v5837_v58 = vpop.permute.xlu1 %5836  ;;  %7027 = vmatmul.mubr.msk.f32.vlgmr.msra.gmra.mxu0 %vm1126_vm13, %v5289_v37 }
 0x977   :  { %v7222_v59 = vpop.eup %7221  ;;  %7035 = vmatpush3.msk.msra.mxu0 %vm1130_vm11, %v5452_v63  ;;  %7036 = vmatprep.mubr.msk.f32.mxu0 %vm7238_vm1, %v7237_v0  ;;  %v5290_v62 = vmul.f32 %v7220_v55, %v8207_v18 }
 0x978   :  { %7044 = vmatprep.subr.mxu0 %v7237_v0  ;;  %v5291_v35 = vmul.f32 %v7222_v59, %v8210_v19 }
 0x979   :  { %v5760_v30 = vpop.permute.xlu0 %5759  ;;  %7032 = vmatmul.mubr.msk.f32.vlgmr.msra.gmra.mxu1 %vm1126_vm13, %v5290_v62 }
 0x97a   :  { %v3124_v31 = vpop.permute.xlu1 %3123  ;;  %7037 = vmatmul.mubr.msk.f32.vlgmr.msra.gmra.mxu0 %vm1126_vm13, %v5291_v35  ;;  %7040 = vmatpush3.msk.msra.mxu1 %vm1130_vm11, %v5529_v2 }
 0x97b   :  { %v7224_v34 = vpop.eup %7223  ;;  %3146 = vst.msk [vmem:[#allocation3 + $0x4] sm:$0x3] %vm3143_vm15, %v3124_v31  ;;  %7045 = vmatpush3.msk.msra.mxu0 %vm1130_vm11, %v5606_v9  ;;  %7041 = vmatprep.mubr.msk.f32.mxu1 %vm7238_vm1, %v7237_v0 }
 0x97c   :  { %v7226_v38 = vpop.eup %7225  ;;  %7046 = vmatprep.mubr.msk.f32.mxu0 %vm7238_vm1, %v7237_v0  ;;  %7049 = vmatprep.subr.mxu1 %v7237_v0  ;;  %v5292_v44 = vmul.f32 %v7224_v34, %v8217_v50 }
 0x97d   :  { %v3122_v17 = vpop.permute.xlu0 %3121  ;;  %7054 = vmatprep.subr.mxu0 %v7237_v0  ;;  %v5293_v56 = vmul.f32 %v7226_v38, %v8219_v24  ;;  %v7101_v24 = vld [vmem:[%s8517_s3 + $0x8] sm:$0xff]  }
 0x97e   :  { %3145 = vst.msk [vmem:[#allocation3 + $0x2] sm:$0x3] %vm3143_vm15, %v3122_v17  ;;  %v3120_v7 = vpop.permute.xlu1 %3119  ;;  %7042 = vmatmul.mubr.msk.f32.vlgmr.msra.gmra.mxu1 %vm1126_vm13, %v5292_v44 }
 0x97f   :  { %v7228_v6 = vpop.eup %7227  ;;  %3144 = vst.msk [vmem:[#allocation3] sm:$0x3] %vm3143_vm15, %v3120_v7  ;;  %7047 = vmatmul.mubr.msk.f32.vlgmr.msra.gmra.mxu0 %vm1126_vm13, %v5293_v56  ;;  %7050 = vmatpush3.msk.msra.mxu1 %vm1130_vm11, %v5683_v3 }
 0x980   :  { %v7230_v46 = vpop.eup %7229  ;;  %7055 = vmatpush3.msk.msra.mxu0 %vm1130_vm11, %v5760_v30  ;;  %7051 = vmatprep.mubr.msk.f32.mxu1 %vm7238_vm1, %v7237_v0  ;;  %v5294_v4 = vmul.f32 %v7228_v6, %v8225_v28 }
 0x981   :  { %v4523_v49 = vpop.permute.xlu0 %4522  ;;  %7056 = vmatprep.mubr.msk.f32.mxu0 %vm7238_vm1, %v7237_v0  ;;  %7059 = vmatprep.subr.mxu1 %v7237_v0  ;;  %v5295_v45 = vmul.f32 %v7230_v46, %v8227_v29  ;;  %v7103_v29 = vld [vmem:[%s8517_s3] sm:$0xff]  }
 0x982   :  { %4546 = vst.msk [vmem:[#allocation3 + $0x2] sm:$0x3] %vm4544_vm9, %v4523_v49  ;;  %v4525_v51 = vpop.permute.xlu1 %4524  ;;  %7052 = vmatmul.mubr.msk.f32.vlgmr.msra.gmra.mxu1 %vm1126_vm13, %v5294_v4  ;;  %7064 = vmatprep.subr.bf16.mxu0 %v7237_v0 }
 0x983   :  { %v7232_v36 = vpop.eup %7231  ;;  %4547 = vst.msk [vmem:[#allocation3 + $0x4] sm:$0x3] %vm4544_vm9, %v4525_v51  ;;  %7057 = vmatmul.mubr.msk.f32.vlgmr.msra.gmra.mxu0 %vm1126_vm13, %v5295_v45  ;;  %7060 = vmatpush3.msk.msra.mxu1 %vm1130_vm11, %v5837_v58 }
 0x984   :  { %7061 = vmatprep.mubr.msk.f32.mxu1 %vm7238_vm1, %v7237_v0  ;;  %v5296_v57 = vmul.f32 %v7232_v36, %v8233_v27  ;;  %7072 = vmatprep.subr.bf16.mxu1 %v7237_v0 }
 0x985   :  { %v3126_v52 = vpop.permute.xlu0 %3125  ;;  %7068 = vmatprep.mubr.msk.bf16.mxu0 %vm7238_vm1, %v7237_v0  ;;  %7065 = vmatpush3.bf16.msra.mxu0 %v7101_v24 }
 0x986   :  { %3147 = vst.msk [vmem:[#allocation3 + $0x6] sm:$0x3] %vm3143_vm15, %v3126_v52  ;;  %v3128_v42 = vpop.permute.xlu1 %3127  ;;  %7062 = vmatmul.mubr.msk.f32.vlgmr.msra.gmra.mxu1 %vm1126_vm13, %v5296_v57  ;;  %7066 = vmatprep.subr.bf16.mxu0 %v7237_v0 }
 0x987   :  { %3148 = vst.msk [vmem:[#allocation3 + $0x8] sm:$0x3] %vm3143_vm15, %v3128_v42  ;;  %7076 = vmatprep.mubr.msk.bf16.mxu1 %vm7238_vm1, %v7237_v0  ;;  %7073 = vmatpush3.bf16.msra.mxu1 %v7102_v22  ;;  %vm5945_vm1 = vcmask 255168  }
 0x988   :  { %7074 = vmatprep.subr.bf16.mxu1 %v7237_v0 }
 0x989   :  { %v4521_v60 = vpop.permute.xlu0 %4520  ;;  %7067 = vmatpush3.bf16.msra.mxu0 %v7103_v29 }
 0x98a   :  { %4545 = vst.msk [vmem:[#allocation3] sm:$0x3] %vm4544_vm9, %v4521_v60  ;;  %v4527_v61 = vpop.permute.xlu1 %4526 }
 0x98b   :  { %4548 = vst.msk [vmem:[#allocation3 + $0x6] sm:$0x3] %vm4544_vm9, %v4527_v61  ;;  %7075 = vmatpush3.bf16.msra.mxu1 %v7104_v25 }
 0x98d   :  { %v4529_v1 = vpop.permute.xlu0 %4528 }
 0x98e   :  { %4549 = vst.msk [vmem:[#allocation3 + $0x8] sm:$0x3] %vm4544_vm9, %v4529_v1  ;;  %v3130_v5 = vpop.permute.xlu1 %3129 }
 0x98f   :  { %3149 = vst.msk [vmem:[#allocation3 + $0xa] sm:$0x3] %vm3143_vm15, %v3130_v5 }
 0x991   :  { %v4531_v8 = vpop.permute.xlu0 %4530 }
 0x992   :  { %4550 = vst.msk [vmem:[#allocation3 + $0xa] sm:$0x3] %vm4544_vm9, %v4531_v8  ;;  %v3132_v12 = vpop.permute.xlu1 %3131 }
 0x993   :  { %3150 = vst.msk [vmem:[#allocation3 + $0xc] sm:$0x3] %vm3143_vm15, %v3132_v12 }
 0x995   :  { %v3134_v13 = vpop.permute.xlu0 %3133 }
 0x996   :  { %3151 = vst.msk [vmem:[#allocation3 + $0xe] sm:$0x3] %vm3143_vm15, %v3134_v13  ;;  %v4533_v16 = vpop.permute.xlu1 %4532 }
 0x997   :  { %4551 = vst.msk [vmem:[#allocation3 + $0xc] sm:$0x3] %vm4544_vm9, %v4533_v16 }
 0x99a   :  { %v4535_v53 = vpop.permute.xlu1 %4534 }
 0x99b   :  { %4552 = vst.msk [vmem:[#allocation3 + $0xe] sm:$0x3] %vm4544_vm9, %v4535_v53 }
 0xa36   :  { %v5370_v39 = vpop.f32.mrf.mxu0 }
 0xa37   :  { %5921 = vrot.lane.b32.xlu1 %v5370_v39, %s7253_s30 }
 0xa38   :  { %v7028_v43 = vpop.f32.mrf.mxu0 }
 0xa39   :  { %v5447_v18 = vpop.f32.mrf.mxu1 }
 0xa3a   :  { %v5524_v19 = vpop.f32.mrf.mxu0  ;;  %5923 = vrot.lane.b32.xlu0 %v5447_v18, %s7253_s30 }
 0xa3b   :  { %v7033_v20 = vpop.f32.mrf.mxu1 }
 0xa3c   :  { %v7038_v23 = vpop.f32.mrf.mxu0 }
 0xa3e   :  { %v5601_v50 = vpop.f32.mrf.mxu1  ;;  %5925 = vrot.lane.b32.xlu0 %v5524_v19, %s7253_s30 }
 0xa3f   :  { %v5678_v21 = vpop.f32.mrf.mxu0 }
 0xa40   :  { %5929 = vrot.lane.b32.xlu1 %v5678_v21, %s7253_s30  ;;  %v7043_v28 = vpop.f32.mrf.mxu1 }
 0xa41   :  { %v7048_v32 = vpop.f32.mrf.mxu0 }
 0xa42   :  { %v5755_v27 = vpop.f32.mrf.mxu1  ;;  %5927 = vrot.lane.b32.xlu0 %v5601_v50, %s7253_s30 }
 0xa43   :  { %v5832_v33 = vpop.f32.mrf.mxu0 }
 0xa44   :  { %v7053_v63 = vpop.f32.mrf.mxu1 }
 0xa45   :  { %v7058_v2 = vpop.f32.mrf.mxu0 }
 0xa46   :  { %v5909_v3 = vpop.f32.mrf.mxu1  ;;  %5931 = vrot.lane.b32.xlu0 %v5755_v27, %s7253_s30 }
 0xa47   :  { %5935 = vrot.lane.b32.xlu1 %v5909_v3, %s7253_s30 }
 0xa48   :  { %v7063_v9 = vpop.f32.mrf.mxu1 }
 0xa4a   :  { %5933 = vrot.lane.b32.xlu0 %v5832_v33, %s7253_s30 }
 0xaa9   :  { %v5922_v11 = vpop.permute.xlu1 %5921 }
 0xaaa   :  { %5946 = vst.msk [vmem:[#allocation3] sm:$0x3] %vm5945_vm1, %v5922_v11 }
 0xaac   :  { %v5924_v14 = vpop.permute.xlu0 %5923 }
 0xaad   :  { %5947 = vst.msk [vmem:[#allocation3 + $0x2] sm:$0x3] %vm5945_vm1, %v5924_v14 }
 0xab0   :  { %v5926_v0 = vpop.permute.xlu0 %5925 }
 0xab1   :  { %5948 = vst.msk [vmem:[#allocation3 + $0x4] sm:$0x3] %vm5945_vm1, %v5926_v0  ;;  %v5954_v59 = vld [vmem:[#allocation3] sm:$0x1]  ;;  %v6196_v35 = vld [vmem:[#allocation3 + $0x1] sm:$0x1] }
 0xab2   :  { %v5930_v41 = vpop.permute.xlu1 %5929  ;;  %v5962_v56 = vpack.c.bf16 %v5954_v59, %v5954_v59  ;;  %v6204_v4 = vpack.c.bf16 %v6196_v35, %v6196_v35 }
 0xab3   :  { %5950 = vst.msk [vmem:[#allocation3 + $0x8] sm:$0x3] %vm5945_vm1, %v5930_v41 }
 0xab4   :  { %v5928_v15 = vpop.permute.xlu0 %5927  ;;  %v5955_v40 = vld [vmem:[#allocation3 + $0x2] sm:$0x1]  ;;  %v6197_v10 = vld [vmem:[#allocation3 + $0x3] sm:$0x1]  ;;  %v5989_v5 = vunpack.c.l.b16 %v5962_v56  ;;  %v6231_v13 = vunpack.c.l.b16 %v6204_v4 }
 0xab5   :  { %5949 = vst.msk [vmem:[#allocation3 + $0x6] sm:$0x3] %vm5945_vm1, %v5928_v15  ;;  %v5963_v47 = vpack.c.bf16 %v5955_v40, %v5955_v40  ;;  %v6205_v48 = vpack.c.bf16 %v6197_v10, %v6197_v10 }
 0xab7   :  { %v5990_v31 = vunpack.c.l.b16 %v5963_v47  ;;  %v6232_v34 = vunpack.c.l.b16 %v6205_v48 }
 0xab8   :  { %v5932_v37 = vpop.permute.xlu0 %5931  ;;  %v5956_v54 = vld [vmem:[#allocation3 + $0x4] sm:$0x1]  ;;  %v6198_v55 = vld [vmem:[#allocation3 + $0x5] sm:$0x1] }
 0xab9   :  { %5951 = vst.msk [vmem:[#allocation3 + $0xa] sm:$0x3] %vm5945_vm1, %v5932_v37  ;;  %v5936_v58 = vpop.permute.xlu1 %5935  ;;  %v5964_v62 = vpack.c.bf16 %v5956_v54, %v5956_v54  ;;  %v6206_v30 = vpack.c.bf16 %v6198_v55, %v6198_v55  ;;  %v5997_v36 = vrot.slane %v5990_v31, 7  ;;  %v6239_v57 = vrot.slane %v6232_v34, 7 }
 0xaba   :  { %5953 = vst.msk [vmem:[#allocation3 + $0xe] sm:$0x3] %vm5945_vm1, %v5936_v58  ;;  %v5958_v38 = vld [vmem:[#allocation3 + $0x8] sm:$0x1]  ;;  %v6200_v46 = vld [vmem:[#allocation3 + $0x9] sm:$0x1] }
 0xabb   :  { %v5991_v7 = vunpack.c.l.b16 %v5964_v62  ;;  %v6233_v49 = vunpack.c.l.b16 %v6206_v30  ;;  %v5966_v52 = vpack.c.bf16 %v5958_v38, %v5958_v38  ;;  %v6208_v60 = vpack.c.bf16 %v6200_v46, %v6200_v46  ;;  %v6069_v46 = vld [vmem:[%s8515_s0 + $0x4] sm:$0x1] }
 0xabc   :  { %v5934_v44 = vpop.permute.xlu0 %5933  ;;  %v5957_v17 = vld [vmem:[#allocation3 + $0x6] sm:$0x1]  ;;  %v6199_v6 = vld [vmem:[#allocation3 + $0x7] sm:$0x1]  ;;  %v5998_v50 = vsel %vm71_vm0, %v5997_v36, %v5989_v5  ;;  %v6240_v21 = vsel %vm71_vm0, %v6239_v57, %v6231_v13  ;;  %v6309_v36 = vld [vmem:[%s8515_s0 + $0x1] sm:$0x1] }
 0xabd   :  { %5952 = vst.msk [vmem:[#allocation3 + $0xc] sm:$0x3] %vm5945_vm1, %v5934_v44  ;;  %v5965_v45 = vpack.c.bf16 %v5957_v17, %v5957_v17  ;;  %v6207_v51 = vpack.c.bf16 %v6199_v6, %v6199_v6  ;;  %v5999_v8 = vrot.slane %v5991_v7, 6  ;;  %v6241_v16 = vrot.slane %v6233_v49, 6  ;;  %v6068_v7 = vld [vmem:[%s8515_s0 + $0x2] sm:$0x1] }
 0xabe   :  { %v5993_v22 = vunpack.c.l.b16 %v5966_v52  ;;  %v6235_v29 = vunpack.c.l.b16 %v6208_v60  ;;  %v6310_v6 = vld [vmem:[%s8515_s0 + $0x3] sm:$0x1]  ;;  %v6083_v4 = vrot.slane %v6068_v7, 7  ;;  %v6311_v49 = vld [vmem:[%s8515_s0 + $0x5] sm:$0x1]  ;;  %v6085_v52 = vrot.slane %v6069_v46, 6 }
 0xabf   :  { %v5992_v42 = vunpack.c.l.b16 %v5965_v45  ;;  %v6234_v61 = vunpack.c.l.b16 %v6207_v51  ;;  %v6000_v27 = vsel %vm74_vm2, %v5999_v8, %v5998_v50  ;;  %v6242_v63 = vsel %vm74_vm2, %v6241_v16, %v6240_v21  ;;  %v6067_v51 = vld [vmem:[%s8515_s0] sm:$0x1]  ;;  %v6070_v57 = vld [vmem:[%s8515_s0 + $0x6] sm:$0x1]  ;;  %v6071_v5 = vld [vmem:[%s8515_s0 + $0x8] sm:$0x1] }
 0xac0   :  { %v5959_v1 = vld [vmem:[#allocation3 + $0xa] sm:$0x1]  ;;  %v6201_v12 = vld [vmem:[#allocation3 + $0xb] sm:$0x1]  ;;  %v6003_v10 = vrot.slane %v5993_v22, 4  ;;  %v6245_v48 = vrot.slane %v6235_v29, 4 }
 0xac1   :  { %v5961_v53 = vld [vmem:[#allocation3 + $0xe] sm:$0x1]  ;;  %v5967_v39 = vpack.c.bf16 %v5959_v1, %v5959_v1  ;;  %v6001_v43 = vrot.slane %v5992_v42, 5  ;;  %v6203_v18 = vld [vmem:[#allocation3 + $0xf] sm:$0x1]  ;;  %v6209_v19 = vpack.c.bf16 %v6201_v12, %v6201_v12  ;;  %v6243_v20 = vrot.slane %v6234_v61, 5 }
 0xac2   :  { %v5969_v23 = vpack.c.bf16 %v5961_v53, %v5961_v53  ;;  %v6211_v24 = vpack.c.bf16 %v6203_v18, %v6203_v18  ;;  %v6325_v45 = vrot.slane %v6310_v6, 7  ;;  %v6312_v42 = vld [vmem:[%s8515_s0 + $0x7] sm:$0x1]  ;;  %v6327_v60 = vrot.slane %v6311_v49, 6  ;;  %v6313_v12 = vld [vmem:[%s8515_s0 + $0x9] sm:$0x1] }
 0xac3   :  { %v5994_v28 = vunpack.c.l.b16 %v5967_v39  ;;  %v6236_v32 = vunpack.c.l.b16 %v6209_v19  ;;  %v6002_v3 = vsel %vm77_vm3, %v6001_v43, %v6000_v27  ;;  %v6244_v11 = vsel %vm77_vm3, %v6243_v20, %v6242_v63  ;;  %v6072_v39 = vld [vmem:[%s8515_s0 + $0xa] sm:$0x1]  ;;  %v6314_v18 = vld [vmem:[%s8515_s0 + $0xb] sm:$0x1]  ;;  %v6073_v50 = vld [vmem:[%s8515_s0 + $0xc] sm:$0x1] }
 0xac4   :  { %v5960_v25 = vld [vmem:[#allocation3 + $0xc] sm:$0x1]  ;;  %v6202_v33 = vld [vmem:[#allocation3 + $0xd] sm:$0x1]  ;;  %v5996_v14 = vunpack.c.l.b16 %v5969_v23  ;;  %v6238_v41 = vunpack.c.l.b16 %v6211_v24  ;;  %v6004_v37 = vsel %vm80_vm4, %v6003_v10, %v6002_v3  ;;  %v6246_v55 = vsel %vm80_vm4, %v6245_v48, %v6244_v11  ;;  %v6315_v21 = vld [vmem:[%s8515_s0 + $0xd] sm:$0x1] }
 0xac5   :  { %v5968_v2 = vpack.c.bf16 %v5960_v25, %v5960_v25  ;;  %v6210_v9 = vpack.c.bf16 %v6202_v33, %v6202_v33  ;;  %v6005_v0 = vrot.slane %v5994_v28, 3  ;;  %v6247_v15 = vrot.slane %v6236_v32, 3  ;;  %v6074_v32 = vld [vmem:[%s8515_s0 + $0xe] sm:$0x1]  ;;  %v6316_v27 = vld [vmem:[%s8515_s0 + $0xf] sm:$0x1] }
 0xac6   :  { %v6009_v62 = vrot.slane %v5996_v14, 1  ;;  %v6251_v30 = vrot.slane %v6238_v41, 1  ;;  %v6084_v61 = vsel %vm71_vm0, %v6083_v4, %v6067_v51  ;;  %v6326_v1 = vsel %vm71_vm0, %v6325_v45, %v6309_v36 }
 0xac7   :  { %v5995_v40 = vunpack.c.l.b16 %v5968_v2  ;;  %v6237_v47 = vunpack.c.l.b16 %v6210_v9  ;;  %v6006_v59 = vsel %vm83_vm5, %v6005_v0, %v6004_v37  ;;  %v6248_v35 = vsel %vm83_vm5, %v6247_v15, %v6246_v55  ;;  %v6576_v0 = vld [vmem:[%s8518_s4] ss:$0 sm:$0xff] }
 0xac8   :  { %v6087_v8 = vrot.slane %v6070_v57, 5  ;;  %v6329_v13 = vrot.slane %v6312_v42, 5  ;;  %v6086_v16 = vsel %vm74_vm2, %v6085_v52, %v6084_v61  ;;  %v6328_v53 = vsel %vm74_vm2, %v6327_v60, %v6326_v1  ;;  %v6580_v1 = vld [vmem:[%s8519_s5] ss:$0 sm:$0xff] }
 0xac9   :  { %v6007_v54 = vrot.slane %v5995_v40, 2  ;;  %v6249_v58 = vrot.slane %v6237_v47, 2  ;;  %v6089_v43 = vrot.slane %v6071_v5, 4  ;;  %v6331_v19 = vrot.slane %v6313_v12, 4 }
 0xaca   :  { %v6088_v20 = vsel %vm77_vm3, %v6087_v8, %v6086_v16  ;;  %v6330_v23 = vsel %vm77_vm3, %v6329_v13, %v6328_v53  ;;  %v6091_v24 = vrot.slane %v6072_v39, 3  ;;  %v6333_v22 = vrot.slane %v6314_v18, 3  ;;  %v6581_v8 = vld [vmem:[%s8520_s6] ss:$0 sm:$0xff] }
 0xacb   :  { %v6008_v31 = vsel %vm86_vm6, %v6007_v54, %v6006_v59  ;;  %v6250_v34 = vsel %vm86_vm6, %v6249_v58, %v6248_v35  ;;  %v6090_v28 = vsel %vm80_vm4, %v6089_v43, %v6088_v20  ;;  %v6332_v29 = vsel %vm80_vm4, %v6331_v19, %v6330_v23 }
 0xacc   :  { %v6010_v38 = vsel %vm89_vm7, %v6009_v62, %v6008_v31  ;;  %v6252_v44 = vsel %vm89_vm7, %v6251_v30, %v6250_v34  ;;  %v6093_v25 = vrot.slane %v6073_v50, 2  ;;  %v6335_v33 = vrot.slane %v6315_v21, 2 }
 0xacd   :  { %v6011_v17 = vpack.c.b16 %v6010_v38, %v6010_v38  ;;  %v6253_v56 = vpack.c.b16 %v6252_v44, %v6252_v44  ;;  %v6092_v63 = vsel %vm83_vm5, %v6091_v24, %v6090_v28  ;;  %v6334_v2 = vsel %vm83_vm5, %v6333_v22, %v6332_v29 }
 0xace   :  { %v6095_v3 = vrot.slane %v6074_v32, 1  ;;  %v6337_v9 = vrot.slane %v6316_v27, 1  ;;  %v6094_v11 = vsel %vm86_vm6, %v6093_v25, %v6092_v63  ;;  %v6336_v14 = vsel %vm86_vm6, %v6335_v33, %v6334_v2 }
 0xacf   :  { %7069 = vmatmul.mubr.msk.bf16.vlgmr.msra.gmra.mxu0 %vm104_vm8, %v6011_v17  ;;  %7077 = vmatmul.mubr.msk.bf16.vlgmr.msra.gmra.mxu1 %vm104_vm8, %v6253_v56  ;;  %vm6187_vm0 = vcmask 253952  }
 0xad0   :  { %v6096_v15 = vsel %vm89_vm7, %v6095_v3, %v6094_v11  ;;  %v6338_v10 = vsel %vm89_vm7, %v6337_v9, %v6336_v14 }
 0xb8f   :  { %v6061_v41 = vpop.f32.mrf.mxu0  ;;  %v6303_v40 = vpop.f32.mrf.mxu1 }
 0xb90   :  { %v6062_v47 = vadd.f32 %v6576_v0, %v6061_v41  ;;  %v6304_v48 = vadd.f32 %v6576_v0, %v6303_v40 }
 0xb91   :  { %v7070_v37 = vpop.f32.mrf.mxu0  ;;  %v7078_v54 = vpop.f32.mrf.mxu1 }
 0xb92   :  { %v6098_v55 = vadd.f32 %v6096_v15, %v6062_v47  ;;  %v6340_v58 = vadd.f32 %v6338_v10, %v6304_v48 }
 0xb93   :  { %v6064_v59 = vpop.f32.mrf.mxu0  ;;  %v6306_v62 = vpop.f32.mrf.mxu1 }
 0xb94   :  { %v6341_v35 = vsel %vm104_vm8, %v6340_v58, 0.0  ;;  %v6099_v30 = vsel %vm104_vm8, %v6098_v55, 0.0 }
 0xb95   :  { %6342 = vadd.xlane.f32.xlu1 %v6341_v35  ;;  %v7079_v31 = vpop.f32.mrf.mxu1  ;;  %6100 = vadd.xlane.f32.xlu0 %v6099_v30  ;;  %v7071_v34 = vpop.f32.mrf.mxu0 }
 0xc1e   :  { %v6343_v38 = vpop.xlane.xlu1 %6342  ;;  %v6101_v44 = vpop.xlane.xlu0 %6100 }
 0xc1f   :  { %v6344_v17 = vmul.f32 0.03125, %v6343_v38  ;;  %v6103_v56 = vmul.f32 0.03125, %v6101_v44 }
 0xc21   :  { %v6345_v7 = vsub.f32 %v6340_v58, %v6344_v17  ;;  %v6104_v6 = vsub.f32 %v6098_v55, %v6103_v56 }
 0xc23   :  { %v6105_v46 = vmul.f32 %v6104_v6, %v6104_v6  ;;  %v6346_v49 = vmul.f32 %v6345_v7, %v6345_v7 }
 0xc25   :  { %v6106_v4 = vsel %vm104_vm8, %v6105_v46, 0.0  ;;  %v6347_v45 = vsel %vm104_vm8, %v6346_v49, 0.0 }
 0xc26   :  { %6107 = vadd.xlane.f32.xlu0 %v6106_v4 }
 0xc2a   :  { %6348 = vadd.xlane.f32.xlu0 %v6347_v45 }
 0xcaf   :  { %v6108_v51 = vpop.xlane.xlu0 %6107 }
 0xcb0   :  { %v6109_v36 = vmul.f32 0.03125, %v6108_v51 }
 0xcb2   :  { %v6110_v57 = vadd.f32 1e-05, %v6109_v36 }
 0xcb3   :  { %v6349_v52 = vpop.xlane.xlu0 %6348 }
 0xcb4   :  { %7233 = vrsqrt.f32 %v6110_v57  ;;  %v6350_v42 = vmul.f32 0.03125, %v6349_v52 }
 0xcb6   :  { %v6351_v60 = vadd.f32 1e-05, %v6350_v42 }
 0xcb8   :  { %7235 = vrsqrt.f32 %v6351_v60 }
 0xcc1   :  { %v7234_v61 = vpop.eup %7233 }
 0xcc2   :  { %v6112_v5 = vmul.f32 %v7234_v61, %v6104_v6 }
 0xcc4   :  { %v6120_v12 = vmul.f32 %v6580_v1, %v6112_v5 }
 0xcc5   :  { %v7236_v13 = vpop.eup %7235 }
 0xcc6   :  { %v6128_v16 = vadd.f32 %v6581_v8, %v6120_v12  ;;  %v6353_v53 = vmul.f32 %v7236_v13, %v6345_v7 }
 0xcc8   :  { %v6130_v39 = vcombine.high %v6128_v16, %v6128_v16  ;;  %v6137_v43 = vrot.slane %v6128_v16, %v7387_v26  ;;  %v6361_v18 = vmul.f32 %v6580_v1, %v6353_v53 }
 0xcca   :  { %v6144_v19 = vrot.slane %v6130_v39, %v7387_v26  ;;  %v6145_v20 = vcombine.high %v6137_v43, %v6137_v43  ;;  %v6153_v23 = vrot.slane %v6137_v43, %v7387_v26  ;;  %v6369_v50 = vadd.f32 %v6581_v8, %v6361_v18 }
 0xccc   :  { %v6146_v24 = vcombine.high %v6144_v19, %v6144_v19  ;;  %v6160_v21 = vrot.slane %v6144_v19, %v7387_v26  ;;  %v6167_v22 = vrot.slane %v6145_v20, %v7387_v26  ;;  %v6175_v28 = vcombine.high %v6153_v23, %v6153_v23  ;;  %6188 = vst.msk [vmem:[%s8521_s7] sm:$0x1] %vm6187_vm0, %v6153_v23 }
 0xccd   :  { %v6371_v29 = vcombine.high %v6369_v50, %v6369_v50  ;;  %v6378_v32 = vrot.slane %v6369_v50, %v7387_v26 }
 0xcce   :  { %v6174_v25 = vrot.slane %v6146_v24, %v7387_v26  ;;  %v6176_v27 = vcombine.high %v6160_v21, %v6160_v21  ;;  %v6177_v33 = vcombine.high %v6167_v22, %v6167_v22  ;;  %6189 = vst.msk [vmem:[%s8521_s7 + $0x2] sm:$0x1] %vm6187_vm0, %v6167_v22  ;;  %6190 = vst.msk [vmem:[%s8521_s7 + $0x4] sm:$0x1] %vm6187_vm0, %v6175_v28 }
 0xccf   :  { %6192 = vst.msk [vmem:[%s8521_s7 + $0x8] sm:$0x1] %vm6187_vm0, %v6160_v21  ;;  %v6385_v63 = vrot.slane %v6371_v29, %v7387_v26  ;;  %v6386_v2 = vcombine.high %v6378_v32, %v6378_v32  ;;  %v6394_v3 = vrot.slane %v6378_v32, %v7387_v26 }
 0xcd0   :  { %v6178_v9 = vcombine.high %v6174_v25, %v6174_v25  ;;  %6191 = vst.msk [vmem:[%s8521_s7 + $0x6] sm:$0x1] %vm6187_vm0, %v6177_v33  ;;  %6193 = vst.msk [vmem:[%s8521_s7 + $0xa] sm:$0x1] %vm6187_vm0, %v6174_v25 }
 0xcd1   :  { %6194 = vst.msk [vmem:[%s8521_s7 + $0xc] sm:$0x1] %vm6187_vm0, %v6176_v27  ;;  %v6387_v11 = vcombine.high %v6385_v63, %v6385_v63  ;;  %v6401_v14 = vrot.slane %v6385_v63, %v7387_v26  ;;  %v6408_v0 = vrot.slane %v6386_v2, %v7387_v26  ;;  %v6416_v41 = vcombine.high %v6394_v3, %v6394_v3 }
 0xcd2   :  { %6428 = vst.msk [vmem:[%s8521_s7 + $0x1] sm:$0x1] %vm6187_vm0, %v6394_v3  ;;  %6195 = vst.msk [vmem:[%s8521_s7 + $0xe] sm:$0x1] %vm6187_vm0, %v6178_v9 }
 0xcd3   :  { %v6415_v15 = vrot.slane %v6387_v11, %v7387_v26  ;;  %v6417_v40 = vcombine.high %v6401_v14, %v6401_v14  ;;  %v6418_v10 = vcombine.high %v6408_v0, %v6408_v0  ;;  %6429 = vst.msk [vmem:[%s8521_s7 + $0x3] sm:$0x1] %vm6187_vm0, %v6408_v0  ;;  %6430 = vst.msk [vmem:[%s8521_s7 + $0x5] sm:$0x1] %vm6187_vm0, %v6416_v41 }
 0xcd4   :  { %6432 = vst.msk [vmem:[%s8521_s7 + $0x9] sm:$0x1] %vm6187_vm0, %v6401_v14 }
 0xcd5   :  { %v6419_v47 = vcombine.high %v6415_v15, %v6415_v15  ;;  %6431 = vst.msk [vmem:[%s8521_s7 + $0x7] sm:$0x1] %vm6187_vm0, %v6418_v10  ;;  %6433 = vst.msk [vmem:[%s8521_s7 + $0xb] sm:$0x1] %vm6187_vm0, %v6415_v15 }
 0xcd6   :  { %6434 = vst.msk [vmem:[%s8521_s7 + $0xd] sm:$0x1] %vm6187_vm0, %v6417_v40 }
 0xcd7   :  { %6435 = vst.msk [vmem:[%s8521_s7 + $0xf] sm:$0x1] %vm6187_vm0, %v6419_v47 }

</bundles_post_ra>
